<compile_context>
chip_gen: v7x
topology: tpu7x:2x2x1
jax: 0.10.0
libtpu: 0.0.40
codegen_flags: <defaults>
</compile_context>

<pallas_src>
import functools

import jax
import jax.numpy as jnp
from jax.experimental import pallas as pl
from jax.experimental.pallas import tpu as pltpu

LANE = 128                      # every kernel N dim is padded to one lane tile
NUM_CLASSES = 10
K1P = 128                       # conv1 patch K (5*5*3 = 75) padded to 128
K2P = 256                       # conv2 patch K (5*5*6 = 150) padded to 256
VMEM_LIMIT = 48 * 1024 * 1024   # <= v7x 64 MiB physical; >> v5e 16 MiB default


def _cdiv(a, b):
    return -(-a // b)


def _round_up(x, m):
    return _cdiv(x, m) * m


def _tile_and_grid(m, target, align=16):
    """Pick (row_tile, grid_steps) for an M / batch axis.

    No exact-divisor requirement: callers pad rows up to tile*steps and slice
    the padding off afterwards.  Prefers exactly 2 grid steps for medium sizes
    so both TensorCores get work on v7x (megacore on v5e/v6e); large sizes use
    `target` rows per step (512-1024 class tiles amortize the ~0.35us/step
    overhead and run near the HBM roofline).
    """
    m_al = _round_up(max(m, align), align)
    if m_al <= align:
        return align, 1
    if m_al <= 2 * target:
        tile = _round_up(_cdiv(m_al, 2), align)      # exactly two grid steps
    else:
        tile = target                                # target is a multiple of align
    return tile, _cdiv(m, tile)


def _full_spec(shape):
    """BlockSpec for a grid-invariant (weights/bias) operand."""
    n = len(shape)
    return pl.BlockSpec(shape, lambda i: (0,) * n)


# ---------------------------------------------------------------------------
# Pallas kernels
# ---------------------------------------------------------------------------

def _conv_relu_pool_kernel(x_ref, w_ref, b_ref, o_ref, *, kp):
    """Fused conv (patch matmul) + bias + ReLU + 2x2 max-pool.

    x_ref: (tm, 4*kp) — the four stride-2 pool-tap im2col patches concatenated
    along K.  max over the four matmul results IS the 2x2 max-pool, since
    max_pq relu(tap_pq @ W + b) == relu(max_pq(tap_pq @ W) + b).
    """
    w = w_ref[...]
    acc = jnp.dot(x_ref[:, 0:kp], w, preferred_element_type=jnp.float32)
    for i in range(1, 4):
        acc = jnp.maximum(
            acc,
            jnp.dot(x_ref[:, i * kp:(i + 1) * kp], w,
                    preferred_element_type=jnp.float32))
    o_ref[...] = jnp.maximum(acc + b_ref[...], 0.0).astype(o_ref.dtype)


def _conv2_mlp_kernel(x_ref, w2_ref, b2_ref, w1_ref, b1_ref, wf2_ref, bf2_ref,
                      wf3_ref, bf3_ref, o_ref, *, kp, tb):
    """Fused conv2(+bias+ReLU+pool) -> fc1 -> fc2 -> fc3 -> softmax.

    x_ref: (25, tb, 4*kp) position-major pool-tap patches for one batch tile.
    fc1 is computed as 25 accumulating (tb,128)x(128,128) dots (one per conv2
    output position), so the (25*tb, 128) conv2 activation never leaves VMEM.
    """
    x2 = x_ref[...].reshape(25 * tb, 4 * kp)
    w2 = w2_ref[...]
    acc = jnp.dot(x2[:, 0:kp], w2, preferred_element_type=jnp.float32)
    for i in range(1, 4):
        acc = jnp.maximum(
            acc,
            jnp.dot(x2[:, i * kp:(i + 1) * kp], w2,
                    preferred_element_type=jnp.float32))
    y = jnp.maximum(acc + b2_ref[...], 0.0).astype(jnp.bfloat16)   # (25*tb, 128)

    # fc1: accumulate over the 25 conv2 output positions (static slices).
    h = jnp.zeros((tb, LANE), jnp.float32)
    for p in range(25):
        h = h + jnp.dot(y[p * tb:(p + 1) * tb, :], w1_ref[p],
                        preferred_element_type=jnp.float32)
    h = jnp.maximum(h + b1_ref[...], 0.0).astype(jnp.bfloat16)

    h = jnp.dot(h, wf2_ref[...], preferred_element_type=jnp.float32) + bf2_ref[...]
    h = jnp.maximum(h, 0.0).astype(jnp.bfloat16)
    logits = jnp.dot(h, wf3_ref[...],
                     preferred_element_type=jnp.float32) + bf3_ref[...]

    # Mask padded classes so they do not corrupt the softmax denominator.
    col = jax.lax.broadcasted_iota(jnp.int32, logits.shape, 1)
    logits = jnp.where(col < NUM_CLASSES, logits, -1e30)
    m = jnp.max(logits, axis=1, keepdims=True)
    e = jnp.exp(logits - m)
    o_ref[...] = e * pl.reciprocal(jnp.sum(e, axis=1, keepdims=True))


# ---------------------------------------------------------------------------
# Pallas wrappers (cdiv-tiled M, weights resident, parallel grid axis)
# ---------------------------------------------------------------------------

def conv_relu_pool(patches, w, b, *, k_pad, tile_target=1024):
    """patches: (M, 4*k_pad) bf16, w: (k_pad, 128) bf16, b: (1, 128) f32."""
    M, KC = patches.shape
    tm, g = _tile_and_grid(M, tile_target)
    mp = tm * g
    if mp != M:
        patches = jnp.pad(patches, ((0, mp - M), (0, 0)))
    out = pl.pallas_call(
        functools.partial(_conv_relu_pool_kernel, kp=k_pad),
        out_shape=jax.ShapeDtypeStruct((mp, LANE), jnp.bfloat16),
        grid=(g,),
        in_specs=[pl.BlockSpec((tm, KC), lambda i: (i, 0)),
                  _full_spec((k_pad, LANE)),
                  _full_spec((1, LANE))],
        out_specs=pl.BlockSpec((tm, LANE), lambda i: (i, 0)),
        compiler_params=pltpu.CompilerParams(
            dimension_semantics=("parallel",),
            vmem_limit_bytes=VMEM_LIMIT),
    )(patches, w, b)
    return out[:M] if mp != M else out


def conv2_mlp_head(patches, prep, *, tile_b=128):
    """patches: (25, B, 4*K2P) bf16 -> (B, 128) f32 probabilities (cols>=10 are 0)."""
    _, B, KC = patches.shape
    tb, g = _tile_and_grid(B, tile_b)
    bp = tb * g
    if bp != B:
        patches = jnp.pad(patches, ((0, 0), (0, bp - B), (0, 0)))
    out = pl.pallas_call(
        functools.partial(_conv2_mlp_kernel, kp=K2P, tb=tb),
        out_shape=jax.ShapeDtypeStruct((bp, LANE), jnp.float32),
        grid=(g,),
        in_specs=[pl.BlockSpec((25, tb, KC), lambda i: (0, i, 0)),
                  _full_spec((K2P, LANE)),        # conv2 weights
                  _full_spec((1, LANE)),          # conv2 bias
                  _full_spec((25, LANE, LANE)),   # fc1 weights (per position)
                  _full_spec((1, LANE)),          # fc1 bias
                  _full_spec((LANE, LANE)),       # fc2 weights
                  _full_spec((1, LANE)),          # fc2 bias
                  _full_spec((LANE, LANE)),       # fc3 weights
                  _full_spec((1, LANE))],         # fc3 bias
        out_specs=pl.BlockSpec((tb, LANE), lambda i: (i, 0)),
        compiler_params=pltpu.CompilerParams(
            dimension_semantics=("parallel",),
            vmem_limit_bytes=VMEM_LIMIT),
    )(patches, prep["conv2_w"], prep["conv2_b"], prep["fc1_w"], prep["fc1_b"],
      prep["fc2_w"], prep["fc2_b"], prep["fc3_w"], prep["fc3_b"])
    return out[:B] if bp != B else out


# ---------------------------------------------------------------------------
# Patch extraction glue (XLA): stride-2 pool-tap im2col, concatenated + one pad
# ---------------------------------------------------------------------------

def _pooled_conv_patch_cat(x, k, k_pad):
    """x: (B,H,W,C) NHWC -> (B, OHp*OWp, 4*k_pad).

    Per pooled output position, the four pool-tap im2col rows are concatenated
    along K (single pad for all taps -> one DMA stream into the kernel).
    """
    B, H, W, C = x.shape
    OH, OW = H - k + 1, W - k + 1
    OHp, OWp = OH // 2, OW // 2
    K = k * k * C
    taps = []
    for p in range(2):
        for q in range(2):
            slabs = [x[:, p + di:p + di + 2 * OHp:2,
                       q + dj:q + dj + 2 * OWp:2, :]
                     for di in range(k) for dj in range(k)]
            taps.append(jnp.concatenate(slabs, axis=-1))        # (B,OHp,OWp,K)
    t = jnp.stack(taps, axis=3)                                 # (B,OHp,OWp,4,K)
    t = jnp.pad(t, ((0, 0),) * 4 + ((0, k_pad - K),))           # pad K once
    return t.reshape(B, OHp * OWp, 4 * k_pad)


# ---------------------------------------------------------------------------
# Parameters (PyTorch layout) + one-time kernel-ready preparation
# ---------------------------------------------------------------------------

def init_params(key):
    def uni(k, shape, fan_in):
        bound = 1.0 / jnp.sqrt(jnp.float32(fan_in))
        return jax.random.uniform(k, shape, jnp.float32, -bound, bound)

    keys = jax.random.split(key, 10)
    return {
        "conv1_w": uni(keys[0], (6, 3, 5, 5), 3 * 25),
        "conv1_b": uni(keys[1], (6,), 3 * 25),
        "conv2_w": uni(keys[2], (16, 6, 5, 5), 6 * 25),
        "conv2_b": uni(keys[3], (16,), 6 * 25),
        "fc1_w":   uni(keys[4], (120, 400), 400),
        "fc1_b":   uni(keys[5], (120,), 400),
        "fc2_w":   uni(keys[6], (84, 120), 120),
        "fc2_b":   uni(keys[7], (84,), 120),
        "fc3_w":   uni(keys[8], (10, 84), 84),
        "fc3_b":   uni(keys[9], (10,), 84),
    }


def prepare_params(params):
    """Pad / transpose / cast weights ONCE (outside the jitted forward)."""
    def conv_w(w, k_pad):   # (Cout,Cin,k,k) -> (k_pad, 128) bf16, rows (di,dj,ci)
        cout, cin, k, _ = w.shape
        K = k * k * cin
        wm = w.transpose(2, 3, 1, 0).reshape(K, cout)
        wm = jnp.pad(wm, ((0, k_pad - K), (0, LANE - cout)))
        return wm.astype(jnp.bfloat16)

    def pad_bias(b):
        return jnp.pad(b, (0, LANE - b.shape[0])).reshape(1, LANE).astype(jnp.float32)

    # fc1 is consumed inside the fused conv2 kernel as 25 per-position
    # (128,128) blocks: W1[p=h*5+w, c, o] = fc1_w[o, c*25 + h*5 + w].
    w_fc1 = params["fc1_w"].reshape(120, 16, 5, 5).transpose(2, 3, 1, 0)  # (5,5,16,120)
    w_fc1 = w_fc1.reshape(25, 16, 120)
    w_fc1 = jnp.pad(w_fc1, ((0, 0), (0, LANE - 16), (0, LANE - 120))
                    ).astype(jnp.bfloat16)                                # (25,128,128)

    w_fc2 = jnp.pad(params["fc2_w"].T, ((0, LANE - 120), (0, LANE - 84))
                    ).astype(jnp.bfloat16)                                # (128,128)
    w_fc3 = jnp.pad(params["fc3_w"].T, ((0, LANE - 84), (0, LANE - 10))
                    ).astype(jnp.bfloat16)                                # (128,128)

    return {
        "conv1_w": conv_w(params["conv1_w"], K1P), "conv1_b": pad_bias(params["conv1_b"]),
        "conv2_w": conv_w(params["conv2_w"], K2P), "conv2_b": pad_bias(params["conv2_b"]),
        "fc1_w": w_fc1, "fc1_b": pad_bias(params["fc1_b"]),
        "fc2_w": w_fc2, "fc2_b": pad_bias(params["fc2_b"]),
        "fc3_w": w_fc3, "fc3_b": pad_bias(params["fc3_b"]),
    }


# ---------------------------------------------------------------------------
# Forward pass
# ---------------------------------------------------------------------------

def lenet10_forward(prep, x_nchw):
    B = x_nchw.shape[0]
    x = jnp.transpose(x_nchw, (0, 2, 3, 1)).astype(jnp.bfloat16)   # NHWC (B,32,32,3)

    # conv1 + ReLU + 2x2 max-pool  ->  (B,14,14,6)  (channels padded to 128)
    p1 = _pooled_conv_patch_cat(x, 5, K1P).reshape(B * 14 * 14, 4 * K1P)
    y1 = conv_relu_pool(p1, prep["conv1_w"], prep["conv1_b"], k_pad=K1P)
    y1 = y1.reshape(B, 14, 14, LANE)[..., :6]

    # conv2 + ReLU + pool + fc1 -> fc2 -> fc3 -> softmax, all fused in one
    # kernel; patches are position-major so fc1 accumulates over positions.
    p2 = jnp.transpose(_pooled_conv_patch_cat(y1, 5, K2P), (1, 0, 2))  # (25,B,1024)
    probs = conv2_mlp_head(p2, prep)                                   # (B,128) f32
    return probs[:, :NUM_CLASSES]


if __name__ == "__main__":
    key = jax.random.PRNGKey(0)
    pkey, xkey = jax.random.split(key)
    params = init_params(pkey)
    prep = prepare_params(params)   # one-time weight prep (outside the jit)

    # The conv/pool stack requires a 32x32 input to reach the 16*5*5 flatten.
    x = jax.random.normal(xkey, (2, 3, 32, 32), jnp.float32)

    out = jax.jit(lenet10_forward)(prep, x)
    out = jax.block_until_ready(out)

    assert out.shape == (2, 10)
    assert bool(jnp.all(jnp.isfinite(out)))
    assert bool(jnp.allclose(jnp.sum(out, axis=1), 1.0, atol=1e-5))
    print("KERNEL_OK")
</pallas_src>

<mosaic_0001>
module attributes {stable_mosaic.version = 11 : i64} {
  func.func @_conv_relu_pool_kernel(%arg0: i32, %arg1: memref<208x512xbf16, #tpu.memory_space<vmem>>, %arg2: memref<128x128xbf16, #tpu.memory_space<vmem>>, %arg3: memref<1x128xf32, #tpu.memory_space<vmem>>, %arg4: memref<208x128xbf16, #tpu.memory_space<vmem>>) attributes {dimension_semantics = [#tpu.dimension_semantics<parallel>], iteration_bounds = array<i64: 2>, scalar_prefetch = 0 : i64, scratch_operands = 0 : i64, tpu.core_type = #tpu.core_type<tc>, window_params = [{transform_indices = @transform_0, window_bounds = array<i64: 208, 512>}, {pipeline_mode = #tpu.pipeline_mode<synchronous>, transform_indices = @transform_1, window_bounds = array<i64: 128, 128>}, {pipeline_mode = #tpu.pipeline_mode<synchronous>, transform_indices = @transform_2, window_bounds = array<i64: 1, 128>}, {transform_indices = @transform_3, window_bounds = array<i64: 208, 128>}]} {
    %c0 = arith.constant 0 : index
    %c0_0 = arith.constant 0 : index
    %0 = vector.load %arg2[%c0, %c0_0] : memref<128x128xbf16, #tpu.memory_space<vmem>>, vector<128x128xbf16>
    %c0_1 = arith.constant 0 : index
    %c0_2 = arith.constant 0 : index
    %1 = vector.load %arg1[%c0_1, %c0_2] : memref<208x512xbf16, #tpu.memory_space<vmem>>, vector<208x128xbf16>
    %cst = arith.constant dense<0.000000e+00> : vector<208x128xf32>
    %2 = tpu.matmul %1, %0, %cst {dimension_numbers = #tpu.dot_dimension_numbers<[1], [0], [0], [1], [0, 0, 1, 1], [], []>} : vector<208x128xbf16>, vector<128x128xbf16>, vector<208x128xf32> -> vector<208x128xf32>
    %c0_3 = arith.constant 0 : index
    %c128 = arith.constant 128 : index
    %3 = vector.load %arg1[%c0_3, %c128] : memref<208x512xbf16, #tpu.memory_space<vmem>>, vector<208x128xbf16>
    %cst_4 = arith.constant dense<0.000000e+00> : vector<208x128xf32>
    %4 = tpu.matmul %3, %0, %cst_4 {dimension_numbers = #tpu.dot_dimension_numbers<[1], [0], [0], [1], [0, 0, 1, 1], [], []>} : vector<208x128xbf16>, vector<128x128xbf16>, vector<208x128xf32> -> vector<208x128xf32>
    %5 = arith.maximumf %2, %4 : vector<208x128xf32>
    %c0_5 = arith.constant 0 : index
    %c256 = arith.constant 256 : index
    %6 = vector.load %arg1[%c0_5, %c256] : memref<208x512xbf16, #tpu.memory_space<vmem>>, vector<208x128xbf16>
    %cst_6 = arith.constant dense<0.000000e+00> : vector<208x128xf32>
    %7 = tpu.matmul %6, %0, %cst_6 {dimension_numbers = #tpu.dot_dimension_numbers<[1], [0], [0], [1], [0, 0, 1, 1], [], []>} : vector<208x128xbf16>, vector<128x128xbf16>, vector<208x128xf32> -> vector<208x128xf32>
    %8 = arith.maximumf %5, %7 : vector<208x128xf32>
    %c0_7 = arith.constant 0 : index
    %c384 = arith.constant 384 : index
    %9 = vector.load %arg1[%c0_7, %c384] : memref<208x512xbf16, #tpu.memory_space<vmem>>, vector<208x128xbf16>
    %cst_8 = arith.constant dense<0.000000e+00> : vector<208x128xf32>
    %10 = tpu.matmul %9, %0, %cst_8 {dimension_numbers = #tpu.dot_dimension_numbers<[1], [0], [0], [1], [0, 0, 1, 1], [], []>} : vector<208x128xbf16>, vector<128x128xbf16>, vector<208x128xf32> -> vector<208x128xf32>
    %11 = arith.maximumf %8, %10 : vector<208x128xf32>
    %c0_9 = arith.constant 0 : index
    %c0_10 = arith.constant 0 : index
    %12 = vector.load %arg3[%c0_9, %c0_10] : memref<1x128xf32, #tpu.memory_space<vmem>>, vector<1x128xf32>
    %13 = vector.broadcast %12 : vector<1x128xf32> to vector<208x128xf32>
    %14 = arith.addf %11, %13 : vector<208x128xf32>
    %cst_11 = arith.constant 0.000000e+00 : f32
    %15 = vector.broadcast %cst_11 : f32 to vector<208x128xf32>
    %16 = arith.maximumf %14, %15 : vector<208x128xf32>
    %17 = arith.truncf %16 : vector<208x128xf32> to vector<208x128xbf16>
    %c0_12 = arith.constant 0 : index
    %c0_13 = arith.constant 0 : index
    %18 = vector.load %arg4[%c0_12, %c0_13] : memref<208x128xbf16, #tpu.memory_space<vmem>>, vector<208x128xbf16>
    tpu.vector_store %arg4[%c0_12, %c0_13], %17 {strides = array<i32>} : memref<208x128xbf16, #tpu.memory_space<vmem>>, vector<208x128xbf16>,
    return
  }
  func.func @transform_0(%arg0: i32) -> (i32, i32) {
    %c0_i32 = arith.constant 0 : i32
    %c0_i32_0 = arith.constant 0 : i32
    return %arg0, %c0_i32 : i32, i32
  }
  func.func @transform_1(%arg0: i32) -> (i32, i32) {
    %c0_i32 = arith.constant 0 : i32
    %c0_i32_0 = arith.constant 0 : i32
    %c0_i32_1 = arith.constant 0 : i32
    return %c0_i32, %c0_i32_0 : i32, i32
  }
  func.func @transform_2(%arg0: i32) -> (i32, i32) {
    %c0_i32 = arith.constant 0 : i32
    %c0_i32_0 = arith.constant 0 : i32
    %c0_i32_1 = arith.constant 0 : i32
    return %c0_i32, %c0_i32_0 : i32, i32
  }
  func.func @transform_3(%arg0: i32) -> (i32, i32) {
    %c0_i32 = arith.constant 0 : i32
    %c0_i32_0 = arith.constant 0 : i32
    return %arg0, %c0_i32 : i32, i32
  }
}

module attributes {stable_mosaic.version = 11 : i64} {
  func.func @_conv2_mlp_kernel(%arg0: i32, %arg1: memref<25x16x1024xbf16, #tpu.memory_space<vmem>>, %arg2: memref<256x128xbf16, #tpu.memory_space<vmem>>, %arg3: memref<1x128xf32, #tpu.memory_space<vmem>>, %arg4: memref<25x128x128xbf16, #tpu.memory_space<vmem>>, %arg5: memref<1x128xf32, #tpu.memory_space<vmem>>, %arg6: memref<128x128xbf16, #tpu.memory_space<vmem>>, %arg7: memref<1x128xf32, #tpu.memory_space<vmem>>, %arg8: memref<128x128xbf16, #tpu.memory_space<vmem>>, %arg9: memref<1x128xf32, #tpu.memory_space<vmem>>, %arg10: memref<16x128xf32, #tpu.memory_space<vmem>>) attributes {dimension_semantics = [#tpu.dimension_semantics<parallel>], iteration_bounds = array<i64: 1>, scalar_prefetch = 0 : i64, scratch_operands = 0 : i64, tpu.core_type = #tpu.core_type<tc>, window_params = [{transform_indices = @transform_0, window_bounds = array<i64: 25, 16, 1024>}, {pipeline_mode = #tpu.pipeline_mode<synchronous>, transform_indices = @transform_1, window_bounds = array<i64: 256, 128>}, {pipeline_mode = #tpu.pipeline_mode<synchronous>, transform_indices = @transform_2, window_bounds = array<i64: 1, 128>}, {pipeline_mode = #tpu.pipeline_mode<synchronous>, transform_indices = @transform_3, window_bounds = array<i64: 25, 128, 128>}, {pipeline_mode = #tpu.pipeline_mode<synchronous>, transform_indices = @transform_4, window_bounds = array<i64: 1, 128>}, {pipeline_mode = #tpu.pipeline_mode<synchronous>, transform_indices = @transform_5, window_bounds = array<i64: 128, 128>}, {pipeline_mode = #tpu.pipeline_mode<synchronous>, transform_indices = @transform_6, window_bounds = array<i64: 1, 128>}, {pipeline_mode = #tpu.pipeline_mode<synchronous>, transform_indices = @transform_7, window_bounds = array<i64: 128, 128>}, {pipeline_mode = #tpu.pipeline_mode<synchronous>, transform_indices = @transform_8, window_bounds = array<i64: 1, 128>}, {transform_indices = @transform_9, window_bounds = array<i64: 16, 128>}]} {
    %c0 = arith.constant 0 : index
    %c0_0 = arith.constant 0 : index
    %c0_1 = arith.constant 0 : index
    %0 = vector.load %arg1[%c0, %c0_0, %c0_1] : memref<25x16x1024xbf16, #tpu.memory_space<vmem>>, vector<25x16x1024xbf16>
    %1 = vector.shape_cast %0 : vector<25x16x1024xbf16> to vector<400x1024xbf16>
    %c0_2 = arith.constant 0 : index
    %c0_3 = arith.constant 0 : index
    %2 = vector.load %arg2[%c0_2, %c0_3] : memref<256x128xbf16, #tpu.memory_space<vmem>>, vector<256x128xbf16>
    %3 = vector.extract_strided_slice %1 {offsets = [0, 0], sizes = [400, 256], strides = [1, 1]} : vector<400x1024xbf16> to vector<400x256xbf16>
    %cst = arith.constant dense<0.000000e+00> : vector<400x128xf32>
    %4 = tpu.matmul %3, %2, %cst {dimension_numbers = #tpu.dot_dimension_numbers<[1], [0], [0], [1], [0, 0, 1, 1], [], []>} : vector<400x256xbf16>, vector<256x128xbf16>, vector<400x128xf32> -> vector<400x128xf32>
    %5 = vector.extract_strided_slice %1 {offsets = [0, 256], sizes = [400, 256], strides = [1, 1]} : vector<400x1024xbf16> to vector<400x256xbf16>
    %cst_4 = arith.constant dense<0.000000e+00> : vector<400x128xf32>
    %6 = tpu.matmul %5, %2, %cst_4 {dimension_numbers = #tpu.dot_dimension_numbers<[1], [0], [0], [1], [0, 0, 1, 1], [], []>} : vector<400x256xbf16>, vector<256x128xbf16>, vector<400x128xf32> -> vector<400x128xf32>
    %7 = arith.maximumf %4, %6 : vector<400x128xf32>
    %8 = vector.extract_strided_slice %1 {offsets = [0, 512], sizes = [400, 256], strides = [1, 1]} : vector<400x1024xbf16> to vector<400x256xbf16>
    %cst_5 = arith.constant dense<0.000000e+00> : vector<400x128xf32>
    %9 = tpu.matmul %8, %2, %cst_5 {dimension_numbers = #tpu.dot_dimension_numbers<[1], [0], [0], [1], [0, 0, 1, 1], [], []>} : vector<400x256xbf16>, vector<256x128xbf16>, vector<400x128xf32> -> vector<400x128xf32>
    %10 = arith.maximumf %7, %9 : vector<400x128xf32>
    %11 = vector.extract_strided_slice %1 {offsets = [0, 768], sizes = [400, 256], strides = [1, 1]} : vector<400x1024xbf16> to vector<400x256xbf16>
    %cst_6 = arith.constant dense<0.000000e+00> : vector<400x128xf32>
    %12 = tpu.matmul %11, %2, %cst_6 {dimension_numbers = #tpu.dot_dimension_numbers<[1], [0], [0], [1], [0, 0, 1, 1], [], []>} : vector<400x256xbf16>, vector<256x128xbf16>, vector<400x128xf32> -> vector<400x128xf32>
    %13 = arith.maximumf %10, %12 : vector<400x128xf32>
    %c0_7 = arith.constant 0 : index
    %c0_8 = arith.constant 0 : index
    %14 = vector.load %arg3[%c0_7, %c0_8] : memref<1x128xf32, #tpu.memory_space<vmem>>, vector<1x128xf32>
    %15 = vector.broadcast %14 : vector<1x128xf32> to vector<400x128xf32>
    %16 = arith.addf %13, %15 : vector<400x128xf32>
    %cst_9 = arith.constant 0.000000e+00 : f32
    %17 = vector.broadcast %cst_9 : f32 to vector<400x128xf32>
    %18 = arith.maximumf %16, %17 : vector<400x128xf32>
    %19 = arith.truncf %18 : vector<400x128xf32> to vector<400x128xbf16>
    %cst_10 = arith.constant 0.000000e+00 : f32
    %20 = vector.broadcast %cst_10 : f32 to vector<16x128xf32>
    %21 = vector.extract_strided_slice %19 {offsets = [0, 0], sizes = [16, 128], strides = [1, 1]} : vector<400x128xbf16> to vector<16x128xbf16>
    %c0_11 = arith.constant 0 : index
    %c0_12 = arith.constant 0 : index
    %c0_13 = arith.constant 0 : index
    %22 = vector.load %arg4[%c0_11, %c0_12, %c0_13] : memref<25x128x128xbf16, #tpu.memory_space<vmem>>, vector<1x128x128xbf16>
    %23 = vector.shape_cast %22 : vector<1x128x128xbf16> to vector<128x128xbf16>
    %cst_14 = arith.constant dense<0.000000e+00> : vector<16x128xf32>
    %24 = tpu.matmul %21, %23, %cst_14 {dimension_numbers = #tpu.dot_dimension_numbers<[1], [0], [0], [1], [0, 0, 1, 1], [], []>} : vector<16x128xbf16>, vector<128x128xbf16>, vector<16x128xf32> -> vector<16x128xf32>
    %25 = arith.addf %20, %24 : vector<16x128xf32>
    %26 = vector.extract_strided_slice %19 {offsets = [16, 0], sizes = [16, 128], strides = [1, 1]} : vector<400x128xbf16> to vector<16x128xbf16>
    %c1 = arith.constant 1 : index
    %c0_15 = arith.constant 0 : index
    %c0_16 = arith.constant 0 : index
    %27 = vector.load %arg4[%c1, %c0_15, %c0_16] : memref<25x128x128xbf16, #tpu.memory_space<vmem>>, vector<1x128x128xbf16>
    %28 = vector.shape_cast %27 : vector<1x128x128xbf16> to vector<128x128xbf16>
    %cst_17 = arith.constant dense<0.000000e+00> : vector<16x128xf32>
    %29 = tpu.matmul %26, %28, %cst_17 {dimension_numbers = #tpu.dot_dimension_numbers<[1], [0], [0], [1], [0, 0, 1, 1], [], []>} : vector<16x128xbf16>, vector<128x128xbf16>, vector<16x128xf32> -> vector<16x128xf32>
    %30 = arith.addf %25, %29 : vector<16x128xf32>
    %31 = vector.extract_strided_slice %19 {offsets = [32, 0], sizes = [16, 128], strides = [1, 1]} : vector<400x128xbf16> to vector<16x128xbf16>
    %c2 = arith.constant 2 : index
    %c0_18 = arith.constant 0 : index
    %c0_19 = arith.constant 0 : index
    %32 = vector.load %arg4[%c2, %c0_18, %c0_19] : memref<25x128x128xbf16, #tpu.memory_space<vmem>>, vector<1x128x128xbf16>
    %33 = vector.shape_cast %32 : vector<1x128x128xbf16> to vector<128x128xbf16>
    %cst_20 = arith.constant dense<0.000000e+00> : vector<16x128xf32>
    %34 = tpu.matmul %31, %33, %cst_20 {dimension_numbers = #tpu.dot_dimension_numbers<[1], [0], [0], [1], [0, 0, 1, 1], [], []>} : vector<16x128xbf16>, vector<128x128xbf16>, vector<16x128xf32> -> vector<16x128xf32>
    %35 = arith.addf %30, %34 : vector<16x128xf32>
    %36 = vector.extract_strided_slice %19 {offsets = [48, 0], sizes = [16, 128], strides = [1, 1]} : vector<400x128xbf16> to vector<16x128xbf16>
    %c3 = arith.constant 3 : index
    %c0_21 = arith.constant 0 : index
    %c0_22 = arith.constant 0 : index
    %37 = vector.load %arg4[%c3, %c0_21, %c0_22] : memref<25x128x128xbf16, #tpu.memory_space<vmem>>, vector<1x128x128xbf16>
    %38 = vector.shape_cast %37 : vector<1x128x128xbf16> to vector<128x128xbf16>
    %cst_23 = arith.constant dense<0.000000e+00> : vector<16x128xf32>
    %39 = tpu.matmul %36, %38, %cst_23 {dimension_numbers = #tpu.dot_dimension_numbers<[1], [0], [0], [1], [0, 0, 1, 1], [], []>} : vector<16x128xbf16>, vector<128x128xbf16>, vector<16x128xf32> -> vector<16x128xf32>
    %40 = arith.addf %35, %39 : vector<16x128xf32>
    %41 = vector.extract_strided_slice %19 {offsets = [64, 0], sizes = [16, 128], strides = [1, 1]} : vector<400x128xbf16> to vector<16x128xbf16>
    %c4 = arith.constant 4 : index
    %c0_24 = arith.constant 0 : index
    %c0_25 = arith.constant 0 : index
    %42 = vector.load %arg4[%c4, %c0_24, %c0_25] : memref<25x128x128xbf16, #tpu.memory_space<vmem>>, vector<1x128x128xbf16>
    %43 = vector.shape_cast %42 : vector<1x128x128xbf16> to vector<128x128xbf16>
    %cst_26 = arith.constant dense<0.000000e+00> : vector<16x128xf32>
    %44 = tpu.matmul %41, %43, %cst_26 {dimension_numbers = #tpu.dot_dimension_numbers<[1], [0], [0], [1], [0, 0, 1, 1], [], []>} : vector<16x128xbf16>, vector<128x128xbf16>, vector<16x128xf32> -> vector<16x128xf32>
    %45 = arith.addf %40, %44 : vector<16x128xf32>
    %46 = vector.extract_strided_slice %19 {offsets = [80, 0], sizes = [16, 128], strides = [1, 1]} : vector<400x128xbf16> to vector<16x128xbf16>
    %c5 = arith.constant 5 : index
    %c0_27 = arith.constant 0 : index
    %c0_28 = arith.constant 0 : index
    %47 = vector.load %arg4[%c5, %c0_27, %c0_28] : memref<25x128x128xbf16, #tpu.memory_space<vmem>>, vector<1x128x128xbf16>
    %48 = vector.shape_cast %47 : vector<1x128x128xbf16> to vector<128x128xbf16>
    %cst_29 = arith.constant dense<0.000000e+00> : vector<16x128xf32>
    %49 = tpu.matmul %46, %48, %cst_29 {dimension_numbers = #tpu.dot_dimension_numbers<[1], [0], [0], [1], [0, 0, 1, 1], [], []>} : vector<16x128xbf16>, vector<128x128xbf16>, vector<16x128xf32> -> vector<16x128xf32>
    %50 = arith.addf %45, %49 : vector<16x128xf32>
    %51 = vector.extract_strided_slice %19 {offsets = [96, 0], sizes = [16, 128], strides = [1, 1]} : vector<400x128xbf16> to vector<16x128xbf16>
    %c6 = arith.constant 6 : index
    %c0_30 = arith.constant 0 : index
    %c0_31 = arith.constant 0 : index
    %52 = vector.load %arg4[%c6, %c0_30, %c0_31] : memref<25x128x128xbf16, #tpu.memory_space<vmem>>, vector<1x128x128xbf16>
    %53 = vector.shape_cast %52 : vector<1x128x128xbf16> to vector<128x128xbf16>
    %cst_32 = arith.constant dense<0.000000e+00> : vector<16x128xf32>
    %54 = tpu.matmul %51, %53, %cst_32 {dimension_numbers = #tpu.dot_dimension_numbers<[1], [0], [0], [1], [0, 0, 1, 1], [], []>} : vector<16x128xbf16>, vector<128x128xbf16>, vector<16x128xf32> -> vector<16x128xf32>
    %55 = arith.addf %50, %54 : vector<16x128xf32>
    %56 = vector.extract_strided_slice %19 {offsets = [112, 0], sizes = [16, 128], strides = [1, 1]} : vector<400x128xbf16> to vector<16x128xbf16>
    %c7 = arith.constant 7 : index
    %c0_33 = arith.constant 0 : index
    %c0_34 = arith.constant 0 : index
    %57 = vector.load %arg4[%c7, %c0_33, %c0_34] : memref<25x128x128xbf16, #tpu.memory_space<vmem>>, vector<1x128x128xbf16>
    %58 = vector.shape_cast %57 : vector<1x128x128xbf16> to vector<128x128xbf16>
    %cst_35 = arith.constant dense<0.000000e+00> : vector<16x128xf32>
    %59 = tpu.matmul %56, %58, %cst_35 {dimension_numbers = #tpu.dot_dimension_numbers<[1], [0], [0], [1], [0, 0, 1, 1], [], []>} : vector<16x128xbf16>, vector<128x128xbf16>, vector<16x128xf32> -> vector<16x128xf32>
    %60 = arith.addf %55, %59 : vector<16x128xf32>
    %61 = vector.extract_strided_slice %19 {offsets = [128, 0], sizes = [16, 128], strides = [1, 1]} : vector<400x128xbf16> to vector<16x128xbf16>
    %c8 = arith.constant 8 : index
    %c0_36 = arith.constant 0 : index
    %c0_37 = arith.constant 0 : index
    %62 = vector.load %arg4[%c8, %c0_36, %c0_37] : memref<25x128x128xbf16, #tpu.memory_space<vmem>>, vector<1x128x128xbf16>
    %63 = vector.shape_cast %62 : vector<1x128x128xbf16> to vector<128x128xbf16>
    %cst_38 = arith.constant dense<0.000000e+00> : vector<16x128xf32>
    %64 = tpu.matmul %61, %63, %cst_38 {dimension_numbers = #tpu.dot_dimension_numbers<[1], [0], [0], [1], [0, 0, 1, 1], [], []>} : vector<16x128xbf16>, vector<128x128xbf16>, vector<16x128xf32> -> vector<16x128xf32>
    %65 = arith.addf %60, %64 : vector<16x128xf32>
    %66 = vector.extract_strided_slice %19 {offsets = [144, 0], sizes = [16, 128], strides = [1, 1]} : vector<400x128xbf16> to vector<16x128xbf16>
    %c9 = arith.constant 9 : index
    %c0_39 = arith.constant 0 : index
    %c0_40 = arith.constant 0 : index
    %67 = vector.load %arg4[%c9, %c0_39, %c0_40] : memref<25x128x128xbf16, #tpu.memory_space<vmem>>, vector<1x128x128xbf16>
    %68 = vector.shape_cast %67 : vector<1x128x128xbf16> to vector<128x128xbf16>
    %cst_41 = arith.constant dense<0.000000e+00> : vector<16x128xf32>
    %69 = tpu.matmul %66, %68, %cst_41 {dimension_numbers = #tpu.dot_dimension_numbers<[1], [0], [0], [1], [0, 0, 1, 1], [], []>} : vector<16x128xbf16>, vector<128x128xbf16>, vector<16x128xf32> -> vector<16x128xf32>
    %70 = arith.addf %65, %69 : vector<16x128xf32>
    %71 = vector.extract_strided_slice %19 {offsets = [160, 0], sizes = [16, 128], strides = [1, 1]} : vector<400x128xbf16> to vector<16x128xbf16>
    %c10 = arith.constant 10 : index
    %c0_42 = arith.constant 0 : index
    %c0_43 = arith.constant 0 : index
    %72 = vector.load %arg4[%c10, %c0_42, %c0_43] : memref<25x128x128xbf16, #tpu.memory_space<vmem>>, vector<1x128x128xbf16>
    %73 = vector.shape_cast %72 : vector<1x128x128xbf16> to vector<128x128xbf16>
    %cst_44 = arith.constant dense<0.000000e+00> : vector<16x128xf32>
    %74 = tpu.matmul %71, %73, %cst_44 {dimension_numbers = #tpu.dot_dimension_numbers<[1], [0], [0], [1], [0, 0, 1, 1], [], []>} : vector<16x128xbf16>, vector<128x128xbf16>, vector<16x128xf32> -> vector<16x128xf32>
    %75 = arith.addf %70, %74 : vector<16x128xf32>
    %76 = vector.extract_strided_slice %19 {offsets = [176, 0], sizes = [16, 128], strides = [1, 1]} : vector<400x128xbf16> to vector<16x128xbf16>
    %c11 = arith.constant 11 : index
    %c0_45 = arith.constant 0 : index
    %c0_46 = arith.constant 0 : index
    %77 = vector.load %arg4[%c11, %c0_45, %c0_46] : memref<25x128x128xbf16, #tpu.memory_space<vmem>>, vector<1x128x128xbf16>
    %78 = vector.shape_cast %77 : vector<1x128x128xbf16> to vector<128x128xbf16>
    %cst_47 = arith.constant dense<0.000000e+00> : vector<16x128xf32>
    %79 = tpu.matmul %76, %78, %cst_47 {dimension_numbers = #tpu.dot_dimension_numbers<[1], [0], [0], [1], [0, 0, 1, 1], [], []>} : vector<16x128xbf16>, vector<128x128xbf16>, vector<16x128xf32> -> vector<16x128xf32>
    %80 = arith.addf %75, %79 : vector<16x128xf32>
    %81 = vector.extract_strided_slice %19 {offsets = [192, 0], sizes = [16, 128], strides = [1, 1]} : vector<400x128xbf16> to vector<16x128xbf16>
    %c12 = arith.constant 12 : index
    %c0_48 = arith.constant 0 : index
    %c0_49 = arith.constant 0 : index
    %82 = vector.load %arg4[%c12, %c0_48, %c0_49] : memref<25x128x128xbf16, #tpu.memory_space<vmem>>, vector<1x128x128xbf16>
    %83 = vector.shape_cast %82 : vector<1x128x128xbf16> to vector<128x128xbf16>
    %cst_50 = arith.constant dense<0.000000e+00> : vector<16x128xf32>
    %84 = tpu.matmul %81, %83, %cst_50 {dimension_numbers = #tpu.dot_dimension_numbers<[1], [0], [0], [1], [0, 0, 1, 1], [], []>} : vector<16x128xbf16>, vector<128x128xbf16>, vector<16x128xf32> -> vector<16x128xf32>
    %85 = arith.addf %80, %84 : vector<16x128xf32>
    %86 = vector.extract_strided_slice %19 {offsets = [208, 0], sizes = [16, 128], strides = [1, 1]} : vector<400x128xbf16> to vector<16x128xbf16>
    %c13 = arith.constant 13 : index
    %c0_51 = arith.constant 0 : index
    %c0_52 = arith.constant 0 : index
    %87 = vector.load %arg4[%c13, %c0_51, %c0_52] : memref<25x128x128xbf16, #tpu.memory_space<vmem>>, vector<1x128x128xbf16>
    %88 = vector.shape_cast %87 : vector<1x128x128xbf16> to vector<128x128xbf16>
    %cst_53 = arith.constant dense<0.000000e+00> : vector<16x128xf32>
    %89 = tpu.matmul %86, %88, %cst_53 {dimension_numbers = #tpu.dot_dimension_numbers<[1], [0], [0], [1], [0, 0, 1, 1], [], []>} : vector<16x128xbf16>, vector<128x128xbf16>, vector<16x128xf32> -> vector<16x128xf32>
    %90 = arith.addf %85, %89 : vector<16x128xf32>
    %91 = vector.extract_strided_slice %19 {offsets = [224, 0], sizes = [16, 128], strides = [1, 1]} : vector<400x128xbf16> to vector<16x128xbf16>
    %c14 = arith.constant 14 : index
    %c0_54 = arith.constant 0 : index
    %c0_55 = arith.constant 0 : index
    %92 = vector.load %arg4[%c14, %c0_54, %c0_55] : memref<25x128x128xbf16, #tpu.memory_space<vmem>>, vector<1x128x128xbf16>
    %93 = vector.shape_cast %92 : vector<1x128x128xbf16> to vector<128x128xbf16>
    %cst_56 = arith.constant dense<0.000000e+00> : vector<16x128xf32>
    %94 = tpu.matmul %91, %93, %cst_56 {dimension_numbers = #tpu.dot_dimension_numbers<[1], [0], [0], [1], [0, 0, 1, 1], [], []>} : vector<16x128xbf16>, vector<128x128xbf16>, vector<16x128xf32> -> vector<16x128xf32>
    %95 = arith.addf %90, %94 : vector<16x128xf32>
    %96 = vector.extract_strided_slice %19 {offsets = [240, 0], sizes = [16, 128], strides = [1, 1]} : vector<400x128xbf16> to vector<16x128xbf16>
    %c15 = arith.constant 15 : index
    %c0_57 = arith.constant 0 : index
    %c0_58 = arith.constant 0 : index
    %97 = vector.load %arg4[%c15, %c0_57, %c0_58] : memref<25x128x128xbf16, #tpu.memory_space<vmem>>, vector<1x128x128xbf16>
    %98 = vector.shape_cast %97 : vector<1x128x128xbf16> to vector<128x128xbf16>
    %cst_59 = arith.constant dense<0.000000e+00> : vector<16x128xf32>
    %99 = tpu.matmul %96, %98, %cst_59 {dimension_numbers = #tpu.dot_dimension_numbers<[1], [0], [0], [1], [0, 0, 1, 1], [], []>} : vector<16x128xbf16>, vector<128x128xbf16>, vector<16x128xf32> -> vector<16x128xf32>
    %100 = arith.addf %95, %99 : vector<16x128xf32>
    %101 = vector.extract_strided_slice %19 {offsets = [256, 0], sizes = [16, 128], strides = [1, 1]} : vector<400x128xbf16> to vector<16x128xbf16>
    %c16 = arith.constant 16 : index
    %c0_60 = arith.constant 0 : index
    %c0_61 = arith.constant 0 : index
    %102 = vector.load %arg4[%c16, %c0_60, %c0_61] : memref<25x128x128xbf16, #tpu.memory_space<vmem>>, vector<1x128x128xbf16>
    %103 = vector.shape_cast %102 : vector<1x128x128xbf16> to vector<128x128xbf16>
    %cst_62 = arith.constant dense<0.000000e+00> : vector<16x128xf32>
    %104 = tpu.matmul %101, %103, %cst_62 {dimension_numbers = #tpu.dot_dimension_numbers<[1], [0], [0], [1], [0, 0, 1, 1], [], []>} : vector<16x128xbf16>, vector<128x128xbf16>, vector<16x128xf32> -> vector<16x128xf32>
    %105 = arith.addf %100, %104 : vector<16x128xf32>
    %106 = vector.extract_strided_slice %19 {offsets = [272, 0], sizes = [16, 128], strides = [1, 1]} : vector<400x128xbf16> to vector<16x128xbf16>
    %c17 = arith.constant 17 : index
    %c0_63 = arith.constant 0 : index
    %c0_64 = arith.constant 0 : index
    %107 = vector.load %arg4[%c17, %c0_63, %c0_64] : memref<25x128x128xbf16, #tpu.memory_space<vmem>>, vector<1x128x128xbf16>
    %108 = vector.shape_cast %107 : vector<1x128x128xbf16> to vector<128x128xbf16>
    %cst_65 = arith.constant dense<0.000000e+00> : vector<16x128xf32>
    %109 = tpu.matmul %106, %108, %cst_65 {dimension_numbers = #tpu.dot_dimension_numbers<[1], [0], [0], [1], [0, 0, 1, 1], [], []>} : vector<16x128xbf16>, vector<128x128xbf16>, vector<16x128xf32> -> vector<16x128xf32>
    %110 = arith.addf %105, %109 : vector<16x128xf32>
    %111 = vector.extract_strided_slice %19 {offsets = [288, 0], sizes = [16, 128], strides = [1, 1]} : vector<400x128xbf16> to vector<16x128xbf16>
    %c18 = arith.constant 18 : index
    %c0_66 = arith.constant 0 : index
    %c0_67 = arith.constant 0 : index
    %112 = vector.load %arg4[%c18, %c0_66, %c0_67] : memref<25x128x128xbf16, #tpu.memory_space<vmem>>, vector<1x128x128xbf16>
    %113 = vector.shape_cast %112 : vector<1x128x128xbf16> to vector<128x128xbf16>
    %cst_68 = arith.constant dense<0.000000e+00> : vector<16x128xf32>
    %114 = tpu.matmul %111, %113, %cst_68 {dimension_numbers = #tpu.dot_dimension_numbers<[1], [0], [0], [1], [0, 0, 1, 1], [], []>} : vector<16x128xbf16>, vector<128x128xbf16>, vector<16x128xf32> -> vector<16x128xf32>
    %115 = arith.addf %110, %114 : vector<16x128xf32>
    %116 = vector.extract_strided_slice %19 {offsets = [304, 0], sizes = [16, 128], strides = [1, 1]} : vector<400x128xbf16> to vector<16x128xbf16>
    %c19 = arith.constant 19 : index
    %c0_69 = arith.constant 0 : index
    %c0_70 = arith.constant 0 : index
    %117 = vector.load %arg4[%c19, %c0_69, %c0_70] : memref<25x128x128xbf16, #tpu.memory_space<vmem>>, vector<1x128x128xbf16>
    %118 = vector.shape_cast %117 : vector<1x128x128xbf16> to vector<128x128xbf16>
    %cst_71 = arith.constant dense<0.000000e+00> : vector<16x128xf32>
    %119 = tpu.matmul %116, %118, %cst_71 {dimension_numbers = #tpu.dot_dimension_numbers<[1], [0], [0], [1], [0, 0, 1, 1], [], []>} : vector<16x128xbf16>, vector<128x128xbf16>, vector<16x128xf32> -> vector<16x128xf32>
    %120 = arith.addf %115, %119 : vector<16x128xf32>
    %121 = vector.extract_strided_slice %19 {offsets = [320, 0], sizes = [16, 128], strides = [1, 1]} : vector<400x128xbf16> to vector<16x128xbf16>
    %c20 = arith.constant 20 : index
    %c0_72 = arith.constant 0 : index
    %c0_73 = arith.constant 0 : index
    %122 = vector.load %arg4[%c20, %c0_72, %c0_73] : memref<25x128x128xbf16, #tpu.memory_space<vmem>>, vector<1x128x128xbf16>
    %123 = vector.shape_cast %122 : vector<1x128x128xbf16> to vector<128x128xbf16>
    %cst_74 = arith.constant dense<0.000000e+00> : vector<16x128xf32>
    %124 = tpu.matmul %121, %123, %cst_74 {dimension_numbers = #tpu.dot_dimension_numbers<[1], [0], [0], [1], [0, 0, 1, 1], [], []>} : vector<16x128xbf16>, vector<128x128xbf16>, vector<16x128xf32> -> vector<16x128xf32>
    %125 = arith.addf %120, %124 : vector<16x128xf32>
    %126 = vector.extract_strided_slice %19 {offsets = [336, 0], sizes = [16, 128], strides = [1, 1]} : vector<400x128xbf16> to vector<16x128xbf16>
    %c21 = arith.constant 21 : index
    %c0_75 = arith.constant 0 : index
    %c0_76 = arith.constant 0 : index
    %127 = vector.load %arg4[%c21, %c0_75, %c0_76] : memref<25x128x128xbf16, #tpu.memory_space<vmem>>, vector<1x128x128xbf16>
    %128 = vector.shape_cast %127 : vector<1x128x128xbf16> to vector<128x128xbf16>
    %cst_77 = arith.constant dense<0.000000e+00> : vector<16x128xf32>
    %129 = tpu.matmul %126, %128, %cst_77 {dimension_numbers = #tpu.dot_dimension_numbers<[1], [0], [0], [1], [0, 0, 1, 1], [], []>} : vector<16x128xbf16>, vector<128x128xbf16>, vector<16x128xf32> -> vector<16x128xf32>
    %130 = arith.addf %125, %129 : vector<16x128xf32>
    %131 = vector.extract_strided_slice %19 {offsets = [352, 0], sizes = [16, 128], strides = [1, 1]} : vector<400x128xbf16> to vector<16x128xbf16>
    %c22 = arith.constant 22 : index
    %c0_78 = arith.constant 0 : index
    %c0_79 = arith.constant 0 : index
    %132 = vector.load %arg4[%c22, %c0_78, %c0_79] : memref<25x128x128xbf16, #tpu.memory_space<vmem>>, vector<1x128x128xbf16>
    %133 = vector.shape_cast %132 : vector<1x128x128xbf16> to vector<128x128xbf16>
    %cst_80 = arith.constant dense<0.000000e+00> : vector<16x128xf32>
    %134 = tpu.matmul %131, %133, %cst_80 {dimension_numbers = #tpu.dot_dimension_numbers<[1], [0], [0], [1], [0, 0, 1, 1], [], []>} : vector<16x128xbf16>, vector<128x128xbf16>, vector<16x128xf32> -> vector<16x128xf32>
    %135 = arith.addf %130, %134 : vector<16x128xf32>
    %136 = vector.extract_strided_slice %19 {offsets = [368, 0], sizes = [16, 128], strides = [1, 1]} : vector<400x128xbf16> to vector<16x128xbf16>
    %c23 = arith.constant 23 : index
    %c0_81 = arith.constant 0 : index
    %c0_82 = arith.constant 0 : index
    %137 = vector.load %arg4[%c23, %c0_81, %c0_82] : memref<25x128x128xbf16, #tpu.memory_space<vmem>>, vector<1x128x128xbf16>
    %138 = vector.shape_cast %137 : vector<1x128x128xbf16> to vector<128x128xbf16>
    %cst_83 = arith.constant dense<0.000000e+00> : vector<16x128xf32>
    %139 = tpu.matmul %136, %138, %cst_83 {dimension_numbers = #tpu.dot_dimension_numbers<[1], [0], [0], [1], [0, 0, 1, 1], [], []>} : vector<16x128xbf16>, vector<128x128xbf16>, vector<16x128xf32> -> vector<16x128xf32>
    %140 = arith.addf %135, %139 : vector<16x128xf32>
    %141 = vector.extract_strided_slice %19 {offsets = [384, 0], sizes = [16, 128], strides = [1, 1]} : vector<400x128xbf16> to vector<16x128xbf16>
    %c24 = arith.constant 24 : index
    %c0_84 = arith.constant 0 : index
    %c0_85 = arith.constant 0 : index
    %142 = vector.load %arg4[%c24, %c0_84, %c0_85] : memref<25x128x128xbf16, #tpu.memory_space<vmem>>, vector<1x128x128xbf16>
    %143 = vector.shape_cast %142 : vector<1x128x128xbf16> to vector<128x128xbf16>
    %cst_86 = arith.constant dense<0.000000e+00> : vector<16x128xf32>
    %144 = tpu.matmul %141, %143, %cst_86 {dimension_numbers = #tpu.dot_dimension_numbers<[1], [0], [0], [1], [0, 0, 1, 1], [], []>} : vector<16x128xbf16>, vector<128x128xbf16>, vector<16x128xf32> -> vector<16x128xf32>
    %145 = arith.addf %140, %144 : vector<16x128xf32>
    %c0_87 = arith.constant 0 : index
    %c0_88 = arith.constant 0 : index
    %146 = vector.load %arg5[%c0_87, %c0_88] : memref<1x128xf32, #tpu.memory_space<vmem>>, vector<1x128xf32>
    %147 = vector.broadcast %146 : vector<1x128xf32> to vector<16x128xf32>
    %148 = arith.addf %145, %147 : vector<16x128xf32>
    %cst_89 = arith.constant 0.000000e+00 : f32
    %149 = vector.broadcast %cst_89 : f32 to vector<16x128xf32>
    %150 = arith.maximumf %148, %149 : vector<16x128xf32>
    %151 = arith.truncf %150 : vector<16x128xf32> to vector<16x128xbf16>
    %c0_90 = arith.constant 0 : index
    %c0_91 = arith.constant 0 : index
    %152 = vector.load %arg6[%c0_90, %c0_91] : memref<128x128xbf16, #tpu.memory_space<vmem>>, vector<128x128xbf16>
    %cst_92 = arith.constant dense<0.000000e+00> : vector<16x128xf32>
    %153 = tpu.matmul %151, %152, %cst_92 {dimension_numbers = #tpu.dot_dimension_numbers<[1], [0], [0], [1], [0, 0, 1, 1], [], []>} : vector<16x128xbf16>, vector<128x128xbf16>, vector<16x128xf32> -> vector<16x128xf32>
    %c0_93 = arith.constant 0 : index
    %c0_94 = arith.constant 0 : index
    %154 = vector.load %arg7[%c0_93, %c0_94] : memref<1x128xf32, #tpu.memory_space<vmem>>, vector<1x128xf32>
    %155 = vector.broadcast %154 : vector<1x128xf32> to vector<16x128xf32>
    %156 = arith.addf %153, %155 : vector<16x128xf32>
    %cst_95 = arith.constant 0.000000e+00 : f32
    %157 = vector.broadcast %cst_95 : f32 to vector<16x128xf32>
    %158 = arith.maximumf %156, %157 : vector<16x128xf32>
    %159 = arith.truncf %158 : vector<16x128xf32> to vector<16x128xbf16>
    %c0_96 = arith.constant 0 : index
    %c0_97 = arith.constant 0 : index
    %160 = vector.load %arg8[%c0_96, %c0_97] : memref<128x128xbf16, #tpu.memory_space<vmem>>, vector<128x128xbf16>
    %cst_98 = arith.constant dense<0.000000e+00> : vector<16x128xf32>
    %161 = tpu.matmul %159, %160, %cst_98 {dimension_numbers = #tpu.dot_dimension_numbers<[1], [0], [0], [1], [0, 0, 1, 1], [], []>} : vector<16x128xbf16>, vector<128x128xbf16>, vector<16x128xf32> -> vector<16x128xf32>
    %c0_99 = arith.constant 0 : index
    %c0_100 = arith.constant 0 : index
    %162 = vector.load %arg9[%c0_99, %c0_100] : memref<1x128xf32, #tpu.memory_space<vmem>>, vector<1x128xf32>
    %163 = vector.broadcast %162 : vector<1x128xf32> to vector<16x128xf32>
    %164 = arith.addf %161, %163 : vector<16x128xf32>
    %165 = tpu.iota {dimensions = array<i32: 1>} : vector<16x128xi32>
    %c10_i32 = arith.constant 10 : i32
    %166 = vector.broadcast %c10_i32 : i32 to vector<16x128xi32>
    %167 = arith.cmpi slt, %165, %166 : vector<16x128xi32>
    %cst_101 = arith.constant -1.000000e+30 : f32
    %168 = vector.broadcast %cst_101 : f32 to vector<16x128xf32>
    %169 = arith.select %167, %164, %168 : vector<16x128xi1>, vector<16x128xf32>
    %cst_102 = arith.constant dense<0xFF800000> : vector<16xf32>
    %170 = vector.multi_reduction <maximumf>, %169, %cst_102 [1] : vector<16x128xf32> to vector<16xf32>
    %171 = vector.shape_cast %170 : vector<16xf32> to vector<16x1xf32>
    %172 = vector.broadcast %171 : vector<16x1xf32> to vector<16x128xf32>
    %173 = arith.subf %169, %172 : vector<16x128xf32>
    %174 = math.exp %173 : vector<16x128xf32>
    %cst_103 = arith.constant dense<0.000000e+00> : vector<16xf32>
    %175 = vector.multi_reduction <add>, %174, %cst_103 [1] : vector<16x128xf32> to vector<16xf32>
    %176 = vector.shape_cast %175 : vector<16xf32> to vector<16x1xf32>
    %177 = tpu.reciprocal %176 : vector<16x1xf32> -> vector<16x1xf32>
    %178 = vector.broadcast %177 : vector<16x1xf32> to vector<16x128xf32>
    %179 = arith.mulf %174, %178 : vector<16x128xf32>
    %c0_104 = arith.constant 0 : index
    %c0_105 = arith.constant 0 : index
    %180 = vector.load %arg10[%c0_104, %c0_105] : memref<16x128xf32, #tpu.memory_space<vmem>>, vector<16x128xf32>
    tpu.vector_store %arg10[%c0_104, %c0_105], %179 {strides = array<i32>} : memref<16x128xf32, #tpu.memory_space<vmem>>, vector<16x128xf32>,
    return
  }
  func.func @transform_0(%arg0: i32) -> (i32, i32, i32) {
    %c0_i32 = arith.constant 0 : i32
    %c0_i32_0 = arith.constant 0 : i32
    %c0_i32_1 = arith.constant 0 : i32
    return %c0_i32, %arg0, %c0_i32_0 : i32, i32, i32
  }
  func.func @transform_1(%arg0: i32) -> (i32, i32) {
    %c0_i32 = arith.constant 0 : i32
    %c0_i32_0 = arith.constant 0 : i32
    %c0_i32_1 = arith.constant 0 : i32
    return %c0_i32, %c0_i32_0 : i32, i32
  }
  func.func @transform_2(%arg0: i32) -> (i32, i32) {
    %c0_i32 = arith.constant 0 : i32
    %c0_i32_0 = arith.constant 0 : i32
    %c0_i32_1 = arith.constant 0 : i32
    return %c0_i32, %c0_i32_0 : i32, i32
  }
  func.func @transform_3(%arg0: i32) -> (i32, i32, i32) {
    %c0_i32 = arith.constant 0 : i32
    %c0_i32_0 = arith.constant 0 : i32
    %c0_i32_1 = arith.constant 0 : i32
    %c0_i32_2 = arith.constant 0 : i32
    return %c0_i32, %c0_i32_0, %c0_i32_1 : i32, i32, i32
  }
  func.func @transform_4(%arg0: i32) -> (i32, i32) {
    %c0_i32 = arith.constant 0 : i32
    %c0_i32_0 = arith.constant 0 : i32
    %c0_i32_1 = arith.constant 0 : i32
    return %c0_i32, %c0_i32_0 : i32, i32
  }
  func.func @transform_5(%arg0: i32) -> (i32, i32) {
    %c0_i32 = arith.constant 0 : i32
    %c0_i32_0 = arith.constant 0 : i32
    %c0_i32_1 = arith.constant 0 : i32
    return %c0_i32, %c0_i32_0 : i32, i32
  }
  func.func @transform_6(%arg0: i32) -> (i32, i32) {
    %c0_i32 = arith.constant 0 : i32
    %c0_i32_0 = arith.constant 0 : i32
    %c0_i32_1 = arith.constant 0 : i32
    return %c0_i32, %c0_i32_0 : i32, i32
  }
  func.func @transform_7(%arg0: i32) -> (i32, i32) {
    %c0_i32 = arith.constant 0 : i32
    %c0_i32_0 = arith.constant 0 : i32
    %c0_i32_1 = arith.constant 0 : i32
    return %c0_i32, %c0_i32_0 : i32, i32
  }
  func.func @transform_8(%arg0: i32) -> (i32, i32) {
    %c0_i32 = arith.constant 0 : i32
    %c0_i32_0 = arith.constant 0 : i32
    %c0_i32_1 = arith.constant 0 : i32
    return %c0_i32, %c0_i32_0 : i32, i32
  }
  func.func @transform_9(%arg0: i32) -> (i32, i32) {
    %c0_i32 = arith.constant 0 : i32
    %c0_i32_0 = arith.constant 0 : i32
    return %arg0, %c0_i32 : i32, i32
  }
}

</mosaic_0001>

<bundles_post_ra>
// kernel: lenet10_forward.2
= control target key start
LH: loop header
LB: loop body
LE: loop exit
PB: predicated region body
PF: predicated region fallthrough
CT: control target
= control target key end

     0   :  { %s2186_s12 = smov 0   ;;  %s2701_s0 = inlined_call_operand.vmem [shape: bf16[416,512], index: 0, kind: input, shape index: {}]   ;;  %s2702_s1 = inlined_call_operand.vmem [shape: bf16[128,128], index: 1, kind: input, shape index: {}]   ;;  %s2703_s2 = inlined_call_operand.vmem [shape: f32[1,128], index: 2, kind: input, shape index: {}]   ;;  %s2704_s3 = inlined_call_operand.vmem [shape: bf16[416,128], index: 3, kind: output, shape index: {}]  }
   0x1 LB: > { %s1529_s13 = sadd.s32 4294967295, %s2162_s12   ;;  %p1533_p0 = scmp.ge.s32.totalorder %s2162_s12, 1  ;;  %s2162_s12 = sphi %s2186_s12, %s13_s12  }
   0x2   : > { %p139_p1 = scmp.lt.s32.totalorder %s2162_s12, 3 }
   0x4   : > { %p140_p2 = pnand %p1533_p0, %p139_p1 }
   0x6   : > { %143 = sbr.rel (%p140_p2) target bundleno = 471 (0x1d7), region = 32 }
   0xd   : > { %v2096_v0 = vld [vmem:[%s2702_s1] sm:$0xff]   ;;  %v2164_v1 = vmov 0.0   ;;  %v2097_v2 = vld [vmem:[%s2702_s1 + $0x8] sm:$0xff]   ;;  %s164_s18 = smul.u32 26, %s1529_s13  ;;  %vm2165_vm0 = vmmov 0   ;;  %v2098_v3 = vld [vmem:[%s2702_s1 + $0x10] sm:$0xff]  }
   0xe   : > { %1814 = vmatprep.subr.bf16.mxu0 %v2164_v1  ;;  %1882 = vmatprep.subr.bf16.mxu1 %v2164_v1  ;;  %v2099_v4 = vld [vmem:[%s2702_s1 + $0x18] sm:$0xff]   ;;  %v2100_v5 = vld [vmem:[%s2702_s1 + $0x20] sm:$0xff]   ;;  %v2101_v6 = vld [vmem:[%s2702_s1 + $0x28] sm:$0xff]  }
   0xf   : > { %1815 = vmatpush3.bf16.msra.mxu0 %v2096_v0  ;;  %1883 = vmatpush3.bf16.msra.mxu1 %v2096_v0  ;;  %p165_p3 = scmp.lt.s32.totalorder %s164_s18, 51  ;;  %v2102_v7 = vld [vmem:[%s2702_s1 + $0x30] sm:$0xff]   ;;  %v2103_v8 = vld [vmem:[%s2702_s1 + $0x38] sm:$0xff]  }
  0x10   : > { %1816 = vmatprep.subr.bf16.mxu0 %v2164_v1  ;;  %1884 = vmatprep.subr.bf16.mxu1 %v2164_v1 }
  0x11   : > { %1830 = vmatprep.mubr.msk.bf16.mxu0 %vm2165_vm0, %v2164_v1  ;;  %1898 = vmatprep.mubr.msk.bf16.mxu1 %vm2165_vm0, %v2164_v1  ;;  %s2746_s18 = smov (!%p165_p3, %s164_s18), 51 }
  0x12   : > { %s1626_s21 = sshll.u32 %s2746_s18, 4  ;;  %s1536_s10 = sshll.u32 %s2746_s18, 2 }
  0x13   : > { %1817 = vmatpush3.bf16.msra.mxu0 %v2097_v2  ;;  %1885 = vmatpush3.bf16.msra.mxu1 %v2097_v2  ;;  %s2219_s24 = scalar_lea.vmem %s2701_s0, %s1626_s21  ;;  %s2590_s14 = scalar_lea.vmem %s2704_s3, %s1536_s10 }
  0x14   : > { %1818 = vmatprep.subr.bf16.mxu0 %v2164_v1  ;;  %1886 = vmatprep.subr.bf16.mxu1 %v2164_v1  ;;  %v2104_v9 = vld [vmem:[%s2219_s24] ss:$16 sps:$4 sm:$0xff]   ;;  %v2105_v10 = vld [vmem:[%s2219_s24 + $0x4] ss:$16 sps:$4 sm:$0xff]   ;;  %v2130_v35 = vld [vmem:[%s2219_s24 + $0x8] ss:$16 sps:$4 sm:$0xff]  }
  0x15   : > { %v2106_v11 = vld [vmem:[%s2219_s24 + $0x20] ss:$16 sps:$4 sm:$0xff]   ;;  %v2107_v12 = vld [vmem:[%s2219_s24 + $0x24] ss:$16 sps:$4 sm:$0xff]   ;;  %v2131_v36 = vld [vmem:[%s2219_s24 + $0xc] ss:$16 sps:$4 sm:$0xff]  }
  0x16   : > { %v2108_v13 = vld [vmem:[%s2219_s24 + $0x40] ss:$16 sps:$4 sm:$0xff]   ;;  %v2109_v14 = vld [vmem:[%s2219_s24 + $0x44] ss:$16 sps:$4 sm:$0xff]   ;;  %v2132_v37 = vld [vmem:[%s2219_s24 + $0x28] ss:$16 sps:$4 sm:$0xff]  }
  0x17   : > { %1819 = vmatpush3.bf16.msra.mxu0 %v2098_v3  ;;  %1887 = vmatpush3.bf16.msra.mxu1 %v2098_v3  ;;  %v2110_v15 = vld [vmem:[%s2219_s24 + $0x60] ss:$16 sps:$4 sm:$0xff]   ;;  %v2111_v16 = vld [vmem:[%s2219_s24 + $0x64] ss:$16 sps:$4 sm:$0xff]   ;;  %v2133_v38 = vld [vmem:[%s2219_s24 + $0x2c] ss:$16 sps:$4 sm:$0xff]  }
  0x18   : > { %1820 = vmatprep.subr.bf16.mxu0 %v2164_v1  ;;  %1888 = vmatprep.subr.bf16.mxu1 %v2164_v1  ;;  %v2112_v17 = vld [vmem:[%s2219_s24 + $0x80] ss:$16 sps:$4 sm:$0xff]   ;;  %v2113_v18 = vld [vmem:[%s2219_s24 + $0x84] ss:$16 sps:$4 sm:$0xff]   ;;  %v2134_v39 = vld [vmem:[%s2219_s24 + $0x48] ss:$16 sps:$4 sm:$0xff]  }
  0x19   : > { %v2114_v19 = vld [vmem:[%s2219_s24 + $0xa0] ss:$16 sps:$4 sm:$0xff]   ;;  %v2115_v20 = vld [vmem:[%s2219_s24 + $0xa4] ss:$16 sps:$4 sm:$0xff]   ;;  %v2135_v40 = vld [vmem:[%s2219_s24 + $0x4c] ss:$16 sps:$4 sm:$0xff]  }
  0x1a   : > { %v2116_v21 = vld [vmem:[%s2219_s24 + $0xc0] ss:$16 sps:$4 sm:$0xff]   ;;  %v2117_v22 = vld [vmem:[%s2219_s24 + $0xc4] ss:$16 sps:$4 sm:$0xff]   ;;  %v2136_v41 = vld [vmem:[%s2219_s24 + $0x68] ss:$16 sps:$4 sm:$0xff]  }
  0x1b   : > { %1821 = vmatpush3.bf16.msra.mxu0 %v2099_v4  ;;  %1889 = vmatpush3.bf16.msra.mxu1 %v2099_v4  ;;  %v2118_v23 = vld [vmem:[%s2219_s24 + $0xe0] ss:$16 sps:$4 sm:$0xff]   ;;  %v2119_v24 = vld [vmem:[%s2219_s24 + $0xe4] ss:$16 sps:$4 sm:$0xff]   ;;  %v2137_v42 = vld [vmem:[%s2219_s24 + $0x6c] ss:$16 sps:$4 sm:$0xff]  }
  0x1c   : > { %1822 = vmatprep.subr.bf16.mxu0 %v2164_v1  ;;  %1890 = vmatprep.subr.bf16.mxu1 %v2164_v1  ;;  %v2120_v25 = vld [vmem:[%s2219_s24 + $0x100] ss:$16 sps:$4 sm:$0xff]   ;;  %v2121_v26 = vld [vmem:[%s2219_s24 + $0x104] ss:$16 sps:$4 sm:$0xff]   ;;  %v2138_v43 = vld [vmem:[%s2219_s24 + $0x88] ss:$16 sps:$4 sm:$0xff]  }
  0x1d   : > { %v2122_v27 = vld [vmem:[%s2219_s24 + $0x120] ss:$16 sps:$4 sm:$0xff]   ;;  %v2123_v28 = vld [vmem:[%s2219_s24 + $0x124] ss:$16 sps:$4 sm:$0xff]   ;;  %v2139_v44 = vld [vmem:[%s2219_s24 + $0x8c] ss:$16 sps:$4 sm:$0xff]  }
  0x1e   : > { %v2124_v29 = vld [vmem:[%s2219_s24 + $0x140] ss:$16 sps:$4 sm:$0xff]   ;;  %v2125_v30 = vld [vmem:[%s2219_s24 + $0x144] ss:$16 sps:$4 sm:$0xff]   ;;  %v2140_v45 = vld [vmem:[%s2219_s24 + $0xa8] ss:$16 sps:$4 sm:$0xff]  }
  0x1f   : > { %1823 = vmatpush3.bf16.msra.mxu0 %v2100_v5  ;;  %1891 = vmatpush3.bf16.msra.mxu1 %v2100_v5  ;;  %v2126_v31 = vld [vmem:[%s2219_s24 + $0x160] ss:$16 sps:$4 sm:$0xff]   ;;  %v2127_v32 = vld [vmem:[%s2219_s24 + $0x164] ss:$16 sps:$4 sm:$0xff]   ;;  %v2141_v46 = vld [vmem:[%s2219_s24 + $0xac] ss:$16 sps:$4 sm:$0xff]  }
  0x20   : > { %1824 = vmatprep.subr.bf16.mxu0 %v2164_v1  ;;  %1892 = vmatprep.subr.bf16.mxu1 %v2164_v1  ;;  %v2128_v33 = vld [vmem:[%s2219_s24 + $0x180] ss:$16 sps:$4 sm:$0xff]   ;;  %v2129_v34 = vld [vmem:[%s2219_s24 + $0x184] ss:$16 sps:$4 sm:$0xff]   ;;  %v2142_v47 = vld [vmem:[%s2219_s24 + $0xc8] ss:$16 sps:$4 sm:$0xff]  }
  0x21   : > { %v2143_v48 = vld [vmem:[%s2219_s24 + $0xcc] ss:$16 sps:$4 sm:$0xff]   ;;  %v2144_v49 = vld [vmem:[%s2219_s24 + $0xe8] ss:$16 sps:$4 sm:$0xff]  }
  0x22   : > { %v2145_v50 = vld [vmem:[%s2219_s24 + $0xec] ss:$16 sps:$4 sm:$0xff]   ;;  %v2146_v51 = vld [vmem:[%s2219_s24 + $0x108] ss:$16 sps:$4 sm:$0xff]  }
  0x23   : > { %1825 = vmatpush3.bf16.msra.mxu0 %v2101_v6  ;;  %1893 = vmatpush3.bf16.msra.mxu1 %v2101_v6  ;;  %v2147_v52 = vld [vmem:[%s2219_s24 + $0x10c] ss:$16 sps:$4 sm:$0xff]   ;;  %v2148_v53 = vld [vmem:[%s2219_s24 + $0x128] ss:$16 sps:$4 sm:$0xff]  }
  0x24   : > { %1826 = vmatprep.subr.bf16.mxu0 %v2164_v1  ;;  %1894 = vmatprep.subr.bf16.mxu1 %v2164_v1  ;;  %v2149_v54 = vld [vmem:[%s2219_s24 + $0x12c] ss:$16 sps:$4 sm:$0xff]   ;;  %v2150_v55 = vld [vmem:[%s2219_s24 + $0x148] ss:$16 sps:$4 sm:$0xff]  }
  0x25   : > { %v2151_v56 = vld [vmem:[%s2219_s24 + $0x14c] ss:$16 sps:$4 sm:$0xff]   ;;  %v2152_v57 = vld [vmem:[%s2219_s24 + $0x168] ss:$16 sps:$4 sm:$0xff]  }
  0x26   : > { %v2153_v58 = vld [vmem:[%s2219_s24 + $0x16c] ss:$16 sps:$4 sm:$0xff]   ;;  %v2154_v59 = vld [vmem:[%s2219_s24 + $0x188] ss:$16 sps:$4 sm:$0xff]  }
  0x27   : > { %1827 = vmatpush3.bf16.msra.mxu0 %v2102_v7  ;;  %1895 = vmatpush3.bf16.msra.mxu1 %v2102_v7  ;;  %v2155_v60 = vld [vmem:[%s2219_s24 + $0x18c] ss:$16 sps:$4 sm:$0xff]  }
  0x28   : > { %1828 = vmatprep.subr.bf16.mxu0 %v2164_v1  ;;  %1896 = vmatprep.subr.bf16.mxu1 %v2164_v1 }
  0x2b   : > { %1829 = vmatpush3.bf16.msra.mxu0 %v2103_v8  ;;  %1897 = vmatpush3.bf16.msra.mxu1 %v2103_v8 }
  0x2c   : > { %1950 = vmatprep.subr.bf16.mxu0 %v2164_v1  ;;  %2018 = vmatprep.subr.bf16.mxu1 %v2164_v1 }
  0x2e   : > { %1831 = vmatmul.mubr.bf16.vlgmr.msra.gmra.mrb[0].mxu0 %v2104_v9  ;;  %1899 = vmatmul.mubr.bf16.vlgmr.msra.gmra.mrb[0].mxu1 %v2105_v10 }
  0x2f   : > { %1951 = vmatpush3.bf16.msra.mxu0 %v2096_v0  ;;  %2019 = vmatpush3.bf16.msra.mxu1 %v2096_v0 }
  0x30   : > { %1834 = vmatprep.mubr.msk.bf16.mxu0 %vm2165_vm0, %v2164_v1  ;;  %1902 = vmatprep.mubr.msk.bf16.mxu1 %vm2165_vm0, %v2164_v1 }
  0x31   : > { %1952 = vmatprep.subr.bf16.mxu0 %v2164_v1  ;;  %2020 = vmatprep.subr.bf16.mxu1 %v2164_v1 }
  0x33   : > { %1953 = vmatpush3.bf16.msra.mxu0 %v2097_v2  ;;  %2021 = vmatpush3.bf16.msra.mxu1 %v2097_v2 }
  0x34   : > { %1954 = vmatprep.subr.bf16.mxu0 %v2164_v1  ;;  %2022 = vmatprep.subr.bf16.mxu1 %v2164_v1 }
  0x36   : > { %1835 = vmatmul.mubr.bf16.gmra.mrb[4].mxu0 %v2106_v11  ;;  %1903 = vmatmul.mubr.bf16.gmra.mrb[4].mxu1 %v2107_v12 }
  0x37   : > { %1838 = vmatprep.mubr.msk.bf16.mxu0 %vm2165_vm0, %v2164_v1  ;;  %1906 = vmatprep.mubr.msk.bf16.mxu1 %vm2165_vm0, %v2164_v1 }
  0x38   : > { %1955 = vmatpush3.bf16.msra.mxu0 %v2098_v3  ;;  %2023 = vmatpush3.bf16.msra.mxu1 %v2098_v3 }
  0x39   : > { %1956 = vmatprep.subr.bf16.mxu0 %v2164_v1  ;;  %2024 = vmatprep.subr.bf16.mxu1 %v2164_v1 }
  0x3c   : > { %1957 = vmatpush3.bf16.msra.mxu0 %v2099_v4  ;;  %2025 = vmatpush3.bf16.msra.mxu1 %v2099_v4 }
  0x3d   : > { %1958 = vmatprep.subr.bf16.mxu0 %v2164_v1  ;;  %2026 = vmatprep.subr.bf16.mxu1 %v2164_v1 }
  0x3e   : > { %1839 = vmatmul.mubr.bf16.gmra.mrb[8].mxu0 %v2108_v13  ;;  %1907 = vmatmul.mubr.bf16.gmra.mrb[8].mxu1 %v2109_v14 }
  0x3f   : > { %1842 = vmatprep.mubr.msk.bf16.mxu0 %vm2165_vm0, %v2164_v1  ;;  %1910 = vmatprep.mubr.msk.bf16.mxu1 %vm2165_vm0, %v2164_v1 }
  0x40   : > { %1959 = vmatpush3.bf16.msra.mxu0 %v2100_v5  ;;  %2027 = vmatpush3.bf16.msra.mxu1 %v2100_v5 }
  0x41   : > { %1960 = vmatprep.subr.bf16.mxu0 %v2164_v1  ;;  %2028 = vmatprep.subr.bf16.mxu1 %v2164_v1 }
  0x44   : > { %1961 = vmatpush3.bf16.msra.mxu0 %v2101_v6  ;;  %2029 = vmatpush3.bf16.msra.mxu1 %v2101_v6 }
  0x45   : > { %1962 = vmatprep.subr.bf16.mxu0 %v2164_v1  ;;  %2030 = vmatprep.subr.bf16.mxu1 %v2164_v1 }
  0x46   : > { %1843 = vmatmul.mubr.bf16.gmra.mrb[12].mxu0 %v2110_v15  ;;  %1911 = vmatmul.mubr.bf16.gmra.mrb[12].mxu1 %v2111_v16 }
  0x47   : > { %1846 = vmatprep.mubr.msk.bf16.mxu0 %vm2165_vm0, %v2164_v1  ;;  %1914 = vmatprep.mubr.msk.bf16.mxu1 %vm2165_vm0, %v2164_v1 }
  0x48   : > { %1963 = vmatpush3.bf16.msra.mxu0 %v2102_v7  ;;  %2031 = vmatpush3.bf16.msra.mxu1 %v2102_v7 }
  0x49   : > { %1964 = vmatprep.subr.bf16.mxu0 %v2164_v1  ;;  %2032 = vmatprep.subr.bf16.mxu1 %v2164_v1 }
  0x4c   : > { %1965 = vmatpush3.bf16.msra.mxu0 %v2103_v8  ;;  %2033 = vmatpush3.bf16.msra.mxu1 %v2103_v8 }
  0x4e   : > { %1847 = vmatmul.mubr.bf16.gmra.mrb[16].mxu0 %v2112_v17  ;;  %1915 = vmatmul.mubr.bf16.gmra.mrb[16].mxu1 %v2113_v18 }
  0x4f   : > { %1850 = vmatprep.mubr.msk.bf16.mxu0 %vm2165_vm0, %v2164_v1  ;;  %1918 = vmatprep.mubr.msk.bf16.mxu1 %vm2165_vm0, %v2164_v1 }
  0x56   : > { %1851 = vmatmul.mubr.bf16.gmra.mrb[20].mxu0 %v2114_v19  ;;  %1919 = vmatmul.mubr.bf16.gmra.mrb[20].mxu1 %v2115_v20 }
  0x57   : > { %1854 = vmatprep.mubr.msk.bf16.mxu0 %vm2165_vm0, %v2164_v1  ;;  %1922 = vmatprep.mubr.msk.bf16.mxu1 %vm2165_vm0, %v2164_v1 }
  0x5e   : > { %1855 = vmatmul.mubr.bf16.gmra.mrb[24].mxu0 %v2116_v21  ;;  %1923 = vmatmul.mubr.bf16.gmra.mrb[24].mxu1 %v2117_v22 }
  0x5f   : > { %1858 = vmatprep.mubr.msk.bf16.mxu0 %vm2165_vm0, %v2164_v1  ;;  %1926 = vmatprep.mubr.msk.bf16.mxu1 %vm2165_vm0, %v2164_v1 }
  0x66   : > { %1859 = vmatmul.mubr.bf16.gmra.mrb[28].mxu0 %v2118_v23  ;;  %1927 = vmatmul.mubr.bf16.gmra.mrb[28].mxu1 %v2119_v24 }
  0x67   : > { %1862 = vmatprep.mubr.msk.bf16.mxu0 %vm2165_vm0, %v2164_v1  ;;  %1930 = vmatprep.mubr.msk.bf16.mxu1 %vm2165_vm0, %v2164_v1 }
  0x6e   : > { %1863 = vmatmul.mubr.bf16.gmra.mrb[32].mxu0 %v2120_v25  ;;  %1931 = vmatmul.mubr.bf16.gmra.mrb[32].mxu1 %v2121_v26 }
  0x6f   : > { %1866 = vmatprep.mubr.msk.bf16.mxu0 %vm2165_vm0, %v2164_v1  ;;  %1934 = vmatprep.mubr.msk.bf16.mxu1 %vm2165_vm0, %v2164_v1 }
  0x76   : > { %1867 = vmatmul.mubr.bf16.gmra.mrb[36].mxu0 %v2122_v27  ;;  %1935 = vmatmul.mubr.bf16.gmra.mrb[36].mxu1 %v2123_v28 }
  0x77   : > { %1870 = vmatprep.mubr.msk.bf16.mxu0 %vm2165_vm0, %v2164_v1  ;;  %1938 = vmatprep.mubr.msk.bf16.mxu1 %vm2165_vm0, %v2164_v1 }
  0x7e   : > { %1871 = vmatmul.mubr.bf16.gmra.mrb[40].mxu0 %v2124_v29  ;;  %1939 = vmatmul.mubr.bf16.gmra.mrb[40].mxu1 %v2125_v30 }
  0x7f   : > { %1874 = vmatprep.mubr.msk.bf16.mxu0 %vm2165_vm0, %v2164_v1  ;;  %1942 = vmatprep.mubr.msk.bf16.mxu1 %vm2165_vm0, %v2164_v1 }
  0x86   : > { %1875 = vmatmul.mubr.bf16.gmra.mrb[44].mxu0 %v2126_v31  ;;  %1943 = vmatmul.mubr.bf16.gmra.mrb[44].mxu1 %v2127_v32 }
  0x87   : > { %1878 = vmatprep.mubr.msk.bf16.mxu0 %vm2165_vm0, %v2164_v1  ;;  %1946 = vmatprep.mubr.msk.bf16.mxu1 %vm2165_vm0, %v2164_v1 }
  0x8e   : > { %1879 = vmatmul.mubr.bf16.gmra.mrb[48].mxu0 %v2128_v33  ;;  %1947 = vmatmul.mubr.bf16.gmra.mrb[48].mxu1 %v2129_v34 }
  0x8f   : > { %1966 = vmatprep.mubr.msk.bf16.mxu0 %vm2165_vm0, %v2164_v1  ;;  %2034 = vmatprep.mubr.msk.bf16.mxu1 %vm2165_vm0, %v2164_v1 }
  0x96   : > { %1967 = vmatmul.mubr.bf16.vlgmr.msra.gmra.mrb[52].mxu0 %v2130_v35  ;;  %2035 = vmatmul.mubr.bf16.vlgmr.msra.gmra.mrb[52].mxu1 %v2131_v36 }
  0x97   : > { %1970 = vmatprep.mubr.msk.bf16.mxu0 %vm2165_vm0, %v2164_v1  ;;  %2038 = vmatprep.mubr.msk.bf16.mxu1 %vm2165_vm0, %v2164_v1 }
  0x9e   : > { %1971 = vmatmul.mubr.bf16.gmra.mrb[56].mxu0 %v2132_v37  ;;  %2039 = vmatmul.mubr.bf16.gmra.mrb[56].mxu1 %v2133_v38 }
  0x9f   : > { %1974 = vmatprep.mubr.msk.bf16.mxu0 %vm2165_vm0, %v2164_v1  ;;  %2042 = vmatprep.mubr.msk.bf16.mxu1 %vm2165_vm0, %v2164_v1 }
  0xa6   : > { %1975 = vmatmul.mubr.bf16.gmra.mrb[60].mxu0 %v2134_v39  ;;  %2043 = vmatmul.mubr.bf16.gmra.mrb[60].mxu1 %v2135_v40 }
  0xa7   : > { %1978 = vmatprep.mubr.msk.bf16.mxu0 %vm2165_vm0, %v2164_v1  ;;  %2046 = vmatprep.mubr.msk.bf16.mxu1 %vm2165_vm0, %v2164_v1 }
  0xae   : > { %1979 = vmatmul.mubr.bf16.gmra.mrb[64].mxu0 %v2136_v41  ;;  %2047 = vmatmul.mubr.bf16.gmra.mrb[64].mxu1 %v2137_v42 }
  0xaf   : > { %1982 = vmatprep.mubr.msk.bf16.mxu0 %vm2165_vm0, %v2164_v1  ;;  %2050 = vmatprep.mubr.msk.bf16.mxu1 %vm2165_vm0, %v2164_v1 }
  0xb6   : > { %1983 = vmatmul.mubr.bf16.gmra.mrb[68].mxu0 %v2138_v43  ;;  %2051 = vmatmul.mubr.bf16.gmra.mrb[68].mxu1 %v2139_v44 }
  0xb7   : > { %1986 = vmatprep.mubr.msk.bf16.mxu0 %vm2165_vm0, %v2164_v1  ;;  %2054 = vmatprep.mubr.msk.bf16.mxu1 %vm2165_vm0, %v2164_v1 }
  0xbe   : > { %1987 = vmatmul.mubr.bf16.gmra.mrb[72].mxu0 %v2140_v45  ;;  %2055 = vmatmul.mubr.bf16.gmra.mrb[72].mxu1 %v2141_v46 }
  0xbf   : > { %1990 = vmatprep.mubr.msk.bf16.mxu0 %vm2165_vm0, %v2164_v1  ;;  %2058 = vmatprep.mubr.msk.bf16.mxu1 %vm2165_vm0, %v2164_v1 }
  0xc6   : > { %1991 = vmatmul.mubr.bf16.gmra.mrb[76].mxu0 %v2142_v47  ;;  %2059 = vmatmul.mubr.bf16.gmra.mrb[76].mxu1 %v2143_v48 }
  0xc7   : > { %1994 = vmatprep.mubr.msk.bf16.mxu0 %vm2165_vm0, %v2164_v1  ;;  %2062 = vmatprep.mubr.msk.bf16.mxu1 %vm2165_vm0, %v2164_v1 }
  0xce   : > { %1995 = vmatmul.mubr.bf16.gmra.mrb[80].mxu0 %v2144_v49  ;;  %2063 = vmatmul.mubr.bf16.gmra.mrb[80].mxu1 %v2145_v50 }
  0xcf   : > { %1998 = vmatprep.mubr.msk.bf16.mxu0 %vm2165_vm0, %v2164_v1  ;;  %2066 = vmatprep.mubr.msk.bf16.mxu1 %vm2165_vm0, %v2164_v1 }
  0xd6   : > { %1999 = vmatmul.mubr.bf16.gmra.mrb[84].mxu0 %v2146_v51  ;;  %2067 = vmatmul.mubr.bf16.gmra.mrb[84].mxu1 %v2147_v52 }
  0xd7   : > { %2002 = vmatprep.mubr.msk.bf16.mxu0 %vm2165_vm0, %v2164_v1  ;;  %2070 = vmatprep.mubr.msk.bf16.mxu1 %vm2165_vm0, %v2164_v1 }
  0xde   : > { %2003 = vmatmul.mubr.bf16.gmra.mrb[88].mxu0 %v2148_v53  ;;  %2071 = vmatmul.mubr.bf16.gmra.mrb[88].mxu1 %v2149_v54 }
  0xdf   : > { %2006 = vmatprep.mubr.msk.bf16.mxu0 %vm2165_vm0, %v2164_v1  ;;  %2074 = vmatprep.mubr.msk.bf16.mxu1 %vm2165_vm0, %v2164_v1 }
  0xe6   : > { %2007 = vmatmul.mubr.bf16.gmra.mrb[92].mxu0 %v2150_v55  ;;  %2075 = vmatmul.mubr.bf16.gmra.mrb[92].mxu1 %v2151_v56 }
  0xe7   : > { %2010 = vmatprep.mubr.msk.bf16.mxu0 %vm2165_vm0, %v2164_v1  ;;  %2078 = vmatprep.mubr.msk.bf16.mxu1 %vm2165_vm0, %v2164_v1 }
  0xee   : > { %2011 = vmatmul.mubr.bf16.gmra.mrb[96].mxu0 %v2152_v57  ;;  %2079 = vmatmul.mubr.bf16.gmra.mrb[96].mxu1 %v2153_v58 }
  0xef   : > { %2014 = vmatprep.mubr.msk.bf16.mxu0 %vm2165_vm0, %v2164_v1  ;;  %2082 = vmatprep.mubr.msk.bf16.mxu1 %vm2165_vm0, %v2164_v1 }
  0xf6   : > { %2015 = vmatmul.mubr.bf16.gmra.mrb[100].mxu0 %v2154_v59  ;;  %2083 = vmatmul.mubr.bf16.gmra.mrb[100].mxu1 %v2155_v60 }
 0x101   : > { %v2414_v61 = vpop.f32.mrb[0].mxu0  ;;  %v2416_v62 = vpop.f32.mrb[0].mxu1 }
 0x102   : > { %v724_v63 = vmax.f32 %v2414_v61, %v2416_v62  ;;  %v1832_v0 = vpop.f32.mrb[1].mxu0  ;;  %v1900_v2 = vpop.f32.mrb[1].mxu1 }
 0x103   : > { %v2420_v3 = vpop.f32.mrb[2].mxu0  ;;  %v2422_v4 = vpop.f32.mrb[2].mxu1 }
 0x104   : > { %v1833_v5 = vpop.f32.mrb[3].mxu0  ;;  %v1901_v6 = vpop.f32.mrb[3].mxu1 }
 0x109   : > { %v2426_v7 = vpop.f32.mrb[4].mxu0  ;;  %v2428_v8 = vpop.f32.mrb[4].mxu1 }
 0x10a   : > { %v1836_v10 = vpop.f32.mrb[5].mxu0  ;;  %v1904_v11 = vpop.f32.mrb[5].mxu1 }
 0x10b   : > { %v2432_v12 = vpop.f32.mrb[6].mxu0  ;;  %v2434_v13 = vpop.f32.mrb[6].mxu1 }
 0x10c   : > { %v1837_v15 = vpop.f32.mrb[7].mxu0  ;;  %v1905_v16 = vpop.f32.mrb[7].mxu1 }
 0x111   : > { %v2438_v17 = vpop.f32.mrb[8].mxu0  ;;  %v2440_v18 = vpop.f32.mrb[8].mxu1 }
 0x112   : > { %v1840_v20 = vpop.f32.mrb[9].mxu0  ;;  %v1908_v21 = vpop.f32.mrb[9].mxu1 }
 0x113   : > { %v2444_v22 = vpop.f32.mrb[10].mxu0  ;;  %v2446_v23 = vpop.f32.mrb[10].mxu1 }
 0x114   : > { %v1841_v25 = vpop.f32.mrb[11].mxu0  ;;  %v1909_v26 = vpop.f32.mrb[11].mxu1 }
 0x119   : > { %v2450_v27 = vpop.f32.mrb[12].mxu0  ;;  %v2452_v28 = vpop.f32.mrb[12].mxu1 }
 0x11a   : > { %v1844_v30 = vpop.f32.mrb[13].mxu0  ;;  %v1912_v31 = vpop.f32.mrb[13].mxu1 }
 0x11b   : > { %v2456_v32 = vpop.f32.mrb[14].mxu0  ;;  %v2458_v33 = vpop.f32.mrb[14].mxu1 }
 0x11c   : > { %v1845_v35 = vpop.f32.mrb[15].mxu0  ;;  %v1913_v36 = vpop.f32.mrb[15].mxu1 }
 0x121   : > { %v2462_v37 = vpop.f32.mrb[16].mxu0  ;;  %v2464_v38 = vpop.f32.mrb[16].mxu1 }
 0x122   : > { %v1848_v40 = vpop.f32.mrb[17].mxu0  ;;  %v1916_v41 = vpop.f32.mrb[17].mxu1 }
 0x123   : > { %v2468_v42 = vpop.f32.mrb[18].mxu0  ;;  %v2470_v43 = vpop.f32.mrb[18].mxu1 }
 0x124   : > { %v1849_v45 = vpop.f32.mrb[19].mxu0  ;;  %v1917_v46 = vpop.f32.mrb[19].mxu1 }
 0x129   : > { %v2474_v47 = vpop.f32.mrb[20].mxu0  ;;  %v2476_v48 = vpop.f32.mrb[20].mxu1 }
 0x12a   : > { %v1852_v50 = vpop.f32.mrb[21].mxu0  ;;  %v1920_v51 = vpop.f32.mrb[21].mxu1 }
 0x12b   : > { %v2480_v52 = vpop.f32.mrb[22].mxu0  ;;  %v2482_v53 = vpop.f32.mrb[22].mxu1 }
 0x12c   : > { %v1853_v55 = vpop.f32.mrb[23].mxu0  ;;  %v1921_v56 = vpop.f32.mrb[23].mxu1 }
 0x131   : > { %v2486_v57 = vpop.f32.mrb[24].mxu0  ;;  %v2488_v58 = vpop.f32.mrb[24].mxu1 }
 0x132   : > { %v1856_v60 = vpop.f32.mrb[25].mxu0  ;;  %v1924_v0 = vpop.f32.mrb[25].mxu1 }
 0x133   : > { %v2492_v2 = vpop.f32.mrb[26].mxu0  ;;  %v2494_v5 = vpop.f32.mrb[26].mxu1 }
 0x134   : > { %v1857_v10 = vpop.f32.mrb[27].mxu0  ;;  %v1925_v11 = vpop.f32.mrb[27].mxu1 }
 0x139   : > { %v2498_v15 = vpop.f32.mrb[28].mxu0  ;;  %v2500_v16 = vpop.f32.mrb[28].mxu1 }
 0x13a   : > { %v1860_v21 = vpop.f32.mrb[29].mxu0  ;;  %v1928_v25 = vpop.f32.mrb[29].mxu1 }
 0x13b   : > { %v2504_v26 = vpop.f32.mrb[30].mxu0  ;;  %v2506_v30 = vpop.f32.mrb[30].mxu1 }
 0x13c   : > { %v1861_v35 = vpop.f32.mrb[31].mxu0  ;;  %v1929_v36 = vpop.f32.mrb[31].mxu1 }
 0x141   : > { %v2510_v40 = vpop.f32.mrb[32].mxu0  ;;  %v2512_v41 = vpop.f32.mrb[32].mxu1 }
 0x142   : > { %v1864_v46 = vpop.f32.mrb[33].mxu0  ;;  %v1932_v50 = vpop.f32.mrb[33].mxu1 }
 0x143   : > { %v2516_v51 = vpop.f32.mrb[34].mxu0  ;;  %v2518_v55 = vpop.f32.mrb[34].mxu1 }
 0x144   : > { %v1865_v60 = vpop.f32.mrb[35].mxu0  ;;  %v1933_v0 = vpop.f32.mrb[35].mxu1 }
 0x149   : > { %v2522_v10 = vpop.f32.mrb[36].mxu0  ;;  %v2524_v11 = vpop.f32.mrb[36].mxu1 }
 0x14a   : > { %v1868_v25 = vpop.f32.mrb[37].mxu0  ;;  %v1936_v35 = vpop.f32.mrb[37].mxu1 }
 0x14b   : > { %v2528_v36 = vpop.f32.mrb[38].mxu0  ;;  %v2530_v46 = vpop.f32.mrb[38].mxu1 }
 0x14c   : > { %v1869_v45 = vpop.f32.mrb[39].mxu0  ;;  %v1937_v56 = vpop.f32.mrb[39].mxu1 }
 0x151   : > { %v2534_v60 = vpop.f32.mrb[40].mxu0  ;;  %v2536_v0 = vpop.f32.mrb[40].mxu1 }
 0x152   : > { %v1872_v20 = vpop.f32.mrb[41].mxu0  ;;  %v1940_v21 = vpop.f32.mrb[41].mxu1 }
 0x153   : > { %v2540_v25 = vpop.f32.mrb[42].mxu0  ;;  %v2542_v35 = vpop.f32.mrb[42].mxu1 }
 0x154   : > { %v1873_v59 = vpop.f32.mrb[43].mxu0  ;;  %v1941_v50 = vpop.f32.mrb[43].mxu1 }
 0x159   : > { %v2546_v45 = vpop.f32.mrb[44].mxu0  ;;  %v2548_v56 = vpop.f32.mrb[44].mxu1 }
 0x15a   : > { %v1876_v49 = vpop.f32.mrb[45].mxu0  ;;  %v1944_v31 = vpop.f32.mrb[45].mxu1 }
 0x15b   : > { %v2552_v20 = vpop.f32.mrb[46].mxu0  ;;  %v2554_v21 = vpop.f32.mrb[46].mxu1 }
 0x15c   : > { %2710 = vst [vmem:[#allocation2_spill] sm:$0xff] %v2554_v21  ;;  %v1877_v39 = vpop.f32.mrb[47].mxu0  ;;  %v1945_v6 = vpop.f32.mrb[47].mxu1 }
 0x161   : > { %v2558_v59 = vpop.f32.mrb[48].mxu0  ;;  %v2560_v50 = vpop.f32.mrb[48].mxu1 }
 0x162   : > { %2711 = vst [vmem:[#allocation3_spill] sm:$0xff] %v2558_v59  ;;  %2712 = vst [vmem:[#allocation4_spill] sm:$0xff] %v2560_v50  ;;  %v1880_v29 = vpop.f32.mrb[49].mxu0  ;;  %v1948_v54 = vpop.f32.mrb[49].mxu1  ;;  %v2716_v59 = vmax.f32 %v2426_v7, %v2428_v8 }
 0x163   : > { %v2564_v49 = vpop.f32.mrb[50].mxu0  ;;  %v2566_v31 = vpop.f32.mrb[50].mxu1  ;;  %v2576_v29 = vld [vmem:[%s2703_s2] ss:$0 sm:$0xff] }
 0x164   : > { %2713 = vst [vmem:[#allocation5_spill] sm:$0xff] %v2564_v49  ;;  %2714 = vst [vmem:[#allocation6_spill] sm:$0xff] %v2566_v31  ;;  %v1881_v19 = vpop.f32.mrb[51].mxu0  ;;  %v1949_v39 = vpop.f32.mrb[51].mxu1 }
 0x165   : > { %v2715_v19 = vmax.f32 %v2420_v3, %v2422_v4 }
 0x169   : > { %v888_v6 = vpop.f32.mrb[52].mxu0  ;;  %v1155_v44 = vpop.f32.mrb[52].mxu1 }
 0x16a   : > { %v991_v14 = vmax.f32 %v724_v63, %v888_v6  ;;  %v1968_v9 = vpop.f32.mrb[53].mxu0  ;;  %v2036_v34 = vpop.f32.mrb[53].mxu1 }
 0x16b   : > { %v891_v54 = vpop.f32.mrb[54].mxu0  ;;  %v1158_v1 = vpop.f32.mrb[54].mxu1 }
 0x16c   : > { %v1258_v50 = vmax.f32 %v991_v14, %v1155_v44  ;;  %v992_v39 = vmax.f32 %v2715_v19, %v891_v54  ;;  %v1969_v24 = vpop.f32.mrb[55].mxu0  ;;  %v2037_v31 = vpop.f32.mrb[55].mxu1 }
 0x16e   : > { %v1291_v49 = vadd.f32 %v2576_v29, %v1258_v50  ;;  %v1259_v61 = vmax.f32 %v992_v39, %v1158_v1  ;;  %v2717_v50 = vmax.f32 %v2432_v12, %v2434_v13 }
 0x170   : > { %v1292_v62 = vadd.f32 %v2576_v29, %v1259_v61  ;;  %v1317_v34 = vmax.f32 %v1291_v49, 0.0 }
 0x171   : > { %v896_v63 = vpop.f32.mrb[56].mxu0  ;;  %v1163_v9 = vpop.f32.mrb[56].mxu1 }
 0x172   : > { %v1318_v6 = vmax.f32 %v1292_v62, 0.0  ;;  %v993_v14 = vmax.f32 %v2716_v59, %v896_v63  ;;  %v1972_v44 = vpop.f32.mrb[57].mxu0  ;;  %v2040_v21 = vpop.f32.mrb[57].mxu1  ;;  %v2718_v62 = vmax.f32 %v2438_v17, %v2440_v18 }
 0x173   : > { %v899_v3 = vpop.f32.mrb[58].mxu0  ;;  %v1166_v4 = vpop.f32.mrb[58].mxu1  ;;  %v2719_v44 = vmax.f32 %v2444_v22, %v2446_v23 }
 0x174   : > { %v1656_v1 = vpack.c.bf16 %v1318_v6, %v1317_v34  ;;  %v1260_v24 = vmax.f32 %v993_v14, %v1163_v9  ;;  %v994_v49 = vmax.f32 %v2717_v50, %v899_v3  ;;  %v1973_v31 = vpop.f32.mrb[59].mxu0  ;;  %v2041_v54 = vpop.f32.mrb[59].mxu1 }
 0x176   : > { %1657 = vst [vmem:[%s2590_s14] sm:$0xff] %v1656_v1   ;;  %v1293_v7 = vadd.f32 %v2576_v29, %v1260_v24  ;;  %v1261_v8 = vmax.f32 %v994_v49, %v1166_v4 }
 0x178   : > { %v1294_v21 = vadd.f32 %v2576_v29, %v1261_v8  ;;  %v1319_v39 = vmax.f32 %v1293_v7, 0.0  ;;  %v2720_v7 = vmax.f32 %v2450_v27, %v2452_v28 }
 0x179   : > { %v904_v59 = vpop.f32.mrb[60].mxu0  ;;  %v1171_v19 = vpop.f32.mrb[60].mxu1 }
 0x17a   : > { %v1320_v61 = vmax.f32 %v1294_v21, 0.0  ;;  %v995_v63 = vmax.f32 %v2718_v62, %v904_v59  ;;  %v1976_v9 = vpop.f32.mrb[61].mxu0  ;;  %v2044_v12 = vpop.f32.mrb[61].mxu1 }
 0x17b   : > { %v907_v13 = vpop.f32.mrb[62].mxu0  ;;  %v1174_v34 = vpop.f32.mrb[62].mxu1 }
 0x17c   : > { %v1661_v6 = vpack.c.bf16 %v1320_v61, %v1319_v39  ;;  %v1262_v14 = vmax.f32 %v995_v63, %v1171_v19  ;;  %v996_v3 = vmax.f32 %v2719_v44, %v907_v13  ;;  %v1977_v4 = vpop.f32.mrb[63].mxu0  ;;  %v2045_v1 = vpop.f32.mrb[63].mxu1  ;;  %v2721_v61 = vmax.f32 %v2456_v32, %v2458_v33 }
 0x17d   : > { %v2722_v44 = vmax.f32 %v2462_v37, %v2464_v38 }
 0x17e   : > { %1718 = vst [vmem:[%s2590_s14 + $0x8] sm:$0xff] %v1661_v6   ;;  %v1295_v24 = vadd.f32 %v2576_v29, %v1262_v14  ;;  %v1263_v50 = vmax.f32 %v996_v3, %v1174_v34 }
 0x180   : > { %v1296_v17 = vadd.f32 %v2576_v29, %v1263_v50  ;;  %v1321_v31 = vmax.f32 %v1295_v24, 0.0 }
 0x181   : > { %v912_v18 = vpop.f32.mrb[64].mxu0  ;;  %v1179_v49 = vpop.f32.mrb[64].mxu1 }
 0x182   : > { %v1322_v54 = vmax.f32 %v1296_v17, 0.0  ;;  %v997_v8 = vmax.f32 %v2720_v7, %v912_v18  ;;  %v1980_v21 = vpop.f32.mrb[65].mxu0  ;;  %v2048_v22 = vpop.f32.mrb[65].mxu1  ;;  %v2723_v17 = vmax.f32 %v2468_v42, %v2470_v43 }
 0x183   : > { %v915_v23 = vpop.f32.mrb[66].mxu0  ;;  %v1182_v59 = vpop.f32.mrb[66].mxu1 }
 0x184   : > { %v1666_v19 = vpack.c.bf16 %v1322_v54, %v1321_v31  ;;  %v1264_v39 = vmax.f32 %v997_v8, %v1179_v49  ;;  %v998_v62 = vmax.f32 %v2721_v61, %v915_v23  ;;  %v1981_v63 = vpop.f32.mrb[67].mxu0  ;;  %v2049_v9 = vpop.f32.mrb[67].mxu1  ;;  %v2724_v23 = vmax.f32 %v2474_v47, %v2476_v48 }
 0x185   : > { %v2725_v63 = vmax.f32 %v2480_v52, %v2482_v53 }
 0x186   : > { %1719 = vst [vmem:[%s2590_s14 + $0x10] sm:$0xff] %v1666_v19   ;;  %v1297_v12 = vadd.f32 %v2576_v29, %v1264_v39  ;;  %v1265_v13 = vmax.f32 %v998_v62, %v1182_v59 }
 0x188   : > { %v1298_v27 = vadd.f32 %v2576_v29, %v1265_v13  ;;  %v1323_v6 = vmax.f32 %v1297_v12, 0.0 }
 0x189   : > { %v920_v28 = vpop.f32.mrb[68].mxu0  ;;  %v1187_v34 = vpop.f32.mrb[68].mxu1 }
 0x18a   : > { %v1324_v14 = vmax.f32 %v1298_v27, 0.0  ;;  %v999_v3 = vmax.f32 %v2722_v44, %v920_v28  ;;  %v1984_v4 = vpop.f32.mrb[69].mxu0  ;;  %v2052_v32 = vpop.f32.mrb[69].mxu1  ;;  %v2726_v44 = vmax.f32 %v2486_v57, %v2488_v58 }
 0x18b   : > { %v923_v33 = vpop.f32.mrb[70].mxu0  ;;  %v1190_v1 = vpop.f32.mrb[70].mxu1 }
 0x18c   : > { %v1671_v24 = vpack.c.bf16 %v1324_v14, %v1323_v6  ;;  %v1266_v50 = vmax.f32 %v999_v3, %v1187_v34  ;;  %v1000_v18 = vmax.f32 %v2723_v17, %v923_v33  ;;  %v1985_v49 = vpop.f32.mrb[71].mxu0  ;;  %v2053_v31 = vpop.f32.mrb[71].mxu1 }
 0x18e   : > { %1720 = vst [vmem:[%s2590_s14 + $0x18] sm:$0xff] %v1671_v24   ;;  %v1299_v54 = vadd.f32 %v2576_v29, %v1266_v50  ;;  %v1267_v7 = vmax.f32 %v1000_v18, %v1190_v1  ;;  %v2727_v24 = vmax.f32 %v2492_v2, %v2494_v5 }
 0x190   : > { %v1300_v37 = vadd.f32 %v2576_v29, %v1267_v7  ;;  %v1325_v21 = vmax.f32 %v1299_v54, 0.0 }
 0x191   : > { %v928_v38 = vpop.f32.mrb[72].mxu0  ;;  %v1195_v8 = vpop.f32.mrb[72].mxu1 }
 0x192   : > { %v1326_v22 = vmax.f32 %v1300_v37, 0.0  ;;  %v1001_v59 = vmax.f32 %v2724_v23, %v928_v38  ;;  %v1988_v19 = vpop.f32.mrb[73].mxu0  ;;  %v2056_v42 = vpop.f32.mrb[73].mxu1  ;;  %v2728_v38 = vmax.f32 %v2498_v15, %v2500_v16 }
 0x193   : > { %v931_v43 = vpop.f32.mrb[74].mxu0  ;;  %v1198_v39 = vpop.f32.mrb[74].mxu1  ;;  %v2729_v19 = vmax.f32 %v2504_v26, %v2506_v30 }
 0x194   : > { %v1676_v61 = vpack.c.bf16 %v1326_v22, %v1325_v21  ;;  %v1268_v62 = vmax.f32 %v1001_v59, %v1195_v8  ;;  %v1002_v9 = vmax.f32 %v2725_v63, %v931_v43  ;;  %v1989_v12 = vpop.f32.mrb[75].mxu0  ;;  %v2057_v13 = vpop.f32.mrb[75].mxu1 }
 0x195   : > { %v2730_v13 = vmax.f32 %v2510_v40, %v2512_v41 }
 0x196   : > { %1721 = vst [vmem:[%s2590_s14 + $0x20] sm:$0xff] %v1676_v61   ;;  %v1301_v27 = vadd.f32 %v2576_v29, %v1268_v62  ;;  %v1269_v28 = vmax.f32 %v1002_v9, %v1198_v39 }
 0x198   : > { %v1302_v47 = vadd.f32 %v2576_v29, %v1269_v28  ;;  %v1327_v6 = vmax.f32 %v1301_v27, 0.0 }
 0x199   : > { %v936_v48 = vpop.f32.mrb[76].mxu0  ;;  %v1203_v34 = vpop.f32.mrb[76].mxu1 }
 0x19a   : > { %v1328_v14 = vmax.f32 %v1302_v47, 0.0  ;;  %v1003_v3 = vmax.f32 %v2726_v44, %v936_v48  ;;  %v1992_v4 = vpop.f32.mrb[77].mxu0  ;;  %v2060_v52 = vpop.f32.mrb[77].mxu1 }
 0x19b   : > { %v939_v53 = vpop.f32.mrb[78].mxu0  ;;  %v1206_v32 = vpop.f32.mrb[78].mxu1 }
 0x19c   : > { %v1681_v33 = vpack.c.bf16 %v1328_v14, %v1327_v6  ;;  %v1270_v1 = vmax.f32 %v1003_v3, %v1203_v34  ;;  %v1004_v50 = vmax.f32 %v2727_v24, %v939_v53  ;;  %v1993_v17 = vpop.f32.mrb[79].mxu0  ;;  %v2061_v18 = vpop.f32.mrb[79].mxu1  ;;  %v2731_v6 = vmax.f32 %v2516_v51, %v2518_v55 }
 0x19e   : > { %1722 = vst [vmem:[%s2590_s14 + $0x28] sm:$0xff] %v1681_v33   ;;  %v1303_v49 = vadd.f32 %v2576_v29, %v1270_v1  ;;  %v1271_v31 = vmax.f32 %v1004_v50, %v1206_v32  ;;  %v2732_v1 = vmax.f32 %v2522_v10, %v2524_v11 }
 0x1a0   : > { %v1304_v57 = vadd.f32 %v2576_v29, %v1271_v31  ;;  %v1329_v7 = vmax.f32 %v1303_v49, 0.0  ;;  %v2733_v31 = vmax.f32 %v2528_v36, %v2530_v46 }
 0x1a1   : > { %v944_v58 = vpop.f32.mrb[80].mxu0  ;;  %v1211_v54 = vpop.f32.mrb[80].mxu1 }
 0x1a2   : > { %v1330_v37 = vmax.f32 %v1304_v57, 0.0  ;;  %v1005_v8 = vmax.f32 %v2728_v38, %v944_v58  ;;  %v1996_v21 = vpop.f32.mrb[81].mxu0  ;;  %v2064_v2 = vpop.f32.mrb[81].mxu1 }
 0x1a3   : > { %v947_v5 = vpop.f32.mrb[82].mxu0  ;;  %v1214_v22 = vpop.f32.mrb[82].mxu1  ;;  %v2734_v2 = vmax.f32 %v2534_v60, %v2536_v0 }
 0x1a4   : > { %v1686_v23 = vpack.c.bf16 %v1330_v37, %v1329_v7  ;;  %v1272_v59 = vmax.f32 %v1005_v8, %v1211_v54  ;;  %v1006_v42 = vmax.f32 %v2729_v19, %v947_v5  ;;  %v1997_v43 = vpop.f32.mrb[83].mxu0  ;;  %v2065_v39 = vpop.f32.mrb[83].mxu1 }
 0x1a6   : > { %1723 = vst [vmem:[%s2590_s14 + $0x30] sm:$0xff] %v1686_v23   ;;  %v1305_v61 = vadd.f32 %v2576_v29, %v1272_v59  ;;  %v1273_v62 = vmax.f32 %v1006_v42, %v1214_v22  ;;  %v2735_v42 = vmax.f32 %v2540_v25, %v2542_v35 }
 0x1a8   : > { %v1306_v15 = vadd.f32 %v2576_v29, %v1273_v62  ;;  %v1331_v9 = vmax.f32 %v1305_v61, 0.0 }
 0x1a9   : > { %v952_v16 = vpop.f32.mrb[84].mxu0  ;;  %v1219_v63 = vpop.f32.mrb[84].mxu1 }
 0x1aa   : > { %v1332_v12 = vmax.f32 %v1306_v15, 0.0  ;;  %v1007_v27 = vmax.f32 %v2730_v13, %v952_v16  ;;  %v2000_v28 = vpop.f32.mrb[85].mxu0  ;;  %v2068_v26 = vpop.f32.mrb[85].mxu1 }
 0x1ab   : > { %v955_v30 = vpop.f32.mrb[86].mxu0  ;;  %v1222_v47 = vpop.f32.mrb[86].mxu1 }
 0x1ac   : > { %v1691_v48 = vpack.c.bf16 %v1332_v12, %v1331_v9  ;;  %v1274_v34 = vmax.f32 %v1007_v27, %v1219_v63  ;;  %v1008_v14 = vmax.f32 %v2731_v6, %v955_v30  ;;  %v2001_v44 = vpop.f32.mrb[87].mxu0  ;;  %v2069_v3 = vpop.f32.mrb[87].mxu1  ;;  %v2736_v12 = vmax.f32 %v2546_v45, %v2548_v56 }
 0x1ae   : > { %1724 = vst [vmem:[%s2590_s14 + $0x38] sm:$0xff] %v1691_v48   ;;  %v1307_v4 = vadd.f32 %v2576_v29, %v1274_v34  ;;  %v1275_v52 = vmax.f32 %v1008_v14, %v1222_v47  ;;  %v2737_v47 = vld [vmem:[#allocation2_spill] sm:$0xff] }
 0x1af   : > { %v2738_v48 = vmax.f32 %v2552_v20, %v2737_v47 }
 0x1b0   : > { %v1308_v40 = vadd.f32 %v2576_v29, %v1275_v52  ;;  %v1333_v32 = vmax.f32 %v1307_v4, 0.0 }
 0x1b1   : > { %v960_v41 = vpop.f32.mrb[88].mxu0  ;;  %v1227_v53 = vpop.f32.mrb[88].mxu1 }
 0x1b2   : > { %v1334_v33 = vmax.f32 %v1308_v40, 0.0  ;;  %v1009_v24 = vmax.f32 %v2732_v1, %v960_v41  ;;  %v2004_v50 = vpop.f32.mrb[89].mxu0  ;;  %v2072_v51 = vpop.f32.mrb[89].mxu1  ;;  %v2739_v41 = vld [vmem:[#allocation3_spill] sm:$0xff] }
 0x1b3   : > { %v963_v55 = vpop.f32.mrb[90].mxu0  ;;  %v1230_v17 = vpop.f32.mrb[90].mxu1 }
 0x1b4   : > { %v1696_v18 = vpack.c.bf16 %v1334_v33, %v1333_v32  ;;  %v1276_v49 = vmax.f32 %v1009_v24, %v1227_v53  ;;  %v1010_v57 = vmax.f32 %v2733_v31, %v963_v55  ;;  %v2005_v58 = vpop.f32.mrb[91].mxu0  ;;  %v2073_v54 = vpop.f32.mrb[91].mxu1  ;;  %v2740_v53 = vld [vmem:[#allocation4_spill] sm:$0xff] }
 0x1b5   : > { %v2741_v32 = vmax.f32 %v2739_v41, %v2740_v53 }
 0x1b6   : > { %1725 = vst [vmem:[%s2590_s14 + $0x40] sm:$0xff] %v1696_v18   ;;  %v1309_v7 = vadd.f32 %v2576_v29, %v1276_v49  ;;  %v1277_v37 = vmax.f32 %v1010_v57, %v1230_v17  ;;  %v2742_v17 = vld [vmem:[#allocation5_spill] sm:$0xff]  ;;  %v2743_v18 = vld [vmem:[#allocation6_spill] sm:$0xff] }
 0x1b7   : > { %v2744_v49 = vmax.f32 %v2742_v17, %v2743_v18 }
 0x1b8   : > { %v1310_v10 = vadd.f32 %v2576_v29, %v1277_v37  ;;  %v1335_v8 = vmax.f32 %v1309_v7, 0.0 }
 0x1b9   : > { %v968_v11 = vpop.f32.mrb[92].mxu0  ;;  %v1235_v38 = vpop.f32.mrb[92].mxu1 }
 0x1ba   : > { %v1336_v21 = vmax.f32 %v1310_v10, 0.0  ;;  %v1011_v5 = vmax.f32 %v2734_v2, %v968_v11  ;;  %v2008_v22 = vpop.f32.mrb[93].mxu0  ;;  %v2076_v36 = vpop.f32.mrb[93].mxu1 }
 0x1bb   : > { %v971_v46 = vpop.f32.mrb[94].mxu0  ;;  %v1238_v23 = vpop.f32.mrb[94].mxu1 }
 0x1bc   : > { %v1701_v59 = vpack.c.bf16 %v1336_v21, %v1335_v8  ;;  %v1278_v19 = vmax.f32 %v1011_v5, %v1235_v38  ;;  %v1012_v43 = vmax.f32 %v2735_v42, %v971_v46  ;;  %v2009_v39 = vpop.f32.mrb[95].mxu0  ;;  %v2077_v61 = vpop.f32.mrb[95].mxu1 }
 0x1be   : > { %1726 = vst [vmem:[%s2590_s14 + $0x48] sm:$0xff] %v1701_v59   ;;  %v1311_v62 = vadd.f32 %v2576_v29, %v1278_v19  ;;  %v1279_v15 = vmax.f32 %v1012_v43, %v1238_v23 }
 0x1c0   : > { %v1312_v60 = vadd.f32 %v2576_v29, %v1279_v15  ;;  %v1337_v63 = vmax.f32 %v1311_v62, 0.0 }
 0x1c1   : > { %v976_v0 = vpop.f32.mrb[96].mxu0  ;;  %v1243_v16 = vpop.f32.mrb[96].mxu1 }
 0x1c2   : > { %v1338_v9 = vmax.f32 %v1312_v60, 0.0  ;;  %v1013_v13 = vmax.f32 %v2736_v12, %v976_v0  ;;  %v2012_v27 = vpop.f32.mrb[97].mxu0  ;;  %v2080_v25 = vpop.f32.mrb[97].mxu1 }
 0x1c3   : > { %v979_v35 = vpop.f32.mrb[98].mxu0  ;;  %v1246_v28 = vpop.f32.mrb[98].mxu1 }
 0x1c4   : > { %v1706_v26 = vpack.c.bf16 %v1338_v9, %v1337_v63  ;;  %v1280_v30 = vmax.f32 %v1013_v13, %v1243_v16  ;;  %v1014_v34 = vmax.f32 %v2738_v48, %v979_v35  ;;  %v2013_v6 = vpop.f32.mrb[99].mxu0  ;;  %v2081_v14 = vpop.f32.mrb[99].mxu1 }
 0x1c6   : > { %1727 = vst [vmem:[%s2590_s14 + $0x50] sm:$0xff] %v1706_v26   ;;  %v1313_v44 = vadd.f32 %v2576_v29, %v1280_v30  ;;  %v1281_v3 = vmax.f32 %v1014_v34, %v1246_v28 }
 0x1c8   : > { %v1314_v45 = vadd.f32 %v2576_v29, %v1281_v3  ;;  %v1339_v52 = vmax.f32 %v1313_v44, 0.0 }
 0x1c9   : > { %v984_v56 = vpop.f32.mrb[100].mxu0  ;;  %v1251_v4 = vpop.f32.mrb[100].mxu1 }
 0x1ca   : > { %v1340_v40 = vmax.f32 %v1314_v45, 0.0  ;;  %v1015_v33 = vmax.f32 %v2741_v32, %v984_v56  ;;  %v2016_v1 = vpop.f32.mrb[101].mxu0  ;;  %v2084_v20 = vpop.f32.mrb[101].mxu1 }
 0x1cb   : > { %v987_v24 = vpop.f32.mrb[102].mxu0  ;;  %v1254_v50 = vpop.f32.mrb[102].mxu1 }
 0x1cc   : > { %v1711_v51 = vpack.c.bf16 %v1340_v40, %v1339_v52  ;;  %v1282_v55 = vmax.f32 %v1015_v33, %v1251_v4  ;;  %v1016_v31 = vmax.f32 %v2744_v49, %v987_v24  ;;  %v2017_v57 = vpop.f32.mrb[103].mxu0  ;;  %v2085_v58 = vpop.f32.mrb[103].mxu1 }
 0x1ce   : > { %1728 = vst [vmem:[%s2590_s14 + $0x58] sm:$0xff] %v1711_v51   ;;  %v1315_v54 = vadd.f32 %v2576_v29, %v1282_v55  ;;  %v1283_v7 = vmax.f32 %v1016_v31, %v1254_v50 }
 0x1d0   : > { %v1316_v37 = vadd.f32 %v2576_v29, %v1283_v7  ;;  %v1341_v10 = vmax.f32 %v1315_v54, 0.0 }
 0x1d2   : > { %v1342_v11 = vmax.f32 %v1316_v37, 0.0 }
 0x1d4   : > { %v1716_v38 = vpack.c.bf16 %v1342_v11, %v1341_v10 }
 0x1d6   : > { %1729 = vst [vmem:[%s2590_s14 + $0x60] sm:$0xff] %v1716_v38  }
 0x1d7 PF: > { %s13_s12 = sadd.s32 1, %s2162_s12  }
 0x1d8   : > { %p10_p4 = scmp.ge.s32.totalorder %s13_s12, 4  }
 0x1da   :  { %12 = sbr.rel (!%p10_p4) target bundleno = 1 (0x1), region = 62 }

// kernel: lenet10_forward.3
= control target key start
LH: loop header
LB: loop body
LE: loop exit
PB: predicated region body
PF: predicated region fallthrough
CT: control target
= control target key end

     0   :  { %v7385_v0 = vmov 0   ;;  %vm7387_vm0 = vmmov 0   ;;  %s9771_s1 = inlined_call_operand.vmem [shape: bf16[256,128], index: 1, kind: input, shape index: {}]   ;;  %s9772_s0 = inlined_call_operand.vmem [shape: bf16[25,16,1024], index: 0, kind: input, shape index: {}]   ;;  %s9773_s3 = inlined_call_operand.vmem [shape: bf16[25,128,128], index: 3, kind: input, shape index: {}]   ;;  %s9774_s2 = inlined_call_operand.vmem [shape: f32[1,128], index: 2, kind: input, shape index: {}]   ;;  %s9775_s5 = inlined_call_operand.vmem [shape: bf16[128,128], index: 5, kind: input, shape index: {}]   ;;  %s9776_s7 = inlined_call_operand.vmem [shape: bf16[128,128], index: 7, kind: input, shape index: {}]   ;;  %s9777_s4 = inlined_call_operand.vmem [shape: f32[1,128], index: 4, kind: input, shape index: {}]   ;;  %s9778_s6 = inlined_call_operand.vmem [shape: f32[1,128], index: 6, kind: input, shape index: {}]   ;;  %s9779_s8 = inlined_call_operand.vmem [shape: f32[1,128], index: 8, kind: input, shape index: {}]   ;;  %s9780_s9 = inlined_call_operand.vmem [shape: f32[16,128], index: 9, kind: output, shape index: {}]  }
   0x1   :  { %611 = vmatprep.subr.bf16.mxu0 %v7385_v0  ;;  %1094 = vmatprep.subr.bf16.mxu1 %v7385_v0  ;;  %v7443_v1 = vld [vmem:[%s9771_s1] sm:$0xff]   ;;  %v7450_v2 = vld [vmem:[%s9771_s1 + $0x8] sm:$0xff]   ;;  %v7459_v3 = vld [vmem:[%s9771_s1 + $0x10] sm:$0xff]  }
   0x2   :  { %612 = vmatpush1.bf16.msra.mxu0 %v7443_v1  ;;  %1095 = vmatpush1.bf16.msra.mxu1 %v7443_v1  ;;  %v7468_v4 = vld [vmem:[%s9771_s1 + $0x18] sm:$0xff]   ;;  %v7477_v5 = vld [vmem:[%s9771_s1 + $0x20] sm:$0xff]   ;;  %v7494_v8 = vld [vmem:[%s9772_s0 + $0x8] sm:$0xff] }
   0x3   :  { %613 = vmatprep.subr.bf16.mxu0 %v7385_v0  ;;  %1096 = vmatprep.subr.bf16.mxu1 %v7385_v0  ;;  %v7484_v6 = vld [vmem:[%s9772_s0] sm:$0xff]  ;;  %v7501_v10 = vld [vmem:[%s9772_s0 + $0x28] sm:$0xff]  ;;  %v7519_v13 = vld [vmem:[%s9771_s1 + $0x30] sm:$0xff]  }
   0x4   :  { %v7489_v7 = vld [vmem:[%s9772_s0 + $0x20] sm:$0xff]  ;;  %v7508_v11 = vld [vmem:[%s9771_s1 + $0x28] sm:$0xff]   ;;  %v5605_v12 = vcombine.high %v7494_v8, %v7501_v10  ;;  %v7528_v14 = vld [vmem:[%s9771_s1 + $0x38] sm:$0xff]   ;;  %v5604_v28 = vcombine.low %v7494_v8, %v7501_v10 }
   0x5   :  { %v5539_v9 = vcombine.high %v7484_v6, %v7489_v7  ;;  %v7537_v15 = vld [vmem:[%s9771_s1 + $0x40] sm:$0xff]   ;;  %v7546_v16 = vld [vmem:[%s9771_s1 + $0x48] sm:$0xff]   ;;  %v7555_v17 = vld [vmem:[%s9771_s1 + $0x50] sm:$0xff]   ;;  %v5538_v27 = vcombine.low %v7484_v6, %v7489_v7 }
   0x6   :  { %614 = vmatpush1.bf16.msra.mxu0 %v7450_v2  ;;  %1097 = vmatpush1.bf16.msra.mxu1 %v7450_v2  ;;  %v7564_v18 = vld [vmem:[%s9771_s1 + $0x58] sm:$0xff]   ;;  %v7573_v19 = vld [vmem:[%s9771_s1 + $0x60] sm:$0xff]   ;;  %v7582_v20 = vld [vmem:[%s9771_s1 + $0x68] sm:$0xff]  }
   0x7   :  { %615 = vmatprep.subr.bf16.mxu0 %v7385_v0  ;;  %1098 = vmatprep.subr.bf16.mxu1 %v7385_v0  ;;  %v7591_v21 = vld [vmem:[%s9771_s1 + $0x70] sm:$0xff]   ;;  %v7600_v22 = vld [vmem:[%s9771_s1 + $0x78] sm:$0xff]   ;;  %v41_v23 = vld [vmem:[%s9772_s0 + $0x40] sm:$0xff] }
   0x8   :  { %643 = vmatprep.mubr.bf16.mxu0 %v5539_v9  ;;  %1126 = vmatprep.mubr.bf16.mxu1 %v5605_v12  ;;  %v45_v24 = vld [vmem:[%s9772_s0 + $0x60] sm:$0xff]  ;;  %v42_v25 = vld [vmem:[%s9772_s0 + $0x48] sm:$0xff] }
   0x9   :  { %v46_v26 = vld [vmem:[%s9772_s0 + $0x68] sm:$0xff]  ;;  %v5541_v29 = vcombine.high %v41_v23, %v45_v24  ;;  %v49_v31 = vld [vmem:[%s9772_s0 + $0x80] sm:$0xff]  ;;  %v5540_v35 = vcombine.low %v41_v23, %v45_v24 }
   0xa   :  { %616 = vmatpush1.bf16.msra.mxu0 %v7459_v3  ;;  %1099 = vmatpush1.bf16.msra.mxu1 %v7459_v3  ;;  %v5607_v30 = vcombine.high %v42_v25, %v46_v26  ;;  %v53_v32 = vld [vmem:[%s9772_s0 + $0xa0] sm:$0xff]  ;;  %v50_v33 = vld [vmem:[%s9772_s0 + $0x88] sm:$0xff]  ;;  %v5606_v36 = vcombine.low %v42_v25, %v46_v26 }
   0xb   :  { %617 = vmatprep.subr.bf16.mxu0 %v7385_v0  ;;  %1100 = vmatprep.subr.bf16.mxu1 %v7385_v0  ;;  %v54_v34 = vld [vmem:[%s9772_s0 + $0xa8] sm:$0xff]  ;;  %v5543_v37 = vcombine.high %v49_v31, %v53_v32  ;;  %v57_v39 = vld [vmem:[%s9772_s0 + $0xc0] sm:$0xff]  ;;  %v5542_v43 = vcombine.low %v49_v31, %v53_v32 }
   0xc   :  { %v5609_v38 = vcombine.high %v50_v33, %v54_v34  ;;  %v61_v40 = vld [vmem:[%s9772_s0 + $0xe0] sm:$0xff]  ;;  %v58_v41 = vld [vmem:[%s9772_s0 + $0xc8] sm:$0xff]  ;;  %v5608_v44 = vcombine.low %v50_v33, %v54_v34 }
   0xd   :  { %v62_v42 = vld [vmem:[%s9772_s0 + $0xe8] sm:$0xff]  ;;  %v5545_v45 = vcombine.high %v57_v39, %v61_v40  ;;  %v65_v47 = vld [vmem:[%s9772_s0 + $0x100] sm:$0xff]  ;;  %v5544_v51 = vcombine.low %v57_v39, %v61_v40 }
   0xe   :  { %618 = vmatpush1.bf16.msra.mxu0 %v7468_v4  ;;  %1101 = vmatpush1.bf16.msra.mxu1 %v7468_v4  ;;  %v5611_v46 = vcombine.high %v58_v41, %v62_v42  ;;  %v69_v48 = vld [vmem:[%s9772_s0 + $0x120] sm:$0xff]  ;;  %v66_v49 = vld [vmem:[%s9772_s0 + $0x108] sm:$0xff]  ;;  %v5610_v52 = vcombine.low %v58_v41, %v62_v42 }
   0xf   :  { %619 = vmatprep.subr.bf16.mxu0 %v7385_v0  ;;  %1102 = vmatprep.subr.bf16.mxu1 %v7385_v0  ;;  %v70_v50 = vld [vmem:[%s9772_s0 + $0x128] sm:$0xff]  ;;  %v5547_v53 = vcombine.high %v65_v47, %v69_v48  ;;  %v73_v55 = vld [vmem:[%s9772_s0 + $0x140] sm:$0xff]  ;;  %v5546_v59 = vcombine.low %v65_v47, %v69_v48 }
  0x10   :  { %v5613_v54 = vcombine.high %v66_v49, %v70_v50  ;;  %v77_v56 = vld [vmem:[%s9772_s0 + $0x160] sm:$0xff]  ;;  %v74_v57 = vld [vmem:[%s9772_s0 + $0x148] sm:$0xff]  ;;  %v5612_v60 = vcombine.low %v66_v49, %v70_v50 }
  0x11   :  { %v78_v58 = vld [vmem:[%s9772_s0 + $0x168] sm:$0xff]  ;;  %v5549_v61 = vcombine.high %v73_v55, %v77_v56  ;;  %v81_v63 = vld [vmem:[%s9772_s0 + $0x180] sm:$0xff] }
  0x12   :  { %620 = vmatpush1.bf16.msra.mxu0 %v7477_v5  ;;  %1103 = vmatpush1.bf16.msra.mxu1 %v7477_v5  ;;  %v5615_v62 = vcombine.high %v74_v57, %v78_v58  ;;  %v89_v8 = vld [vmem:[%s9772_s0 + $0x1c0] sm:$0xff]  ;;  %v90_v10 = vld [vmem:[%s9772_s0 + $0x1c8] sm:$0xff] }
  0x13   :  { %621 = vmatprep.subr.bf16.mxu0 %v7385_v0  ;;  %1104 = vmatprep.subr.bf16.mxu1 %v7385_v0  ;;  %v93_v9 = vld [vmem:[%s9772_s0 + $0x1e0] sm:$0xff]  ;;  %v102_v23 = vld [vmem:[%s9772_s0 + $0x228] sm:$0xff] }
  0x14   :  { %v5552_v24 = vcombine.low %v89_v8, %v93_v9  ;;  %v114_v34 = vld [vmem:[%s9772_s0 + $0x288] sm:$0xff]  ;;  %v121_v39 = vld [vmem:[%s9772_s0 + $0x2c0] sm:$0xff] }
  0x15   :  { %v125_v40 = vld [vmem:[%s9772_s0 + $0x2e0] sm:$0xff]  ;;  %v122_v41 = vld [vmem:[%s9772_s0 + $0x2c8] sm:$0xff] }
  0x16   :  { %622 = vmatpush1.bf16.msra.mxu0 %v7508_v11  ;;  %1105 = vmatpush1.bf16.msra.mxu1 %v7508_v11  ;;  %v126_v42 = vld [vmem:[%s9772_s0 + $0x2e8] sm:$0xff]  ;;  %v129_v47 = vld [vmem:[%s9772_s0 + $0x300] sm:$0xff] }
  0x17   :  { %623 = vmatprep.subr.bf16.mxu0 %v7385_v0  ;;  %1106 = vmatprep.subr.bf16.mxu1 %v7385_v0  ;;  %v133_v48 = vld [vmem:[%s9772_s0 + $0x320] sm:$0xff]  ;;  %v130_v49 = vld [vmem:[%s9772_s0 + $0x308] sm:$0xff] }
  0x18   :  { %v134_v50 = vld [vmem:[%s9772_s0 + $0x328] sm:$0xff] }
  0x1a   :  { %624 = vmatpush1.bf16.msra.mxu0 %v7519_v13  ;;  %1107 = vmatpush1.bf16.msra.mxu1 %v7519_v13 }
  0x1b   :  { %625 = vmatprep.subr.bf16.mxu0 %v7385_v0  ;;  %1108 = vmatprep.subr.bf16.mxu1 %v7385_v0 }
  0x1e   :  { %626 = vmatpush1.bf16.msra.mxu0 %v7528_v14  ;;  %1109 = vmatpush1.bf16.msra.mxu1 %v7528_v14 }
  0x1f   :  { %627 = vmatprep.subr.bf16.mxu0 %v7385_v0  ;;  %1110 = vmatprep.subr.bf16.mxu1 %v7385_v0 }
  0x22   :  { %628 = vmatpush1.bf16.msra.mxu0 %v7537_v15  ;;  %1111 = vmatpush1.bf16.msra.mxu1 %v7537_v15 }
  0x23   :  { %629 = vmatprep.subr.bf16.mxu0 %v7385_v0  ;;  %1112 = vmatprep.subr.bf16.mxu1 %v7385_v0 }
  0x26   :  { %630 = vmatpush1.bf16.msra.mxu0 %v7546_v16  ;;  %1113 = vmatpush1.bf16.msra.mxu1 %v7546_v16 }
  0x27   :  { %631 = vmatprep.subr.bf16.mxu0 %v7385_v0  ;;  %1114 = vmatprep.subr.bf16.mxu1 %v7385_v0 }
  0x2a   :  { %632 = vmatpush1.bf16.msra.mxu0 %v7555_v17  ;;  %1115 = vmatpush1.bf16.msra.mxu1 %v7555_v17 }
  0x2b   :  { %633 = vmatprep.subr.bf16.mxu0 %v7385_v0  ;;  %1116 = vmatprep.subr.bf16.mxu1 %v7385_v0 }
  0x2e   :  { %634 = vmatpush1.bf16.msra.mxu0 %v7564_v18  ;;  %1117 = vmatpush1.bf16.msra.mxu1 %v7564_v18 }
  0x2f   :  { %635 = vmatprep.subr.bf16.mxu0 %v7385_v0  ;;  %1118 = vmatprep.subr.bf16.mxu1 %v7385_v0 }
  0x32   :  { %636 = vmatpush1.bf16.msra.mxu0 %v7573_v19  ;;  %1119 = vmatpush1.bf16.msra.mxu1 %v7573_v19 }
  0x33   :  { %637 = vmatprep.subr.bf16.mxu0 %v7385_v0  ;;  %1120 = vmatprep.subr.bf16.mxu1 %v7385_v0 }
  0x36   :  { %638 = vmatpush1.bf16.msra.mxu0 %v7582_v20  ;;  %1121 = vmatpush1.bf16.msra.mxu1 %v7582_v20 }
  0x37   :  { %639 = vmatprep.subr.bf16.mxu0 %v7385_v0  ;;  %1122 = vmatprep.subr.bf16.mxu1 %v7385_v0 }
  0x3a   :  { %640 = vmatpush1.bf16.msra.mxu0 %v7591_v21  ;;  %1123 = vmatpush1.bf16.msra.mxu1 %v7591_v21 }
  0x3b   :  { %641 = vmatprep.subr.bf16.mxu0 %v7385_v0  ;;  %1124 = vmatprep.subr.bf16.mxu1 %v7385_v0 }
  0x3e   :  { %642 = vmatpush1.bf16.msra.mxu0 %v7600_v22  ;;  %1125 = vmatpush1.bf16.msra.mxu1 %v7600_v22 }
  0x3f   :  { %1627 = vmatprep.subr.bf16.mxu0 %v7385_v0  ;;  %2160 = vmatprep.subr.bf16.mxu1 %v7385_v0 }
  0x41   :  { %644 = vmatmul.mubr.bf16.vlgmr.msra.gmra.mrb[0].mxu0 %v5538_v27  ;;  %1127 = vmatmul.mubr.bf16.vlgmr.msra.gmra.mrb[0].mxu1 %v5604_v28  ;;  %v109_v28 = vld [vmem:[%s9772_s0 + $0x260] sm:$0xff] }
  0x42   :  { %1628 = vmatpush1.bf16.msra.mxu0 %v7443_v1  ;;  %2161 = vmatpush1.bf16.msra.mxu1 %v7443_v1  ;;  %v85_v1 = vld [vmem:[%s9772_s0 + $0x1a0] sm:$0xff] }
  0x43   :  { %651 = vmatprep.mubr.bf16.mxu0 %v5541_v29  ;;  %1134 = vmatprep.mubr.bf16.mxu1 %v5607_v30  ;;  %v5551_v6 = vcombine.high %v81_v63, %v85_v1  ;;  %v5550_v12 = vcombine.low %v81_v63, %v85_v1  ;;  %v110_v29 = vld [vmem:[%s9772_s0 + $0x268] sm:$0xff]  ;;  %v145_v63 = vld [vmem:[%s9772_s0 + $0x380] sm:$0xff] }
  0x44   :  { %1629 = vmatprep.subr.bf16.mxu0 %v7385_v0  ;;  %2162 = vmatprep.subr.bf16.mxu1 %v7385_v0  ;;  %v149_v1 = vld [vmem:[%s9772_s0 + $0x3a0] sm:$0xff] }
  0x46   :  { %1630 = vmatpush1.bf16.msra.mxu0 %v7450_v2  ;;  %2163 = vmatpush1.bf16.msra.mxu1 %v7450_v2  ;;  %v82_v2 = vld [vmem:[%s9772_s0 + $0x188] sm:$0xff] }
  0x47   :  { %1631 = vmatprep.subr.bf16.mxu0 %v7385_v0  ;;  %2164 = vmatprep.subr.bf16.mxu1 %v7385_v0 }
  0x49   :  { %652 = vmatmul.mubr.bf16.gmra.mrb[4].mxu0 %v5540_v35  ;;  %1135 = vmatmul.mubr.bf16.gmra.mrb[4].mxu1 %v5606_v36 }
  0x4a   :  { %659 = vmatprep.mubr.bf16.mxu0 %v5543_v37  ;;  %1142 = vmatprep.mubr.bf16.mxu1 %v5609_v38 }
  0x4b   :  { %1632 = vmatpush1.bf16.msra.mxu0 %v7459_v3  ;;  %2165 = vmatpush1.bf16.msra.mxu1 %v7459_v3  ;;  %v86_v3 = vld [vmem:[%s9772_s0 + $0x1a8] sm:$0xff] }
  0x4c   :  { %1633 = vmatprep.subr.bf16.mxu0 %v7385_v0  ;;  %2166 = vmatprep.subr.bf16.mxu1 %v7385_v0  ;;  %v5617_v7 = vcombine.high %v82_v2, %v86_v3 }
  0x4f   :  { %1634 = vmatpush1.bf16.msra.mxu0 %v7468_v4  ;;  %2167 = vmatpush1.bf16.msra.mxu1 %v7468_v4  ;;  %v5548_v4 = vcombine.low %v73_v55, %v77_v56  ;;  %v137_v55 = vld [vmem:[%s9772_s0 + $0x340] sm:$0xff] }
  0x50   :  { %1635 = vmatprep.subr.bf16.mxu0 %v7385_v0  ;;  %2168 = vmatprep.subr.bf16.mxu1 %v7385_v0  ;;  %v141_v56 = vld [vmem:[%s9772_s0 + $0x360] sm:$0xff] }
  0x51   :  { %660 = vmatmul.mubr.bf16.gmra.mrb[8].mxu0 %v5542_v43  ;;  %1143 = vmatmul.mubr.bf16.gmra.mrb[8].mxu1 %v5608_v44 }
  0x52   :  { %667 = vmatprep.mubr.bf16.mxu0 %v5545_v45  ;;  %1150 = vmatprep.mubr.bf16.mxu1 %v5611_v46  ;;  %v5561_v45 = vcombine.high %v121_v39, %v125_v40  ;;  %v5627_v46 = vcombine.high %v122_v41, %v126_v42 }
  0x53   :  { %1636 = vmatpush1.bf16.msra.mxu0 %v7477_v5  ;;  %2169 = vmatpush1.bf16.msra.mxu1 %v7477_v5  ;;  %v5614_v5 = vcombine.low %v74_v57, %v78_v58  ;;  %v138_v57 = vld [vmem:[%s9772_s0 + $0x348] sm:$0xff] }
  0x54   :  { %1637 = vmatprep.subr.bf16.mxu0 %v7385_v0  ;;  %2170 = vmatprep.subr.bf16.mxu1 %v7385_v0  ;;  %v142_v58 = vld [vmem:[%s9772_s0 + $0x368] sm:$0xff] }
  0x57   :  { %1638 = vmatpush1.bf16.msra.mxu0 %v7508_v11  ;;  %2171 = vmatpush1.bf16.msra.mxu1 %v7508_v11  ;;  %v94_v11 = vld [vmem:[%s9772_s0 + $0x1e8] sm:$0xff] }
  0x58   :  { %1639 = vmatprep.subr.bf16.mxu0 %v7385_v0  ;;  %2172 = vmatprep.subr.bf16.mxu1 %v7385_v0  ;;  %v5618_v25 = vcombine.low %v90_v10, %v94_v11 }
  0x59   :  { %668 = vmatmul.mubr.bf16.gmra.mrb[12].mxu0 %v5544_v51  ;;  %1151 = vmatmul.mubr.bf16.gmra.mrb[12].mxu1 %v5610_v52  ;;  %v5560_v51 = vcombine.low %v121_v39, %v125_v40  ;;  %v5626_v52 = vcombine.low %v122_v41, %v126_v42  ;;  %v185_v40 = vld [vmem:[%s9772_s0 + $0x4c0] sm:$0xff]  ;;  %v186_v42 = vld [vmem:[%s9772_s0 + $0x4c8] sm:$0xff] }
  0x5a   :  { %675 = vmatprep.mubr.bf16.mxu0 %v5547_v53  ;;  %1158 = vmatprep.mubr.bf16.mxu1 %v5613_v54  ;;  %v5563_v53 = vcombine.high %v129_v47, %v133_v48  ;;  %v5629_v54 = vcombine.high %v130_v49, %v134_v50  ;;  %v189_v41 = vld [vmem:[%s9772_s0 + $0x4e0] sm:$0xff] }
  0x5b   :  { %1640 = vmatpush1.bf16.msra.mxu0 %v7519_v13  ;;  %2173 = vmatpush1.bf16.msra.mxu1 %v7519_v13  ;;  %v5616_v13 = vcombine.low %v82_v2, %v86_v3  ;;  %v146_v2 = vld [vmem:[%s9772_s0 + $0x388] sm:$0xff] }
  0x5c   :  { %1641 = vmatprep.subr.bf16.mxu0 %v7385_v0  ;;  %2174 = vmatprep.subr.bf16.mxu1 %v7385_v0  ;;  %v150_v3 = vld [vmem:[%s9772_s0 + $0x3a8] sm:$0xff] }
  0x5f   :  { %1642 = vmatpush1.bf16.msra.mxu0 %v7528_v14  ;;  %2175 = vmatpush1.bf16.msra.mxu1 %v7528_v14  ;;  %v5553_v14 = vcombine.high %v89_v8, %v93_v9  ;;  %v153_v8 = vld [vmem:[%s9772_s0 + $0x3c0] sm:$0xff] }
  0x60   :  { %1643 = vmatprep.subr.bf16.mxu0 %v7385_v0  ;;  %2176 = vmatprep.subr.bf16.mxu1 %v7385_v0  ;;  %v157_v9 = vld [vmem:[%s9772_s0 + $0x3e0] sm:$0xff] }
  0x61   :  { %676 = vmatmul.mubr.bf16.gmra.mrb[16].mxu0 %v5546_v59  ;;  %1159 = vmatmul.mubr.bf16.gmra.mrb[16].mxu1 %v5612_v60  ;;  %v5562_v59 = vcombine.low %v129_v47, %v133_v48  ;;  %v5628_v60 = vcombine.low %v130_v49, %v134_v50  ;;  %v193_v48 = vld [vmem:[%s9772_s0 + $0x500] sm:$0xff]  ;;  %v194_v50 = vld [vmem:[%s9772_s0 + $0x508] sm:$0xff] }
  0x62   :  { %683 = vmatprep.mubr.bf16.mxu0 %v5549_v61  ;;  %1166 = vmatprep.mubr.bf16.mxu1 %v5615_v62  ;;  %v5565_v61 = vcombine.high %v137_v55, %v141_v56  ;;  %v5631_v62 = vcombine.high %v138_v57, %v142_v58  ;;  %v197_v49 = vld [vmem:[%s9772_s0 + $0x520] sm:$0xff] }
  0x63   :  { %1644 = vmatpush1.bf16.msra.mxu0 %v7537_v15  ;;  %2177 = vmatpush1.bf16.msra.mxu1 %v7537_v15  ;;  %v5619_v15 = vcombine.high %v90_v10, %v94_v11  ;;  %v154_v10 = vld [vmem:[%s9772_s0 + $0x3c8] sm:$0xff] }
  0x64   :  { %1645 = vmatprep.subr.bf16.mxu0 %v7385_v0  ;;  %2178 = vmatprep.subr.bf16.mxu1 %v7385_v0  ;;  %v158_v11 = vld [vmem:[%s9772_s0 + $0x3e8] sm:$0xff] }
  0x67   :  { %1646 = vmatpush1.bf16.msra.mxu0 %v7546_v16  ;;  %2179 = vmatpush1.bf16.msra.mxu1 %v7546_v16  ;;  %v97_v16 = vld [vmem:[%s9772_s0 + $0x200] sm:$0xff] }
  0x68   :  { %1647 = vmatprep.subr.bf16.mxu0 %v7385_v0  ;;  %2180 = vmatprep.subr.bf16.mxu1 %v7385_v0 }
  0x69   :  { %684 = vmatmul.mubr.bf16.gmra.mrb[20].mxu0 %v5548_v4  ;;  %1167 = vmatmul.mubr.bf16.gmra.mrb[20].mxu1 %v5614_v5  ;;  %v5564_v4 = vcombine.low %v137_v55, %v141_v56  ;;  %v5630_v5 = vcombine.low %v138_v57, %v142_v58  ;;  %v201_v56 = vld [vmem:[%s9772_s0 + $0x540] sm:$0xff]  ;;  %v202_v58 = vld [vmem:[%s9772_s0 + $0x548] sm:$0xff] }
  0x6a   :  { %691 = vmatprep.mubr.bf16.mxu0 %v5551_v6  ;;  %1174 = vmatprep.mubr.bf16.mxu1 %v5617_v7  ;;  %v5567_v6 = vcombine.high %v145_v63, %v149_v1  ;;  %v5633_v7 = vcombine.high %v146_v2, %v150_v3  ;;  %v205_v57 = vld [vmem:[%s9772_s0 + $0x560] sm:$0xff] }
  0x6b   :  { %1648 = vmatpush1.bf16.msra.mxu0 %v7555_v17  ;;  %2181 = vmatpush1.bf16.msra.mxu1 %v7555_v17  ;;  %v101_v17 = vld [vmem:[%s9772_s0 + $0x220] sm:$0xff] }
  0x6c   :  { %1649 = vmatprep.subr.bf16.mxu0 %v7385_v0  ;;  %2182 = vmatprep.subr.bf16.mxu1 %v7385_v0  ;;  %v5555_v26 = vcombine.high %v97_v16, %v101_v17  ;;  %v5554_v30 = vcombine.low %v97_v16, %v101_v17  ;;  %v5635_v16 = vcombine.high %v154_v10, %v158_v11  ;;  %v161_v17 = vld [vmem:[%s9772_s0 + $0x400] sm:$0xff] }
  0x6f   :  { %1650 = vmatpush1.bf16.msra.mxu0 %v7564_v18  ;;  %2183 = vmatpush1.bf16.msra.mxu1 %v7564_v18  ;;  %v98_v18 = vld [vmem:[%s9772_s0 + $0x208] sm:$0xff] }
  0x70   :  { %1651 = vmatprep.subr.bf16.mxu0 %v7385_v0  ;;  %2184 = vmatprep.subr.bf16.mxu1 %v7385_v0  ;;  %v5621_v27 = vcombine.high %v98_v18, %v102_v23  ;;  %v5620_v31 = vcombine.low %v98_v18, %v102_v23  ;;  %v165_v18 = vld [vmem:[%s9772_s0 + $0x420] sm:$0xff]  ;;  %v162_v23 = vld [vmem:[%s9772_s0 + $0x408] sm:$0xff] }
  0x71   :  { %692 = vmatmul.mubr.bf16.gmra.mrb[24].mxu0 %v5550_v12  ;;  %1175 = vmatmul.mubr.bf16.gmra.mrb[24].mxu1 %v5616_v13  ;;  %v9781_v12 = vmov 0.0   ;;  %v5566_v13 = vcombine.low %v145_v63, %v149_v1  ;;  %v209_v1 = vld [vmem:[%s9772_s0 + $0x580] sm:$0xff] }
  0x72   :  { %699 = vmatprep.mubr.bf16.mxu0 %v5553_v14  ;;  %1182 = vmatprep.mubr.bf16.mxu1 %v5619_v15  ;;  %v5632_v14 = vcombine.low %v146_v2, %v150_v3  ;;  %v5569_v15 = vcombine.high %v153_v8, %v157_v9  ;;  %v213_v2 = vld [vmem:[%s9772_s0 + $0x5a0] sm:$0xff]  ;;  %v210_v3 = vld [vmem:[%s9772_s0 + $0x588] sm:$0xff] }
  0x73   :  { %1652 = vmatpush1.bf16.msra.mxu0 %v7573_v19  ;;  %2185 = vmatpush1.bf16.msra.mxu1 %v7573_v19  ;;  %v105_v19 = vld [vmem:[%s9772_s0 + $0x240] sm:$0xff] }
  0x74   :  { %1653 = vmatprep.subr.bf16.mxu0 %v7385_v0  ;;  %2186 = vmatprep.subr.bf16.mxu1 %v7385_v0  ;;  %v5557_v32 = vcombine.high %v105_v19, %v109_v28  ;;  %v5556_v35 = vcombine.low %v105_v19, %v109_v28  ;;  %v169_v28 = vld [vmem:[%s9772_s0 + $0x440] sm:$0xff] }
  0x77   :  { %1654 = vmatpush1.bf16.msra.mxu0 %v7582_v20  ;;  %2187 = vmatpush1.bf16.msra.mxu1 %v7582_v20  ;;  %v106_v20 = vld [vmem:[%s9772_s0 + $0x248] sm:$0xff] }
  0x78   :  { %1655 = vmatprep.subr.bf16.mxu0 %v7385_v0  ;;  %2188 = vmatprep.subr.bf16.mxu1 %v7385_v0  ;;  %v5623_v33 = vcombine.high %v106_v20, %v110_v29  ;;  %v5622_v36 = vcombine.low %v106_v20, %v110_v29  ;;  %v173_v20 = vld [vmem:[%s9772_s0 + $0x460] sm:$0xff]  ;;  %v170_v29 = vld [vmem:[%s9772_s0 + $0x448] sm:$0xff] }
  0x79   :  { %700 = vmatmul.mubr.bf16.gmra.mrb[28].mxu0 %v5552_v24  ;;  %1183 = vmatmul.mubr.bf16.gmra.mrb[28].mxu1 %v5618_v25  ;;  %v166_v24 = vld [vmem:[%s9772_s0 + $0x428] sm:$0xff]  ;;  %v5568_v25 = vcombine.low %v153_v8, %v157_v9  ;;  %v217_v9 = vld [vmem:[%s9772_s0 + $0x5c0] sm:$0xff] }
  0x7a   :  { %707 = vmatprep.mubr.bf16.mxu0 %v5555_v26  ;;  %1190 = vmatprep.mubr.bf16.mxu1 %v5621_v27  ;;  %v5634_v26 = vcombine.low %v154_v10, %v158_v11  ;;  %v5571_v27 = vcombine.high %v161_v17, %v165_v18  ;;  %v5637_v19 = vcombine.high %v162_v23, %v166_v24  ;;  %v221_v10 = vld [vmem:[%s9772_s0 + $0x5e0] sm:$0xff]  ;;  %v218_v11 = vld [vmem:[%s9772_s0 + $0x5c8] sm:$0xff] }
  0x7b   :  { %1656 = vmatpush1.bf16.msra.mxu0 %v7591_v21  ;;  %2189 = vmatpush1.bf16.msra.mxu1 %v7591_v21  ;;  %v113_v21 = vld [vmem:[%s9772_s0 + $0x280] sm:$0xff] }
  0x7c   :  { %1657 = vmatprep.subr.bf16.mxu0 %v7385_v0  ;;  %2190 = vmatprep.subr.bf16.mxu1 %v7385_v0  ;;  %v117_v0 = vld [vmem:[%s9772_s0 + $0x2a0] sm:$0xff] }
  0x7d   :  { %v5559_v37 = vcombine.high %v113_v21, %v117_v0  ;;  %v5558_v43 = vcombine.low %v113_v21, %v117_v0  ;;  %v177_v0 = vld [vmem:[%s9772_s0 + $0x480] sm:$0xff] }
  0x7f   :  { %1658 = vmatpush1.bf16.msra.mxu0 %v7600_v22  ;;  %2191 = vmatpush1.bf16.msra.mxu1 %v7600_v22  ;;  %v118_v22 = vld [vmem:[%s9772_s0 + $0x2a8] sm:$0xff] }
  0x80   :  { %v5625_v38 = vcombine.high %v114_v34, %v118_v22  ;;  %v5624_v44 = vcombine.low %v114_v34, %v118_v22  ;;  %6601 = vmatprep.subr.bf16.mxu0 %v9781_v12  ;;  %6621 = vmatprep.subr.bf16.mxu1 %v9781_v12  ;;  %v181_v34 = vld [vmem:[%s9772_s0 + $0x4a0] sm:$0xff]  ;;  %v178_v22 = vld [vmem:[%s9772_s0 + $0x488] sm:$0xff] }
  0x81   :  { %708 = vmatmul.mubr.bf16.gmra.mrb[32].mxu0 %v5554_v30  ;;  %1191 = vmatmul.mubr.bf16.gmra.mrb[32].mxu1 %v5620_v31  ;;  %v174_v30 = vld [vmem:[%s9772_s0 + $0x468] sm:$0xff]  ;;  %v5570_v31 = vcombine.low %v161_v17, %v165_v18  ;;  %v225_v18 = vld [vmem:[%s9772_s0 + $0x600] sm:$0xff] }
  0x82   :  { %715 = vmatprep.mubr.bf16.mxu0 %v5557_v32  ;;  %1198 = vmatprep.mubr.bf16.mxu1 %v5623_v33  ;;  %v5636_v32 = vcombine.low %v162_v23, %v166_v24  ;;  %v5573_v33 = vcombine.high %v169_v28, %v173_v20  ;;  %v5639_v21 = vcombine.high %v170_v29, %v174_v30  ;;  %v229_v23 = vld [vmem:[%s9772_s0 + $0x620] sm:$0xff]  ;;  %v226_v24 = vld [vmem:[%s9772_s0 + $0x608] sm:$0xff] }
  0x89   :  { %716 = vmatmul.mubr.bf16.gmra.mrb[36].mxu0 %v5556_v35  ;;  %1199 = vmatmul.mubr.bf16.gmra.mrb[36].mxu1 %v5622_v36  ;;  %v182_v35 = vld [vmem:[%s9772_s0 + $0x4a8] sm:$0xff]  ;;  %v5572_v36 = vcombine.low %v169_v28, %v173_v20  ;;  %v35_v20 = vld [vmem:[%s9772_s0 + $0x10] sm:$0xff] }
  0x8a   :  { %723 = vmatprep.mubr.bf16.mxu0 %v5559_v37  ;;  %1206 = vmatprep.mubr.bf16.mxu1 %v5625_v38  ;;  %v5638_v37 = vcombine.low %v170_v29, %v174_v30  ;;  %v5575_v38 = vcombine.high %v177_v0, %v181_v34  ;;  %v5641_v39 = vcombine.high %v178_v22, %v182_v35  ;;  %v39_v29 = vld [vmem:[%s9772_s0 + $0x30] sm:$0xff]  ;;  %v36_v30 = vld [vmem:[%s9772_s0 + $0x18] sm:$0xff] }
  0x91   :  { %724 = vmatmul.mubr.bf16.gmra.mrb[40].mxu0 %v5558_v43  ;;  %1207 = vmatmul.mubr.bf16.gmra.mrb[40].mxu1 %v5624_v44  ;;  %v190_v43 = vld [vmem:[%s9772_s0 + $0x4e8] sm:$0xff]  ;;  %v5574_v44 = vcombine.low %v177_v0, %v181_v34  ;;  %v43_v34 = vld [vmem:[%s9772_s0 + $0x50] sm:$0xff] }
  0x92   :  { %731 = vmatprep.mubr.bf16.mxu0 %v5561_v45  ;;  %1214 = vmatprep.mubr.bf16.mxu1 %v5627_v46  ;;  %v5640_v45 = vcombine.low %v178_v22, %v182_v35  ;;  %v5577_v46 = vcombine.high %v185_v40, %v189_v41  ;;  %v5643_v47 = vcombine.high %v186_v42, %v190_v43  ;;  %v47_v22 = vld [vmem:[%s9772_s0 + $0x70] sm:$0xff]  ;;  %v44_v35 = vld [vmem:[%s9772_s0 + $0x58] sm:$0xff] }
  0x99   :  { %732 = vmatmul.mubr.bf16.gmra.mrb[44].mxu0 %v5560_v51  ;;  %1215 = vmatmul.mubr.bf16.gmra.mrb[44].mxu1 %v5626_v52  ;;  %v198_v51 = vld [vmem:[%s9772_s0 + $0x528] sm:$0xff]  ;;  %v5576_v52 = vcombine.low %v185_v40, %v189_v41  ;;  %v7160_v41 = vld [vmem:[%s9773_s3 + $0x40] sm:$0xff]  }
  0x9a   :  { %739 = vmatprep.mubr.bf16.mxu0 %v5563_v53  ;;  %1222 = vmatprep.mubr.bf16.mxu1 %v5629_v54  ;;  %v5642_v53 = vcombine.low %v186_v42, %v190_v43  ;;  %v5579_v54 = vcombine.high %v193_v48, %v197_v49  ;;  %v5645_v55 = vcombine.high %v194_v50, %v198_v51  ;;  %v7162_v42 = vld [vmem:[%s9773_s3] sm:$0xff]   ;;  %v51_v43 = vld [vmem:[%s9772_s0 + $0x90] sm:$0xff] }
  0xa1   :  { %740 = vmatmul.mubr.bf16.gmra.mrb[48].mxu0 %v5562_v59  ;;  %1223 = vmatmul.mubr.bf16.gmra.mrb[48].mxu1 %v5628_v60  ;;  %v206_v59 = vld [vmem:[%s9772_s0 + $0x568] sm:$0xff]  ;;  %v5578_v60 = vcombine.low %v193_v48, %v197_v49  ;;  %v5656_v49 = vcombine.low %v43_v34, %v47_v22 }
  0xa2   :  { %747 = vmatprep.mubr.bf16.mxu0 %v5565_v61  ;;  %1230 = vmatprep.mubr.bf16.mxu1 %v5631_v62  ;;  %v5644_v61 = vcombine.low %v194_v50, %v198_v51  ;;  %v5581_v62 = vcombine.high %v201_v56, %v205_v57  ;;  %v5647_v63 = vcombine.high %v202_v58, %v206_v59  ;;  %v7164_v48 = vld [vmem:[%s9773_s3 + $0x8] sm:$0xff]  }
  0xa9   :  { %748 = vmatmul.mubr.bf16.gmra.mrb[52].mxu0 %v5564_v4  ;;  %1231 = vmatmul.mubr.bf16.gmra.mrb[52].mxu1 %v5630_v5  ;;  %v214_v4 = vld [vmem:[%s9772_s0 + $0x5a8] sm:$0xff]  ;;  %v5580_v5 = vcombine.low %v201_v56, %v205_v57  ;;  %v63_v56 = vld [vmem:[%s9772_s0 + $0xf0] sm:$0xff]  ;;  %v60_v57 = vld [vmem:[%s9772_s0 + $0xd8] sm:$0xff] }
  0xaa   :  { %755 = vmatprep.mubr.bf16.mxu0 %v5567_v6  ;;  %1238 = vmatprep.mubr.bf16.mxu1 %v5633_v7  ;;  %v5646_v6 = vcombine.low %v202_v58, %v206_v59  ;;  %v5583_v7 = vcombine.high %v209_v1, %v213_v2  ;;  %v5649_v8 = vcombine.high %v210_v3, %v214_v4  ;;  %v64_v58 = vld [vmem:[%s9772_s0 + $0xf8] sm:$0xff] }
  0xab   :  { %v7165_v59 = vld [vmem:[%s9773_s3 + $0x58] sm:$0xff]  }
  0xb1   :  { %756 = vmatmul.mubr.bf16.gmra.mrb[56].mxu0 %v5566_v13  ;;  %1239 = vmatmul.mubr.bf16.gmra.mrb[56].mxu1 %v5632_v14  ;;  %v222_v13 = vld [vmem:[%s9772_s0 + $0x5e8] sm:$0xff]  ;;  %v5582_v14 = vcombine.low %v209_v1, %v213_v2 }
  0xb2   :  { %763 = vmatprep.mubr.bf16.mxu0 %v5569_v15  ;;  %1246 = vmatprep.mubr.bf16.mxu1 %v5635_v16  ;;  %v5648_v15 = vcombine.low %v210_v3, %v214_v4  ;;  %v5585_v16 = vcombine.high %v217_v9, %v221_v10  ;;  %v5651_v17 = vcombine.high %v218_v11, %v222_v13 }
  0xb9   :  { %764 = vmatmul.mubr.bf16.gmra.mrb[60].mxu0 %v5568_v25  ;;  %1247 = vmatmul.mubr.bf16.gmra.mrb[60].mxu1 %v5634_v26  ;;  %v230_v25 = vld [vmem:[%s9772_s0 + $0x628] sm:$0xff]  ;;  %v5584_v26 = vcombine.low %v217_v9, %v221_v10 }
  0xba   :  { %771 = vmatprep.mubr.bf16.mxu0 %v5571_v27  ;;  %1254 = vmatprep.mubr.bf16.mxu1 %v5637_v19  ;;  %v5650_v27 = vcombine.low %v218_v11, %v222_v13  ;;  %v5587_v19 = vcombine.high %v225_v18, %v229_v23  ;;  %v5653_v28 = vcombine.high %v226_v24, %v230_v25  ;;  %v7167_v13 = vld [vmem:[%s9773_s3 + $0x60] sm:$0xff]  }
  0xc1   :  { %772 = vmatmul.mubr.bf16.gmra.mrb[64].mxu0 %v5570_v31  ;;  %1255 = vmatmul.mubr.bf16.gmra.mrb[64].mxu1 %v5636_v32  ;;  %v40_v31 = vld [vmem:[%s9772_s0 + $0x38] sm:$0xff]  ;;  %v5586_v32 = vcombine.low %v225_v18, %v229_v23 }
  0xc2   :  { %779 = vmatprep.mubr.bf16.mxu0 %v5573_v33  ;;  %1262 = vmatprep.mubr.bf16.mxu1 %v5639_v21  ;;  %v5652_v33 = vcombine.low %v226_v24, %v230_v25  ;;  %v5655_v21 = vcombine.high %v35_v20, %v39_v29  ;;  %v5705_v0 = vcombine.high %v36_v30, %v40_v31 }
  0xc9   :  { %780 = vmatmul.mubr.bf16.gmra.mrb[68].mxu0 %v5572_v36  ;;  %1263 = vmatmul.mubr.bf16.gmra.mrb[68].mxu1 %v5638_v37  ;;  %v48_v36 = vld [vmem:[%s9772_s0 + $0x78] sm:$0xff]  ;;  %v5654_v37 = vcombine.low %v35_v20, %v39_v29 }
  0xca   :  { %787 = vmatprep.mubr.bf16.mxu0 %v5575_v38  ;;  %1270 = vmatprep.mubr.bf16.mxu1 %v5641_v39  ;;  %v5704_v38 = vcombine.low %v36_v30, %v40_v31  ;;  %v5657_v39 = vcombine.high %v43_v34, %v47_v22  ;;  %v5707_v40 = vcombine.high %v44_v35, %v48_v36  ;;  %v76_v34 = vld [vmem:[%s9772_s0 + $0x158] sm:$0xff] }
  0xcb   :  { %v5706_v50 = vcombine.low %v44_v35, %v48_v36  ;;  %v80_v22 = vld [vmem:[%s9772_s0 + $0x178] sm:$0xff] }
  0xd1   :  { %788 = vmatmul.mubr.bf16.gmra.mrb[72].mxu0 %v5574_v44  ;;  %1271 = vmatmul.mubr.bf16.gmra.mrb[72].mxu1 %v5640_v45  ;;  %v55_v44 = vld [vmem:[%s9772_s0 + $0xb0] sm:$0xff]  ;;  %v52_v45 = vld [vmem:[%s9772_s0 + $0x98] sm:$0xff] }
  0xd2   :  { %795 = vmatprep.mubr.bf16.mxu0 %v5577_v46  ;;  %1278 = vmatprep.mubr.bf16.mxu1 %v5643_v47  ;;  %v56_v46 = vld [vmem:[%s9772_s0 + $0xb8] sm:$0xff]  ;;  %v7161_v47 = vld [vmem:[%s9773_s3 + $0x48] sm:$0xff]   ;;  %v5659_v51 = vcombine.high %v51_v43, %v55_v44  ;;  %v5658_v3 = vcombine.low %v51_v43, %v55_v44 }
  0xd3   :  { %v5708_v4 = vcombine.low %v52_v45, %v56_v46 }
  0xd9   :  { %796 = vmatmul.mubr.bf16.gmra.mrb[76].mxu0 %v5576_v52  ;;  %1279 = vmatmul.mubr.bf16.gmra.mrb[76].mxu1 %v5642_v53  ;;  %v5709_v52 = vcombine.high %v52_v45, %v56_v46  ;;  %v7163_v53 = vld [vmem:[%s9773_s3 + $0x50] sm:$0xff]   ;;  %v5715_v45 = vcombine.high %v76_v34, %v80_v22 }
  0xda   :  { %803 = vmatprep.mubr.bf16.mxu0 %v5579_v54  ;;  %1286 = vmatprep.mubr.bf16.mxu1 %v5645_v55  ;;  %v7166_v54 = vld [vmem:[%s9773_s3 + $0x10] sm:$0xff]  }
  0xdb   :  { %v59_v55 = vld [vmem:[%s9772_s0 + $0xd0] sm:$0xff] }
  0xe1   :  { %804 = vmatmul.mubr.bf16.gmra.mrb[80].mxu0 %v5578_v60  ;;  %1287 = vmatmul.mubr.bf16.gmra.mrb[80].mxu1 %v5644_v61  ;;  %v7168_v60 = vld [vmem:[%s9773_s3 + $0x18] sm:$0xff]  }
  0xe2   :  { %811 = vmatprep.mubr.bf16.mxu0 %v5581_v62  ;;  %1294 = vmatprep.mubr.bf16.mxu1 %v5647_v63 }
  0xe9   :  { %812 = vmatmul.mubr.bf16.gmra.mrb[84].mxu0 %v5580_v5  ;;  %1295 = vmatmul.mubr.bf16.gmra.mrb[84].mxu1 %v5646_v6 }
  0xea   :  { %819 = vmatprep.mubr.bf16.mxu0 %v5583_v7  ;;  %1302 = vmatprep.mubr.bf16.mxu1 %v5649_v8  ;;  %v5661_v7 = vcombine.high %v59_v55, %v63_v56  ;;  %v5711_v8 = vcombine.high %v60_v57, %v64_v58 }
  0xf1   :  { %820 = vmatmul.mubr.bf16.gmra.mrb[88].mxu0 %v5582_v14  ;;  %1303 = vmatmul.mubr.bf16.gmra.mrb[88].mxu1 %v5648_v15  ;;  %v67_v14 = vld [vmem:[%s9772_s0 + $0x110] sm:$0xff] }
  0xf2   :  { %827 = vmatprep.mubr.bf16.mxu0 %v5585_v16  ;;  %1310 = vmatprep.mubr.bf16.mxu1 %v5651_v17  ;;  %v71_v15 = vld [vmem:[%s9772_s0 + $0x130] sm:$0xff]  ;;  %v68_v16 = vld [vmem:[%s9772_s0 + $0x118] sm:$0xff] }
  0xf3   :  { %v72_v17 = vld [vmem:[%s9772_s0 + $0x138] sm:$0xff]  ;;  %v5663_v29 = vcombine.high %v67_v14, %v71_v15 }
  0xf4   :  { %v5713_v30 = vcombine.high %v68_v16, %v72_v17 }
  0xf9   :  { %828 = vmatmul.mubr.bf16.gmra.mrb[92].mxu0 %v5584_v26  ;;  %1311 = vmatmul.mubr.bf16.gmra.mrb[92].mxu1 %v5650_v27  ;;  %v5660_v27 = vcombine.low %v59_v55, %v63_v56 }
  0xfa   :  { %835 = vmatprep.mubr.bf16.mxu0 %v5587_v19  ;;  %1318 = vmatprep.mubr.bf16.mxu1 %v5653_v28  ;;  %v5710_v19 = vcombine.low %v60_v57, %v64_v58 }
 0x101   :  { %836 = vmatmul.mubr.bf16.gmra.mrb[96].mxu0 %v5586_v32  ;;  %1319 = vmatmul.mubr.bf16.gmra.mrb[96].mxu1 %v5652_v33 }
 0x102   :  { %1659 = vmatprep.mubr.bf16.mxu0 %v5655_v21  ;;  %2192 = vmatprep.mubr.bf16.mxu1 %v5705_v0  ;;  %v75_v21 = vld [vmem:[%s9772_s0 + $0x150] sm:$0xff] }
 0x103   :  { %v79_v0 = vld [vmem:[%s9772_s0 + $0x170] sm:$0xff] }
 0x104   :  { %v5665_v44 = vcombine.high %v75_v21, %v79_v0 }
 0x109   :  { %1660 = vmatmul.mubr.bf16.vlgmr.msra.gmra.mrb[100].mxu0 %v5654_v37  ;;  %2193 = vmatmul.mubr.bf16.vlgmr.msra.gmra.mrb[100].mxu1 %v5704_v38  ;;  %v7174_v37 = vld [vmem:[%s9773_s3 + $0x30] sm:$0xff]  }
 0x10a   :  { %1667 = vmatprep.mubr.bf16.mxu0 %v5657_v39  ;;  %2200 = vmatprep.mubr.bf16.mxu1 %v5707_v40  ;;  %v5662_v40 = vcombine.low %v67_v14, %v71_v15  ;;  %v95_v14 = vld [vmem:[%s9772_s0 + $0x1f0] sm:$0xff]  ;;  %v92_v15 = vld [vmem:[%s9772_s0 + $0x1d8] sm:$0xff] }
 0x10b   :  { %6602 = vmatpush3.bf16.msra.mxu0 %v7160_v41  ;;  %6622 = vmatpush3.bf16.msra.mxu1 %v7162_v42  ;;  %v5712_v41 = vcombine.low %v68_v16, %v72_v17  ;;  %v96_v16 = vld [vmem:[%s9772_s0 + $0x1f8] sm:$0xff] }
 0x10c   :  { %6603 = vmatprep.subr.bf16.mxu0 %v9781_v12  ;;  %6623 = vmatprep.subr.bf16.mxu1 %v9781_v12 }
 0x10f   :  { %6604 = vmatpush3.bf16.msra.mxu0 %v7161_v47  ;;  %6624 = vmatpush3.bf16.msra.mxu1 %v7164_v48 }
 0x110   :  { %6605 = vmatprep.subr.bf16.mxu0 %v9781_v12  ;;  %6625 = vmatprep.subr.bf16.mxu1 %v9781_v12 }
 0x111   :  { %1668 = vmatmul.mubr.bf16.gmra.mrb[104].mxu0 %v5656_v49  ;;  %2201 = vmatmul.mubr.bf16.gmra.mrb[104].mxu1 %v5706_v50  ;;  %v7169_v49 = vld [vmem:[%s9773_s3 + $0x68] sm:$0xff]   ;;  %v83_v50 = vld [vmem:[%s9772_s0 + $0x190] sm:$0xff] }
 0x112   :  { %1675 = vmatprep.mubr.bf16.mxu0 %v5659_v51  ;;  %2208 = vmatprep.mubr.bf16.mxu1 %v5709_v52  ;;  %v87_v51 = vld [vmem:[%s9772_s0 + $0x1b0] sm:$0xff]  ;;  %v84_v52 = vld [vmem:[%s9772_s0 + $0x198] sm:$0xff] }
 0x113   :  { %6606 = vmatpush3.bf16.msra.mxu0 %v7163_v53  ;;  %6626 = vmatpush3.bf16.msra.mxu1 %v7166_v54  ;;  %v88_v53 = vld [vmem:[%s9772_s0 + $0x1b8] sm:$0xff] }
 0x114   :  { %v8040_v61 = vpop.f32.mrb[0].mxu0  ;;  %v8042_v62 = vpop.f32.mrb[0].mxu1  ;;  %6607 = vmatprep.subr.bf16.mxu0 %v9781_v12  ;;  %6627 = vmatprep.subr.bf16.mxu1 %v9781_v12 }
 0x115   :  { %v647_v1 = vpop.f32.mrb[1].mxu0  ;;  %v1130_v2 = vpop.f32.mrb[1].mxu1 }
 0x116   :  { %v8048_v5 = vpop.f32.mrb[2].mxu0  ;;  %v8050_v6 = vpop.f32.mrb[2].mxu1  ;;  %v7170_v1 = vld [vmem:[%s9773_s3 + $0x20] sm:$0xff]  }
 0x117   :  { %v650_v10 = vpop.f32.mrb[3].mxu0  ;;  %v1133_v11 = vpop.f32.mrb[3].mxu1  ;;  %6608 = vmatpush3.bf16.msra.mxu0 %v7165_v59  ;;  %6628 = vmatpush3.bf16.msra.mxu1 %v7168_v60  ;;  %v5664_v59 = vcombine.low %v75_v21, %v79_v0  ;;  %v5714_v60 = vcombine.low %v76_v34, %v80_v22  ;;  %v5719_v0 = vcombine.high %v92_v15, %v96_v16 }
 0x118   :  { %6609 = vmatprep.subr.bf16.mxu0 %v9781_v12  ;;  %6629 = vmatprep.subr.bf16.mxu1 %v9781_v12 }
 0x119   :  { %1676 = vmatmul.mubr.bf16.gmra.mrb[108].mxu0 %v5658_v3  ;;  %2209 = vmatmul.mubr.bf16.gmra.mrb[108].mxu1 %v5708_v4  ;;  %v5667_v4 = vcombine.high %v83_v50, %v87_v51 }
 0x11a   :  { %1683 = vmatprep.mubr.bf16.mxu0 %v5661_v7  ;;  %2216 = vmatprep.mubr.bf16.mxu1 %v5711_v8  ;;  %v5717_v7 = vcombine.high %v84_v52, %v88_v53 }
 0x11b   :  { %6610 = vmatpush3.bf16.msra.mxu0 %v7167_v13  ;;  %6630 = vmatpush3.bf16.msra.mxu1 %v7170_v1  ;;  %v91_v13 = vld [vmem:[%s9772_s0 + $0x1d0] sm:$0xff] }
 0x11c   :  { %v8071_v18 = vpop.f32.mrb[4].mxu0  ;;  %v8073_v23 = vpop.f32.mrb[4].mxu1  ;;  %6611 = vmatprep.subr.bf16.mxu0 %v9781_v12  ;;  %6631 = vmatprep.subr.bf16.mxu1 %v9781_v12  ;;  %v5669_v21 = vcombine.high %v91_v13, %v95_v14 }
 0x11d   :  { %v655_v25 = vpop.f32.mrb[5].mxu0  ;;  %v1138_v26 = vpop.f32.mrb[5].mxu1 }
 0x11e   :  { %v8078_v28 = vpop.f32.mrb[6].mxu0  ;;  %v8080_v20 = vpop.f32.mrb[6].mxu1  ;;  %v7173_v26 = vld [vmem:[%s9773_s3 + $0x78] sm:$0xff]  }
 0x11f   :  { %v658_v32 = vpop.f32.mrb[7].mxu0  ;;  %v1141_v33 = vpop.f32.mrb[7].mxu1  ;;  %6612 = vmatpush3.bf16.msra.mxu0 %v7169_v49 }
 0x120   :  { %6613 = vmatprep.subr.bf16.mxu0 %v9781_v12 }
 0x121   :  { %1684 = vmatmul.mubr.bf16.gmra.mrb[112].mxu0 %v5660_v27  ;;  %2217 = vmatmul.mubr.bf16.gmra.mrb[112].mxu1 %v5710_v19 }
 0x122   :  { %1691 = vmatprep.mubr.bf16.mxu0 %v5663_v29  ;;  %2224 = vmatprep.mubr.bf16.mxu1 %v5713_v30  ;;  %v5666_v29 = vcombine.low %v83_v50, %v87_v51  ;;  %v5716_v30 = vcombine.low %v84_v52, %v88_v53  ;;  %v5668_v51 = vcombine.low %v91_v13, %v95_v14  ;;  %v108_v13 = vld [vmem:[%s9772_s0 + $0x258] sm:$0xff] }
 0x123   :  { %v5718_v52 = vcombine.low %v92_v15, %v96_v16  ;;  %v112_v14 = vld [vmem:[%s9772_s0 + $0x278] sm:$0xff] }
 0x124   :  { %v8096_v35 = vpop.f32.mrb[8].mxu0  ;;  %v8098_v36 = vpop.f32.mrb[8].mxu1 }
 0x125   :  { %v663_v38 = vpop.f32.mrb[9].mxu0  ;;  %v1146_v39 = vpop.f32.mrb[9].mxu1 }
 0x126   :  { %v8102_v42 = vpop.f32.mrb[10].mxu0  ;;  %v8104_v43 = vpop.f32.mrb[10].mxu1  ;;  %v99_v39 = vld [vmem:[%s9772_s0 + $0x210] sm:$0xff] }
 0x127   :  { %v666_v47 = vpop.f32.mrb[11].mxu0  ;;  %v1149_v48 = vpop.f32.mrb[11].mxu1 }
 0x129   :  { %1692 = vmatmul.mubr.bf16.gmra.mrb[116].mxu0 %v5662_v40  ;;  %2225 = vmatmul.mubr.bf16.gmra.mrb[116].mxu1 %v5712_v41  ;;  %v103_v40 = vld [vmem:[%s9772_s0 + $0x230] sm:$0xff]  ;;  %v100_v41 = vld [vmem:[%s9772_s0 + $0x218] sm:$0xff] }
 0x12a   :  { %1699 = vmatprep.mubr.bf16.mxu0 %v5665_v44  ;;  %2232 = vmatprep.mubr.bf16.mxu1 %v5715_v45  ;;  %v104_v44 = vld [vmem:[%s9772_s0 + $0x238] sm:$0xff] }
 0x12c   :  { %v8123_v54 = vpop.f32.mrb[12].mxu0  ;;  %v8125_v55 = vpop.f32.mrb[12].mxu1 }
 0x12d   :  { %v671_v57 = vpop.f32.mrb[13].mxu0  ;;  %v1154_v58 = vpop.f32.mrb[13].mxu1 }
 0x12e   :  { %v8133_v2 = vpop.f32.mrb[14].mxu0  ;;  %v8135_v3 = vpop.f32.mrb[14].mxu1  ;;  %v5671_v58 = vcombine.high %v99_v39, %v103_v40 }
 0x12f   :  { %v674_v10 = vpop.f32.mrb[15].mxu0  ;;  %v1157_v11 = vpop.f32.mrb[15].mxu1 }
 0x130   :  { %v107_v10 = vld [vmem:[%s9772_s0 + $0x250] sm:$0xff] }
 0x131   :  { %1700 = vmatmul.mubr.bf16.gmra.mrb[120].mxu0 %v5664_v59  ;;  %2233 = vmatmul.mubr.bf16.gmra.mrb[120].mxu1 %v5714_v60  ;;  %v5721_v59 = vcombine.high %v100_v41, %v104_v44  ;;  %v111_v11 = vld [vmem:[%s9772_s0 + $0x270] sm:$0xff] }
 0x132   :  { %1707 = vmatprep.mubr.bf16.mxu0 %v5667_v4  ;;  %2240 = vmatprep.mubr.bf16.mxu1 %v5717_v7  ;;  %v7171_v7 = vld [vmem:[%s9773_s3 + $0x70] sm:$0xff]  }
 0x133   :  { %6614 = vmatpush3.bf16.msra.mxu0 %v7171_v7 }
 0x134   :  { %v8152_v17 = vpop.f32.mrb[16].mxu0  ;;  %v8154_v25 = vpop.f32.mrb[16].mxu1  ;;  %6615 = vmatprep.subr.bf16.mxu0 %v9781_v12 }
 0x135   :  { %v679_v27 = vpop.f32.mrb[17].mxu0  ;;  %v1162_v19 = vpop.f32.mrb[17].mxu1 }
 0x136   :  { %v8158_v32 = vpop.f32.mrb[18].mxu0  ;;  %v8160_v33 = vpop.f32.mrb[18].mxu1 }
 0x137   :  { %v682_v22 = vpop.f32.mrb[19].mxu0  ;;  %v1165_v38 = vpop.f32.mrb[19].mxu1  ;;  %6616 = vmatpush3.bf16.msra.mxu0 %v7173_v26 }
 0x138   :  { %6641 = vmatprep.subr.bf16.mxu0 %v9781_v12 }
 0x139   :  { %1708 = vmatmul.mubr.bf16.gmra.mrb[124].mxu0 %v5666_v29  ;;  %2241 = vmatmul.mubr.bf16.gmra.mrb[124].mxu1 %v5716_v30  ;;  %v5670_v30 = vcombine.low %v99_v39, %v103_v40  ;;  %v115_v39 = vld [vmem:[%s9772_s0 + $0x290] sm:$0xff] }
 0x13a   :  { %1715 = vmatprep.mubr.bf16.mxu0 %v5669_v21  ;;  %2248 = vmatprep.mubr.bf16.mxu1 %v5719_v0  ;;  %v5720_v21 = vcombine.low %v100_v41, %v104_v44  ;;  %v7172_v0 = vld [vmem:[%s9773_s3 + $0x28] sm:$0xff]   ;;  %v119_v40 = vld [vmem:[%s9772_s0 + $0x2b0] sm:$0xff]  ;;  %v116_v41 = vld [vmem:[%s9772_s0 + $0x298] sm:$0xff] }
 0x13b   :  { %6632 = vmatpush3.bf16.msra.mxu1 %v7172_v0  ;;  %v120_v44 = vld [vmem:[%s9772_s0 + $0x2b8] sm:$0xff] }
 0x13c   :  { %v8176_v45 = vpop.f32.mrb[20].mxu0  ;;  %v8178_v47 = vpop.f32.mrb[20].mxu1  ;;  %6633 = vmatprep.subr.bf16.mxu1 %v9781_v12 }
 0x13d   :  { %v687_v49 = vpop.f32.mrb[21].mxu0  ;;  %v1170_v50 = vpop.f32.mrb[21].mxu1 }
 0x13e   :  { %v8182_v53 = vpop.f32.mrb[22].mxu0  ;;  %v8184_v57 = vpop.f32.mrb[22].mxu1  ;;  %v5673_v49 = vcombine.high %v107_v10, %v111_v11  ;;  %v5723_v50 = vcombine.high %v108_v13, %v112_v14 }
 0x13f   :  { %v690_v1 = vpop.f32.mrb[23].mxu0  ;;  %v1173_v4 = vpop.f32.mrb[23].mxu1  ;;  %6634 = vmatpush3.bf16.msra.mxu1 %v7174_v37 }
 0x140   :  { %6635 = vmatprep.subr.bf16.mxu1 %v9781_v12 }
 0x141   :  { %1716 = vmatmul.mubr.bf16.gmra.mrb[128].mxu0 %v5668_v51  ;;  %2249 = vmatmul.mubr.bf16.gmra.mrb[128].mxu1 %v5718_v52 }
 0x142   :  { %1723 = vmatprep.mubr.bf16.mxu0 %v5671_v58  ;;  %2256 = vmatprep.mubr.bf16.mxu1 %v5721_v59 }
 0x144   :  { %v8203_v15 = vpop.f32.mrb[24].mxu0  ;;  %v8205_v16 = vpop.f32.mrb[24].mxu1 }
 0x145   :  { %v695_v19 = vpop.f32.mrb[25].mxu0  ;;  %v1178_v29 = vpop.f32.mrb[25].mxu1 }
 0x146   :  { %v8213_v22 = vpop.f32.mrb[26].mxu0  ;;  %v8215_v38 = vpop.f32.mrb[26].mxu1  ;;  %v5672_v29 = vcombine.low %v107_v10, %v111_v11  ;;  %v127_v10 = vld [vmem:[%s9772_s0 + $0x2f0] sm:$0xff]  ;;  %v124_v11 = vld [vmem:[%s9772_s0 + $0x2d8] sm:$0xff] }
 0x147   :  { %v698_v52 = vpop.f32.mrb[27].mxu0  ;;  %v1181_v58 = vpop.f32.mrb[27].mxu1 }
 0x148   :  { %v5675_v52 = vcombine.high %v115_v39, %v119_v40  ;;  %v5725_v58 = vcombine.high %v116_v41, %v120_v44 }
 0x149   :  { %1724 = vmatmul.mubr.bf16.gmra.mrb[132].mxu0 %v5670_v30  ;;  %2257 = vmatmul.mubr.bf16.gmra.mrb[132].mxu1 %v5720_v21  ;;  %v5722_v30 = vcombine.low %v108_v13, %v112_v14  ;;  %v128_v13 = vld [vmem:[%s9772_s0 + $0x2f8] sm:$0xff] }
 0x14a   :  { %1731 = vmatprep.mubr.bf16.mxu0 %v5673_v49  ;;  %2264 = vmatprep.mubr.bf16.mxu1 %v5723_v50  ;;  %v5724_v49 = vcombine.low %v116_v41, %v120_v44  ;;  %v5727_v48 = vcombine.high %v124_v11, %v128_v13  ;;  %v136_v41 = vld [vmem:[%s9772_s0 + $0x338] sm:$0xff] }
 0x14c   :  { %v8232_v59 = vpop.f32.mrb[28].mxu0  ;;  %v8234_v1 = vpop.f32.mrb[28].mxu1 }
 0x14d   :  { %v703_v7 = vpop.f32.mrb[29].mxu0  ;;  %v1186_v19 = vpop.f32.mrb[29].mxu1 }
 0x14e   :  { %v8238_v21 = vpop.f32.mrb[30].mxu0  ;;  %v8240_v0 = vpop.f32.mrb[30].mxu1  ;;  %v123_v7 = vld [vmem:[%s9772_s0 + $0x2d0] sm:$0xff] }
 0x14f   :  { %v706_v50 = vpop.f32.mrb[31].mxu0  ;;  %v1189_v51 = vpop.f32.mrb[31].mxu1  ;;  %v5677_v60 = vcombine.high %v123_v7, %v127_v10 }
 0x150   :  { %v5674_v50 = vcombine.low %v115_v39, %v119_v40  ;;  %v131_v39 = vld [vmem:[%s9772_s0 + $0x310] sm:$0xff] }
 0x151   :  { %1732 = vmatmul.mubr.bf16.gmra.mrb[136].mxu0 %v5672_v29  ;;  %2265 = vmatmul.mubr.bf16.gmra.mrb[136].mxu1 %v5722_v30  ;;  %v135_v40 = vld [vmem:[%s9772_s0 + $0x330] sm:$0xff] }
 0x152   :  { %1739 = vmatprep.mubr.bf16.mxu0 %v5675_v52  ;;  %2272 = vmatprep.mubr.bf16.mxu1 %v5725_v58  ;;  %v5679_v19 = vcombine.high %v131_v39, %v135_v40 }
 0x154   :  { %v8256_v14 = vpop.f32.mrb[32].mxu0  ;;  %v8258_v51 = vpop.f32.mrb[32].mxu1 }
 0x155   :  { %v711_v29 = vpop.f32.mrb[33].mxu0  ;;  %v1194_v30 = vpop.f32.mrb[33].mxu1 }
 0x156   :  { %v8262_v4 = vpop.f32.mrb[34].mxu0  ;;  %v8264_v27 = vpop.f32.mrb[34].mxu1  ;;  %v5676_v30 = vcombine.low %v123_v7, %v127_v10  ;;  %v139_v7 = vld [vmem:[%s9772_s0 + $0x350] sm:$0xff] }
 0x157   :  { %v714_v58 = vpop.f32.mrb[35].mxu0  ;;  %v1197_v34 = vpop.f32.mrb[35].mxu1  ;;  %v143_v10 = vld [vmem:[%s9772_s0 + $0x370] sm:$0xff] }
 0x158   :  { %v132_v34 = vld [vmem:[%s9772_s0 + $0x318] sm:$0xff] }
 0x159   :  { %1740 = vmatmul.mubr.bf16.gmra.mrb[140].mxu0 %v5674_v50  ;;  %2273 = vmatmul.mubr.bf16.gmra.mrb[140].mxu1 %v5724_v49  ;;  %v5726_v50 = vcombine.low %v124_v11, %v128_v13  ;;  %v5729_v8 = vcombine.high %v132_v34, %v136_v41 }
 0x15a   :  { %1747 = vmatprep.mubr.bf16.mxu0 %v5677_v60  ;;  %2280 = vmatprep.mubr.bf16.mxu1 %v5727_v48  ;;  %v5681_v60 = vcombine.high %v139_v7, %v143_v10 }
 0x15c   :  { %v8283_v44 = vpop.f32.mrb[36].mxu0  ;;  %v8285_v48 = vpop.f32.mrb[36].mxu1 }
 0x15d   :  { %v719_v49 = vpop.f32.mrb[37].mxu0  ;;  %v1202_v29 = vpop.f32.mrb[37].mxu1 }
 0x15e   :  { %v8290_v58 = vpop.f32.mrb[38].mxu0  ;;  %v8292_v52 = vpop.f32.mrb[38].mxu1 }
 0x15f   :  { %v722_v56 = vpop.f32.mrb[39].mxu0  ;;  %v1205_v46 = vpop.f32.mrb[39].mxu1 }
 0x160   :  { %v140_v46 = vld [vmem:[%s9772_s0 + $0x358] sm:$0xff] }
 0x161   :  { %1748 = vmatmul.mubr.bf16.gmra.mrb[144].mxu0 %v5676_v30  ;;  %2281 = vmatmul.mubr.bf16.gmra.mrb[144].mxu1 %v5726_v50  ;;  %v144_v56 = vld [vmem:[%s9772_s0 + $0x378] sm:$0xff]  ;;  %v5678_v30 = vcombine.low %v131_v39, %v135_v40  ;;  %v5728_v50 = vcombine.low %v132_v34, %v136_v41  ;;  %v147_v39 = vld [vmem:[%s9772_s0 + $0x390] sm:$0xff] }
 0x162   :  { %1755 = vmatprep.mubr.bf16.mxu0 %v5679_v19  ;;  %2288 = vmatprep.mubr.bf16.mxu1 %v5729_v8  ;;  %v7175_v8 = vld [vmem:[%s9773_s3 + $0x38] sm:$0xff]   ;;  %v5731_v31 = vcombine.high %v140_v46, %v144_v56  ;;  %v151_v40 = vld [vmem:[%s9772_s0 + $0x3b0] sm:$0xff] }
 0x163   :  { %6636 = vmatpush3.bf16.msra.mxu1 %v7175_v8  ;;  %v5683_v24 = vcombine.high %v147_v39, %v151_v40 }
 0x164   :  { %v8314_v11 = vpop.f32.mrb[40].mxu0  ;;  %v8316_v13 = vpop.f32.mrb[40].mxu1  ;;  %6661 = vmatprep.subr.bf16.mxu1 %v9781_v12 }
 0x165   :  { %v727_v49 = vpop.f32.mrb[41].mxu0  ;;  %v1210_v29 = vpop.f32.mrb[41].mxu1 }
 0x166   :  { %v8321_v26 = vpop.f32.mrb[42].mxu0  ;;  %v8323_v37 = vpop.f32.mrb[42].mxu1  ;;  %v5680_v49 = vcombine.low %v139_v7, %v143_v10  ;;  %v5730_v29 = vcombine.low %v140_v46, %v144_v56  ;;  %v155_v7 = vld [vmem:[%s9772_s0 + $0x3d0] sm:$0xff]  ;;  %v156_v46 = vld [vmem:[%s9772_s0 + $0x3d8] sm:$0xff] }
 0x167   :  { %9838 = vst [vmem:[#allocation2_spill] sm:$0xff] %v8321_v26  ;;  %9839 = vst [vmem:[#allocation3_spill] sm:$0xff] %v8323_v37  ;;  %v730_v9 = vpop.f32.mrb[43].mxu0  ;;  %v1213_v63 = vpop.f32.mrb[43].mxu1  ;;  %v159_v10 = vld [vmem:[%s9772_s0 + $0x3f0] sm:$0xff] }
 0x168   :  { %v148_v9 = vld [vmem:[%s9772_s0 + $0x398] sm:$0xff] }
 0x169   :  { %1756 = vmatmul.mubr.bf16.gmra.mrb[148].mxu0 %v5678_v30  ;;  %2289 = vmatmul.mubr.bf16.gmra.mrb[148].mxu1 %v5728_v50  ;;  %v152_v63 = vld [vmem:[%s9772_s0 + $0x3b8] sm:$0xff] }
 0x16a   :  { %1763 = vmatprep.mubr.bf16.mxu0 %v5681_v60  ;;  %2296 = vmatprep.mubr.bf16.mxu1 %v5731_v31  ;;  %v5733_v19 = vcombine.high %v148_v9, %v152_v63  ;;  %v5685_v31 = vcombine.high %v155_v7, %v159_v10 }
 0x16c   :  { %v8340_v34 = vpop.f32.mrb[44].mxu0  ;;  %v8342_v41 = vpop.f32.mrb[44].mxu1 }
 0x16d   :  { %9840 = vst [vmem:[#allocation4_spill] sm:$0xff] %v8340_v34  ;;  %9841 = vst [vmem:[#allocation5_spill] sm:$0xff] %v8342_v41  ;;  %v735_v60 = vpop.f32.mrb[45].mxu0  ;;  %v1218_v8 = vpop.f32.mrb[45].mxu1 }
 0x16e   :  { %v8346_v30 = vpop.f32.mrb[46].mxu0  ;;  %v8348_v50 = vpop.f32.mrb[46].mxu1  ;;  %v5682_v8 = vcombine.low %v147_v39, %v151_v40  ;;  %v163_v39 = vld [vmem:[%s9772_s0 + $0x410] sm:$0xff] }
 0x16f   :  { %9842 = vst [vmem:[#allocation6_spill] sm:$0xff] %v8346_v30  ;;  %9843 = vst [vmem:[#allocation7_spill] sm:$0xff] %v8348_v50  ;;  %v738_v37 = vpop.f32.mrb[47].mxu0  ;;  %v1221_v26 = vpop.f32.mrb[47].mxu1  ;;  %v167_v40 = vld [vmem:[%s9772_s0 + $0x430] sm:$0xff] }
 0x170   :  { %v160_v26 = vld [vmem:[%s9772_s0 + $0x3f8] sm:$0xff] }
 0x171   :  { %1764 = vmatmul.mubr.bf16.gmra.mrb[152].mxu0 %v5680_v49  ;;  %2297 = vmatmul.mubr.bf16.gmra.mrb[152].mxu1 %v5730_v29  ;;  %v5732_v49 = vcombine.low %v148_v9, %v152_v63  ;;  %v5735_v50 = vcombine.high %v156_v46, %v160_v26  ;;  %v164_v9 = vld [vmem:[%s9772_s0 + $0x418] sm:$0xff] }
 0x172   :  { %1771 = vmatprep.mubr.bf16.mxu0 %v5683_v24  ;;  %2304 = vmatprep.mubr.bf16.mxu1 %v5733_v19  ;;  %v168_v63 = vld [vmem:[%s9772_s0 + $0x438] sm:$0xff]  ;;  %v5687_v19 = vcombine.high %v163_v39, %v167_v40 }
 0x174   :  { %v8364_v56 = vpop.f32.mrb[48].mxu0  ;;  %v8366_v24 = vpop.f32.mrb[48].mxu1 }
 0x175   :  { %9844 = vst [vmem:[#allocation8_spill] sm:$0xff] %v8364_v56  ;;  %9845 = vst [vmem:[#allocation9_spill] sm:$0xff] %v8366_v24  ;;  %v743_v37 = vpop.f32.mrb[49].mxu0  ;;  %v1226_v60 = vpop.f32.mrb[49].mxu1 }
 0x176   :  { %v8370_v29 = vpop.f32.mrb[50].mxu0  ;;  %v8372_v12 = vpop.f32.mrb[50].mxu1  ;;  %v5684_v60 = vcombine.low %v155_v7, %v159_v10  ;;  %v171_v7 = vld [vmem:[%s9772_s0 + $0x450] sm:$0xff] }
 0x177   :  { %9846 = vst [vmem:[#allocation10_spill] sm:$0xff] %v8370_v29  ;;  %9847 = vst [vmem:[#allocation11_spill] sm:$0xff] %v8372_v12  ;;  %v746_v41 = vpop.f32.mrb[51].mxu0  ;;  %v1229_v34 = vpop.f32.mrb[51].mxu1  ;;  %v5737_v12 = vcombine.high %v164_v9, %v168_v63  ;;  %v175_v10 = vld [vmem:[%s9772_s0 + $0x470] sm:$0xff] }
 0x179   :  { %1772 = vmatmul.mubr.bf16.gmra.mrb[156].mxu0 %v5682_v8  ;;  %2305 = vmatmul.mubr.bf16.gmra.mrb[156].mxu1 %v5732_v49  ;;  %v5734_v8 = vcombine.low %v156_v46, %v160_v26  ;;  %v172_v46 = vld [vmem:[%s9772_s0 + $0x458] sm:$0xff] }
 0x17a   :  { %1779 = vmatprep.mubr.bf16.mxu0 %v5685_v31  ;;  %2312 = vmatprep.mubr.bf16.mxu1 %v5735_v50  ;;  %v176_v26 = vld [vmem:[%s9772_s0 + $0x478] sm:$0xff]  ;;  %v5689_v31 = vcombine.high %v171_v7, %v175_v10 }
 0x17c   :  { %v8388_v34 = vpop.f32.mrb[52].mxu0  ;;  %v8390_v41 = vpop.f32.mrb[52].mxu1 }
 0x17d   :  { %9848 = vst [vmem:[#allocation12_spill] sm:$0xff] %v8388_v34  ;;  %9849 = vst [vmem:[#allocation13_spill] sm:$0xff] %v8390_v41  ;;  %v751_v50 = vpop.f32.mrb[53].mxu0  ;;  %v1234_v37 = vpop.f32.mrb[53].mxu1 }
 0x17e   :  { %v8394_v49 = vpop.f32.mrb[54].mxu0  ;;  %v8396_v30 = vpop.f32.mrb[54].mxu1  ;;  %v5686_v37 = vcombine.low %v163_v39, %v167_v40  ;;  %v179_v39 = vld [vmem:[%s9772_s0 + $0x490] sm:$0xff] }
 0x17f   :  { %9850 = vst [vmem:[#allocation14_spill] sm:$0xff] %v8394_v49  ;;  %9851 = vst [vmem:[#allocation15_spill] sm:$0xff] %v8396_v30  ;;  %v754_v24 = vpop.f32.mrb[55].mxu0  ;;  %v1237_v56 = vpop.f32.mrb[55].mxu1  ;;  %v5739_v30 = vcombine.high %v172_v46, %v176_v26  ;;  %v183_v40 = vld [vmem:[%s9772_s0 + $0x4b0] sm:$0xff] }
 0x181   :  { %1780 = vmatmul.mubr.bf16.gmra.mrb[160].mxu0 %v5684_v60  ;;  %2313 = vmatmul.mubr.bf16.gmra.mrb[160].mxu1 %v5734_v8  ;;  %v5736_v60 = vcombine.low %v164_v9, %v168_v63  ;;  %v180_v9 = vld [vmem:[%s9772_s0 + $0x498] sm:$0xff] }
 0x182   :  { %1787 = vmatprep.mubr.bf16.mxu0 %v5687_v19  ;;  %2320 = vmatprep.mubr.bf16.mxu1 %v5737_v12  ;;  %v184_v63 = vld [vmem:[%s9772_s0 + $0x4b8] sm:$0xff]  ;;  %v5691_v12 = vcombine.high %v179_v39, %v183_v40 }
 0x184   :  { %v8412_v56 = vpop.f32.mrb[56].mxu0  ;;  %v8414_v24 = vpop.f32.mrb[56].mxu1 }
 0x185   :  { %9852 = vst [vmem:[#allocation16_spill] sm:$0xff] %v8412_v56  ;;  %9853 = vst [vmem:[#allocation17_spill] sm:$0xff] %v8414_v24  ;;  %v759_v19 = vpop.f32.mrb[57].mxu0  ;;  %v1242_v50 = vpop.f32.mrb[57].mxu1 }
 0x186   :  { %v8418_v8 = vpop.f32.mrb[58].mxu0  ;;  %v8420_v29 = vpop.f32.mrb[58].mxu1  ;;  %v5688_v50 = vcombine.low %v171_v7, %v175_v10  ;;  %v187_v7 = vld [vmem:[%s9772_s0 + $0x4d0] sm:$0xff] }
 0x187   :  { %9854 = vst [vmem:[#allocation18_spill] sm:$0xff] %v8418_v8  ;;  %9855 = vst [vmem:[#allocation19_spill] sm:$0xff] %v8420_v29  ;;  %v762_v41 = vpop.f32.mrb[59].mxu0  ;;  %v1245_v34 = vpop.f32.mrb[59].mxu1  ;;  %v5741_v29 = vcombine.high %v180_v9, %v184_v63  ;;  %v191_v10 = vld [vmem:[%s9772_s0 + $0x4f0] sm:$0xff] }
 0x189   :  { %1788 = vmatmul.mubr.bf16.gmra.mrb[164].mxu0 %v5686_v37  ;;  %2321 = vmatmul.mubr.bf16.gmra.mrb[164].mxu1 %v5736_v60  ;;  %v5738_v37 = vcombine.low %v172_v46, %v176_v26  ;;  %v188_v46 = vld [vmem:[%s9772_s0 + $0x4d8] sm:$0xff] }
 0x18a   :  { %1795 = vmatprep.mubr.bf16.mxu0 %v5689_v31  ;;  %2328 = vmatprep.mubr.bf16.mxu1 %v5739_v30  ;;  %v192_v26 = vld [vmem:[%s9772_s0 + $0x4f8] sm:$0xff]  ;;  %v5693_v30 = vcombine.high %v187_v7, %v191_v10 }
 0x18c   :  { %v8436_v34 = vpop.f32.mrb[60].mxu0  ;;  %v8438_v41 = vpop.f32.mrb[60].mxu1 }
 0x18d   :  { %9856 = vst [vmem:[#allocation20_spill] sm:$0xff] %v8436_v34  ;;  %9857 = vst [vmem:[#allocation21_spill] sm:$0xff] %v8438_v41  ;;  %v767_v31 = vpop.f32.mrb[61].mxu0  ;;  %v1250_v19 = vpop.f32.mrb[61].mxu1 }
 0x18e   :  { %v8442_v60 = vpop.f32.mrb[62].mxu0  ;;  %v8444_v49 = vpop.f32.mrb[62].mxu1  ;;  %v5690_v19 = vcombine.low %v179_v39, %v183_v40  ;;  %v195_v39 = vld [vmem:[%s9772_s0 + $0x510] sm:$0xff] }
 0x18f   :  { %9858 = vst [vmem:[#allocation22_spill] sm:$0xff] %v8442_v60  ;;  %9859 = vst [vmem:[#allocation23_spill] sm:$0xff] %v8444_v49  ;;  %v770_v24 = vpop.f32.mrb[63].mxu0  ;;  %v1253_v56 = vpop.f32.mrb[63].mxu1  ;;  %v5743_v49 = vcombine.high %v188_v46, %v192_v26  ;;  %v199_v40 = vld [vmem:[%s9772_s0 + $0x530] sm:$0xff] }
 0x191   :  { %1796 = vmatmul.mubr.bf16.gmra.mrb[168].mxu0 %v5688_v50  ;;  %2329 = vmatmul.mubr.bf16.gmra.mrb[168].mxu1 %v5738_v37  ;;  %v5740_v50 = vcombine.low %v180_v9, %v184_v63  ;;  %v196_v9 = vld [vmem:[%s9772_s0 + $0x518] sm:$0xff] }
 0x192   :  { %1803 = vmatprep.mubr.bf16.mxu0 %v5691_v12  ;;  %2336 = vmatprep.mubr.bf16.mxu1 %v5741_v29  ;;  %v200_v63 = vld [vmem:[%s9772_s0 + $0x538] sm:$0xff]  ;;  %v5695_v29 = vcombine.high %v195_v39, %v199_v40 }
 0x194   :  { %v8460_v56 = vpop.f32.mrb[64].mxu0  ;;  %v8462_v24 = vpop.f32.mrb[64].mxu1 }
 0x195   :  { %9860 = vst [vmem:[#allocation24_spill] sm:$0xff] %v8460_v56  ;;  %9861 = vst [vmem:[#allocation25_spill] sm:$0xff] %v8462_v24  ;;  %v775_v12 = vpop.f32.mrb[65].mxu0  ;;  %v1258_v31 = vpop.f32.mrb[65].mxu1 }
 0x196   :  { %v8466_v37 = vpop.f32.mrb[66].mxu0  ;;  %v8468_v8 = vpop.f32.mrb[66].mxu1  ;;  %v5692_v31 = vcombine.low %v187_v7, %v191_v10  ;;  %v203_v7 = vld [vmem:[%s9772_s0 + $0x550] sm:$0xff] }
 0x197   :  { %9862 = vst [vmem:[#allocation26_spill] sm:$0xff] %v8466_v37  ;;  %9863 = vst [vmem:[#allocation27_spill] sm:$0xff] %v8468_v8  ;;  %v778_v41 = vpop.f32.mrb[67].mxu0  ;;  %v1261_v34 = vpop.f32.mrb[67].mxu1  ;;  %v5745_v8 = vcombine.high %v196_v9, %v200_v63  ;;  %v207_v10 = vld [vmem:[%s9772_s0 + $0x570] sm:$0xff] }
 0x199   :  { %1804 = vmatmul.mubr.bf16.gmra.mrb[172].mxu0 %v5690_v19  ;;  %2337 = vmatmul.mubr.bf16.gmra.mrb[172].mxu1 %v5740_v50  ;;  %v5742_v19 = vcombine.low %v188_v46, %v192_v26  ;;  %v204_v46 = vld [vmem:[%s9772_s0 + $0x558] sm:$0xff] }
 0x19a   :  { %1811 = vmatprep.mubr.bf16.mxu0 %v5693_v30  ;;  %2344 = vmatprep.mubr.bf16.mxu1 %v5743_v49  ;;  %v208_v26 = vld [vmem:[%s9772_s0 + $0x578] sm:$0xff]  ;;  %v5697_v49 = vcombine.high %v203_v7, %v207_v10 }
 0x19c   :  { %v8484_v34 = vpop.f32.mrb[68].mxu0  ;;  %v8486_v41 = vpop.f32.mrb[68].mxu1 }
 0x19d   :  { %9864 = vst [vmem:[#allocation28_spill] sm:$0xff] %v8484_v34  ;;  %9865 = vst [vmem:[#allocation29_spill] sm:$0xff] %v8486_v41  ;;  %v783_v30 = vpop.f32.mrb[69].mxu0  ;;  %v1266_v12 = vpop.f32.mrb[69].mxu1 }
 0x19e   :  { %v8490_v50 = vpop.f32.mrb[70].mxu0  ;;  %v8492_v60 = vpop.f32.mrb[70].mxu1  ;;  %v5694_v12 = vcombine.low %v195_v39, %v199_v40  ;;  %v211_v39 = vld [vmem:[%s9772_s0 + $0x590] sm:$0xff] }
 0x19f   :  { %9866 = vst [vmem:[#allocation30_spill] sm:$0xff] %v8490_v50  ;;  %9867 = vst [vmem:[#allocation31_spill] sm:$0xff] %v8492_v60  ;;  %v786_v24 = vpop.f32.mrb[71].mxu0  ;;  %v1269_v56 = vpop.f32.mrb[71].mxu1  ;;  %v5747_v60 = vcombine.high %v204_v46, %v208_v26  ;;  %v215_v40 = vld [vmem:[%s9772_s0 + $0x5b0] sm:$0xff] }
 0x1a1   :  { %1812 = vmatmul.mubr.bf16.gmra.mrb[176].mxu0 %v5692_v31  ;;  %2345 = vmatmul.mubr.bf16.gmra.mrb[176].mxu1 %v5742_v19  ;;  %v5744_v31 = vcombine.low %v196_v9, %v200_v63  ;;  %v212_v9 = vld [vmem:[%s9772_s0 + $0x598] sm:$0xff] }
 0x1a2   :  { %1819 = vmatprep.mubr.bf16.mxu0 %v5695_v29  ;;  %2352 = vmatprep.mubr.bf16.mxu1 %v5745_v8  ;;  %v216_v63 = vld [vmem:[%s9772_s0 + $0x5b8] sm:$0xff]  ;;  %v5699_v8 = vcombine.high %v211_v39, %v215_v40 }
 0x1a4   :  { %v8508_v56 = vpop.f32.mrb[72].mxu0  ;;  %v8510_v24 = vpop.f32.mrb[72].mxu1 }
 0x1a5   :  { %9868 = vst [vmem:[#allocation32_spill] sm:$0xff] %v8508_v56  ;;  %9869 = vst [vmem:[#allocation33_spill] sm:$0xff] %v8510_v24  ;;  %v791_v29 = vpop.f32.mrb[73].mxu0  ;;  %v1274_v30 = vpop.f32.mrb[73].mxu1 }
 0x1a6   :  { %v8514_v19 = vpop.f32.mrb[74].mxu0  ;;  %v8516_v37 = vpop.f32.mrb[74].mxu1  ;;  %v5696_v30 = vcombine.low %v203_v7, %v207_v10  ;;  %v219_v7 = vld [vmem:[%s9772_s0 + $0x5d0] sm:$0xff] }
 0x1a7   :  { %9870 = vst [vmem:[#allocation34_spill] sm:$0xff] %v8514_v19  ;;  %9871 = vst [vmem:[#allocation35_spill] sm:$0xff] %v8516_v37  ;;  %v794_v41 = vpop.f32.mrb[75].mxu0  ;;  %v1277_v34 = vpop.f32.mrb[75].mxu1  ;;  %v5749_v37 = vcombine.high %v212_v9, %v216_v63  ;;  %v223_v10 = vld [vmem:[%s9772_s0 + $0x5f0] sm:$0xff] }
 0x1a9   :  { %1820 = vmatmul.mubr.bf16.gmra.mrb[180].mxu0 %v5694_v12  ;;  %2353 = vmatmul.mubr.bf16.gmra.mrb[180].mxu1 %v5744_v31  ;;  %v5746_v12 = vcombine.low %v204_v46, %v208_v26  ;;  %v220_v46 = vld [vmem:[%s9772_s0 + $0x5d8] sm:$0xff] }
 0x1aa   :  { %1827 = vmatprep.mubr.bf16.mxu0 %v5697_v49  ;;  %2360 = vmatprep.mubr.bf16.mxu1 %v5747_v60  ;;  %v224_v26 = vld [vmem:[%s9772_s0 + $0x5f8] sm:$0xff]  ;;  %v5701_v60 = vcombine.high %v219_v7, %v223_v10 }
 0x1ac   :  { %v8532_v34 = vpop.f32.mrb[76].mxu0  ;;  %v8534_v41 = vpop.f32.mrb[76].mxu1 }
 0x1ad   :  { %9872 = vst [vmem:[#allocation36_spill] sm:$0xff] %v8532_v34  ;;  %9873 = vst [vmem:[#allocation37_spill] sm:$0xff] %v8534_v41  ;;  %v799_v49 = vpop.f32.mrb[77].mxu0  ;;  %v1282_v29 = vpop.f32.mrb[77].mxu1 }
 0x1ae   :  { %v8538_v31 = vpop.f32.mrb[78].mxu0  ;;  %v8540_v50 = vpop.f32.mrb[78].mxu1  ;;  %v5698_v29 = vcombine.low %v211_v39, %v215_v40  ;;  %v227_v39 = vld [vmem:[%s9772_s0 + $0x610] sm:$0xff] }
 0x1af   :  { %9874 = vst [vmem:[#allocation38_spill] sm:$0xff] %v8538_v31  ;;  %9875 = vst [vmem:[#allocation39_spill] sm:$0xff] %v8540_v50  ;;  %v802_v24 = vpop.f32.mrb[79].mxu0  ;;  %v1285_v56 = vpop.f32.mrb[79].mxu1  ;;  %v5751_v50 = vcombine.high %v220_v46, %v224_v26  ;;  %v231_v40 = vld [vmem:[%s9772_s0 + $0x630] sm:$0xff] }
 0x1b1   :  { %1828 = vmatmul.mubr.bf16.gmra.mrb[184].mxu0 %v5696_v30  ;;  %2361 = vmatmul.mubr.bf16.gmra.mrb[184].mxu1 %v5746_v12  ;;  %v5748_v30 = vcombine.low %v212_v9, %v216_v63  ;;  %v228_v9 = vld [vmem:[%s9772_s0 + $0x618] sm:$0xff] }
 0x1b2   :  { %1835 = vmatprep.mubr.bf16.mxu0 %v5699_v8  ;;  %2368 = vmatprep.mubr.bf16.mxu1 %v5749_v37  ;;  %v232_v63 = vld [vmem:[%s9772_s0 + $0x638] sm:$0xff]  ;;  %v5703_v37 = vcombine.high %v227_v39, %v231_v40 }
 0x1b4   :  { %v8556_v56 = vpop.f32.mrb[80].mxu0  ;;  %v8558_v24 = vpop.f32.mrb[80].mxu1 }
 0x1b5   :  { %9876 = vst [vmem:[#allocation40_spill] sm:$0xff] %v8556_v56  ;;  %9877 = vst [vmem:[#allocation41_spill] sm:$0xff] %v8558_v24  ;;  %v807_v8 = vpop.f32.mrb[81].mxu0  ;;  %v1290_v49 = vpop.f32.mrb[81].mxu1 }
 0x1b6   :  { %v8562_v12 = vpop.f32.mrb[82].mxu0  ;;  %v8564_v19 = vpop.f32.mrb[82].mxu1  ;;  %v5700_v49 = vcombine.low %v219_v7, %v223_v10 }
 0x1b7   :  { %9878 = vst [vmem:[#allocation42_spill] sm:$0xff] %v8562_v12  ;;  %9879 = vst [vmem:[#allocation43_spill] sm:$0xff] %v8564_v19  ;;  %v810_v41 = vpop.f32.mrb[83].mxu0  ;;  %v1293_v34 = vpop.f32.mrb[83].mxu1  ;;  %v5753_v19 = vcombine.high %v228_v9, %v232_v63 }
 0x1b9   :  { %1836 = vmatmul.mubr.bf16.gmra.mrb[188].mxu0 %v5698_v29  ;;  %2369 = vmatmul.mubr.bf16.gmra.mrb[188].mxu1 %v5748_v30  ;;  %v5750_v29 = vcombine.low %v220_v46, %v224_v26  ;;  %v5702_v26 = vcombine.low %v227_v39, %v231_v40 }
 0x1ba   :  { %1843 = vmatprep.mubr.bf16.mxu0 %v5701_v60  ;;  %2376 = vmatprep.mubr.bf16.mxu1 %v5751_v50 }
 0x1bc   :  { %v8580_v34 = vpop.f32.mrb[84].mxu0  ;;  %v8582_v41 = vpop.f32.mrb[84].mxu1 }
 0x1bd   :  { %9880 = vst [vmem:[#allocation44_spill] sm:$0xff] %v8582_v41  ;;  %v815_v60 = vpop.f32.mrb[85].mxu0  ;;  %v1298_v8 = vpop.f32.mrb[85].mxu1 }
 0x1be   :  { %v8586_v30 = vpop.f32.mrb[86].mxu0  ;;  %v8588_v31 = vpop.f32.mrb[86].mxu1  ;;  %v5752_v8 = vcombine.low %v228_v9, %v232_v63 }
 0x1bf   :  { %v818_v24 = vpop.f32.mrb[87].mxu0  ;;  %v1301_v56 = vpop.f32.mrb[87].mxu1 }
 0x1c1   :  { %1844 = vmatmul.mubr.bf16.gmra.mrb[192].mxu0 %v5700_v49  ;;  %2377 = vmatmul.mubr.bf16.gmra.mrb[192].mxu1 %v5750_v29 }
 0x1c2   :  { %1851 = vmatprep.mubr.bf16.mxu0 %v5703_v37  ;;  %2384 = vmatprep.mubr.bf16.mxu1 %v5753_v19  ;;  %v9885_v37 = vmov 0.0  }
 0x1c4   :  { %v8592_v50 = vpop.f32.mrb[88].mxu0  ;;  %v8594_v60 = vpop.f32.mrb[88].mxu1 }
 0x1c5   :  { %9881 = vst [vmem:[#allocation45_spill] sm:$0xff] %v8592_v50  ;;  %9882 = vst [vmem:[#allocation46_spill] sm:$0xff] %v8594_v60  ;;  %v823_v10 = vpop.f32.mrb[89].mxu0  ;;  %v1306_v46 = vpop.f32.mrb[89].mxu1 }
 0x1c6   :  { %v8598_v41 = vpop.f32.mrb[90].mxu0  ;;  %v8600_v12 = vpop.f32.mrb[90].mxu1 }
 0x1c7   :  { %9883 = vst [vmem:[#allocation47_spill] sm:$0xff] %v8598_v41  ;;  %9884 = vst [vmem:[#allocation48_spill] sm:$0xff] %v8600_v12  ;;  %v826_v24 = vpop.f32.mrb[91].mxu0  ;;  %v1309_v19 = vpop.f32.mrb[91].mxu1 }
 0x1c9   :  { %1852 = vmatmul.mubr.bf16.gmra.mrb[196].mxu0 %v5702_v26  ;;  %2385 = vmatmul.mubr.bf16.gmra.mrb[196].mxu1 %v5752_v8 }
 0x1ca   :  { %6637 = vmatprep.mubr.msk.bf16.mxu1 %vm7387_vm0, %v9885_v37  ;;  %6617 = vmatprep.mubr.msk.bf16.mxu0 %vm7387_vm0, %v9885_v37 }
 0x1cc   :  { %v8608_v39 = vpop.f32.mrb[92].mxu0  ;;  %v8610_v40 = vpop.f32.mrb[92].mxu1 }
 0x1cd   :  { %9886 = vst [vmem:[#allocation49_spill] sm:$0xff] %v8608_v39  ;;  %9887 = vst [vmem:[#allocation50_spill] sm:$0xff] %v8610_v40  ;;  %v831_v63 = vpop.f32.mrb[93].mxu0  ;;  %v1314_v49 = vpop.f32.mrb[93].mxu1 }
 0x1ce   :  { %v8614_v29 = vpop.f32.mrb[94].mxu0  ;;  %v8616_v10 = vpop.f32.mrb[94].mxu1 }
 0x1cf   :  { %9888 = vst [vmem:[#allocation51_spill] sm:$0xff] %v8614_v29  ;;  %9889 = vst [vmem:[#allocation52_spill] sm:$0xff] %v8616_v10  ;;  %v834_v26 = vpop.f32.mrb[95].mxu0  ;;  %v1317_v8 = vpop.f32.mrb[95].mxu1  ;;  %v9894_v10 = vmax.f32 %v8040_v61, %v8042_v62 }
 0x1d4   :  { %v8620_v24 = vpop.f32.mrb[96].mxu0  ;;  %v8622_v19 = vpop.f32.mrb[96].mxu1 }
 0x1d5   :  { %9890 = vst [vmem:[#allocation53_spill] sm:$0xff] %v8620_v24  ;;  %9891 = vst [vmem:[#allocation54_spill] sm:$0xff] %v8622_v19  ;;  %v839_v7 = vpop.f32.mrb[97].mxu0  ;;  %v1322_v9 = vpop.f32.mrb[97].mxu1  ;;  %v9896_v24 = vmax.f32 %v8071_v18, %v8073_v23  ;;  %v7177_v23 = vld [vmem:[%s9773_s3 + $0xc8] sm:$0xff]  }
 0x1d6   :  { %v8626_v63 = vpop.f32.mrb[98].mxu0  ;;  %v8628_v49 = vpop.f32.mrb[98].mxu1  ;;  %v8638_v7 = vld [vmem:[%s9774_s2] ss:$0 sm:$0xff] }
 0x1d7   :  { %9892 = vst [vmem:[#allocation55_spill] sm:$0xff] %v8626_v63  ;;  %9893 = vst [vmem:[#allocation56_spill] sm:$0xff] %v8628_v49  ;;  %v842_v39 = vpop.f32.mrb[99].mxu0  ;;  %v1325_v46 = vpop.f32.mrb[99].mxu1 }
 0x1d8   :  { %v9895_v39 = vmax.f32 %v8048_v5, %v8050_v6  ;;  %v7176_v6 = vld [vmem:[%s9773_s3 + $0xc0] sm:$0xff]  }
 0x1dc   :  { %v1661_v26 = vpop.f32.mrb[100].mxu0  ;;  %v2194_v8 = vpop.f32.mrb[100].mxu1 }
 0x1dd   :  { %v1860_v29 = vmax.f32 %v9894_v10, %v1661_v26  ;;  %v1663_v12 = vpop.f32.mrb[101].mxu0  ;;  %v2196_v41 = vpop.f32.mrb[101].mxu1 }
 0x1de   :  { %v1664_v9 = vpop.f32.mrb[102].mxu0  ;;  %v2197_v56 = vpop.f32.mrb[102].mxu1 }
 0x1df   :  { %v2393_v19 = vmax.f32 %v1860_v29, %v2194_v8  ;;  %v1861_v46 = vmax.f32 %v9895_v39, %v1664_v9  ;;  %v1666_v40 = vpop.f32.mrb[103].mxu0  ;;  %v2199_v49 = vpop.f32.mrb[103].mxu1 }
 0x1e1   :  { %v2450_v63 = vadd.f32 %v8638_v7, %v2393_v19  ;;  %v2394_v61 = vmax.f32 %v1861_v46, %v2197_v56  ;;  %v9897_v19 = vmax.f32 %v8078_v28, %v8080_v20  ;;  %v9898_v46 = vmax.f32 %v8096_v35, %v8098_v36 }
 0x1e3   :  { %v2451_v62 = vadd.f32 %v8638_v7, %v2394_v61  ;;  %v2500_v10 = vmax.f32 %v2450_v63, 0.0 }
 0x1e4   :  { %v1669_v12 = vpop.f32.mrb[104].mxu0  ;;  %v2202_v41 = vpop.f32.mrb[104].mxu1 }
 0x1e5   :  { %v2501_v26 = vmax.f32 %v2451_v62, 0.0  ;;  %v1862_v60 = vmax.f32 %v9896_v24, %v1669_v12  ;;  %v1671_v29 = vpop.f32.mrb[105].mxu0  ;;  %v2204_v8 = vpop.f32.mrb[105].mxu1 }
 0x1e6   :  { %v1672_v50 = vpop.f32.mrb[106].mxu0  ;;  %v2205_v5 = vpop.f32.mrb[106].mxu1  ;;  %v7179_v29 = vld [vmem:[%s9773_s3 + $0xd0] sm:$0xff]  }
 0x1e7   :  { %v2550_v40 = vpack.c.bf16 %v2501_v26, %v2500_v10  ;;  %v2395_v56 = vmax.f32 %v1862_v60, %v2202_v41  ;;  %v1863_v49 = vmax.f32 %v9897_v19, %v1672_v50  ;;  %v1674_v63 = vpop.f32.mrb[107].mxu0  ;;  %v2207_v9 = vpop.f32.mrb[107].mxu1  ;;  %v7178_v26 = vld [vmem:[%s9773_s3 + $0x80] sm:$0xff]  }
 0x1e9   :  { %v2452_v39 = vadd.f32 %v8638_v7, %v2395_v56  ;;  %v2396_v18 = vmax.f32 %v1863_v49, %v2205_v5  ;;  %6638 = vmatmul.mubr.bf16.vlgmr.msra.gmra.mrb[200].mxu1 %v2550_v40  ;;  %v9899_v5 = vmax.f32 %v8102_v42, %v8104_v43  ;;  %v7180_v49 = vld [vmem:[%s9773_s3 + $0x88] sm:$0xff]   ;;  %v7181_v42 = vld [vmem:[%s9773_s3 + $0xd8] sm:$0xff]  }
 0x1ea   :  { %6662 = vmatpush3.bf16.msra.mxu1 %v7176_v6  ;;  %6677 = vmatprep.mubr.msk.bf16.mxu1 %vm7387_vm0, %v9885_v37 }
 0x1eb   :  { %v2453_v60 = vadd.f32 %v8638_v7, %v2396_v18  ;;  %6663 = vmatprep.subr.bf16.mxu1 %v9885_v37  ;;  %v2502_v50 = vmax.f32 %v2452_v39, 0.0 }
 0x1ec   :  { %v1677_v28 = vpop.f32.mrb[108].mxu0  ;;  %v2210_v20 = vpop.f32.mrb[108].mxu1 }
 0x1ed   :  { %v2503_v24 = vmax.f32 %v2453_v60, 0.0  ;;  %v1864_v61 = vmax.f32 %v9898_v46, %v1677_v28  ;;  %v1679_v62 = vpop.f32.mrb[109].mxu0  ;;  %v2212_v12 = vpop.f32.mrb[109].mxu1  ;;  %v7182_v46 = vld [vmem:[%s9773_s3 + $0x90] sm:$0xff]  }
 0x1ee   :  { %6664 = vmatpush3.bf16.msra.mxu1 %v7177_v23  ;;  %v1680_v41 = vpop.f32.mrb[110].mxu0  ;;  %v2213_v10 = vpop.f32.mrb[110].mxu1  ;;  %v9900_v23 = vmax.f32 %v8123_v54, %v8125_v55  ;;  %v9901_v54 = vmax.f32 %v8133_v2, %v8135_v3  ;;  %v7185_v2 = vld [vmem:[%s9773_s3 + $0xe8] sm:$0xff]  }
 0x1ef   :  { %v2551_v8 = vpack.c.bf16 %v2503_v24, %v2502_v50  ;;  %v1865_v6 = vmax.f32 %v9899_v5, %v1680_v41  ;;  %v2397_v35 = vmax.f32 %v1864_v61, %v2210_v20  ;;  %6665 = vmatprep.subr.bf16.mxu1 %v9885_v37  ;;  %v1682_v36 = vpop.f32.mrb[111].mxu0  ;;  %v2215_v40 = vpop.f32.mrb[111].mxu1  ;;  %v7183_v61 = vld [vmem:[%s9773_s3 + $0xe0] sm:$0xff]  }
 0x1f0   :  { %v9902_v40 = vmax.f32 %v8152_v17, %v8154_v25 }
 0x1f1   :  { %v2454_v56 = vadd.f32 %v8638_v7, %v2397_v35  ;;  %v2398_v19 = vmax.f32 %v1865_v6, %v2213_v10  ;;  %6618 = vmatmul.mubr.bf16.vlgmr.msra.gmra.mrb[200].mxu0 %v2551_v8  ;;  %v7184_v8 = vld [vmem:[%s9773_s3 + $0x98] sm:$0xff]  }
 0x1f2   :  { %6642 = vmatpush3.bf16.msra.mxu0 %v7178_v26  ;;  %6666 = vmatpush3.bf16.msra.mxu1 %v7179_v29 }
 0x1f3   :  { %v2455_v43 = vadd.f32 %v8638_v7, %v2398_v19  ;;  %6643 = vmatprep.subr.bf16.mxu0 %v9885_v37  ;;  %6667 = vmatprep.subr.bf16.mxu1 %v9885_v37  ;;  %v2504_v39 = vmax.f32 %v2454_v56, 0.0 }
 0x1f4   :  { %v1685_v63 = vpop.f32.mrb[112].mxu0  ;;  %v2218_v9 = vpop.f32.mrb[112].mxu1  ;;  %6657 = vmatprep.mubr.msk.bf16.mxu0 %vm7387_vm0, %v9885_v37 }
 0x1f5   :  { %v2505_v18 = vmax.f32 %v2455_v43, 0.0  ;;  %v1866_v60 = vmax.f32 %v9900_v23, %v1685_v63  ;;  %v1687_v28 = vpop.f32.mrb[113].mxu0  ;;  %v2220_v20 = vpop.f32.mrb[113].mxu1  ;;  %v7186_v63 = vld [vmem:[%s9773_s3 + $0xa0] sm:$0xff]  }
 0x1f6   :  { %6644 = vmatpush3.bf16.msra.mxu0 %v7180_v49  ;;  %6668 = vmatpush3.bf16.msra.mxu1 %v7181_v42  ;;  %v1688_v50 = vpop.f32.mrb[114].mxu0  ;;  %v2221_v24 = vpop.f32.mrb[114].mxu1 }
 0x1f7   :  { %v8696_v62 = vpack.c.bf16 %v2505_v18, %v2504_v39  ;;  %v1867_v55 = vmax.f32 %v9901_v54, %v1688_v50  ;;  %v2399_v12 = vmax.f32 %v1866_v60, %v2218_v9  ;;  %6645 = vmatprep.subr.bf16.mxu0 %v9885_v37  ;;  %6669 = vmatprep.subr.bf16.mxu1 %v9885_v37  ;;  %v1690_v41 = vpop.f32.mrb[115].mxu0  ;;  %v2223_v10 = vpop.f32.mrb[115].mxu1  ;;  %v7187_v9 = vld [vmem:[%s9773_s3 + $0xf0] sm:$0xff]   ;;  %v7188_v50 = vld [vmem:[%s9773_s3 + $0xa8] sm:$0xff]  }
 0x1f8   :  { %v9903_v18 = vmax.f32 %v8158_v32, %v8160_v33  ;;  %v7189_v32 = vld [vmem:[%s9773_s3 + $0xf8] sm:$0xff]  }
 0x1f9   :  { %v2456_v26 = vadd.f32 %v8638_v7, %v2399_v12  ;;  %v2400_v29 = vmax.f32 %v1867_v55, %v2221_v24  ;;  %v9904_v55 = vmax.f32 %v8176_v45, %v8178_v47  ;;  %v9905_v45 = vmax.f32 %v8182_v53, %v8184_v57  ;;  %v7193_v53 = vld [vmem:[%s9773_s3 + $0x148] sm:$0xff]  }
 0x1fa   :  { %6646 = vmatpush3.bf16.msra.mxu0 %v7182_v46  ;;  %6670 = vmatpush3.bf16.msra.mxu1 %v7183_v61 }
 0x1fb   :  { %v2457_v3 = vadd.f32 %v8638_v7, %v2400_v29  ;;  %6647 = vmatprep.subr.bf16.mxu0 %v9885_v37  ;;  %6671 = vmatprep.subr.bf16.mxu1 %v9885_v37  ;;  %v2506_v35 = vmax.f32 %v2456_v26, 0.0 }
 0x1fc   :  { %v1693_v5 = vpop.f32.mrb[116].mxu0  ;;  %v2226_v6 = vpop.f32.mrb[116].mxu1 }
 0x1fd   :  { %v2507_v36 = vmax.f32 %v2457_v3, 0.0  ;;  %v1868_v56 = vmax.f32 %v9902_v40, %v1693_v5  ;;  %v1695_v19 = vpop.f32.mrb[117].mxu0  ;;  %v2228_v49 = vpop.f32.mrb[117].mxu1 }
 0x1fe   :  { %6648 = vmatpush3.bf16.msra.mxu0 %v7184_v8  ;;  %6672 = vmatpush3.bf16.msra.mxu1 %v7185_v2  ;;  %v1696_v42 = vpop.f32.mrb[118].mxu0  ;;  %v2229_v43 = vpop.f32.mrb[118].mxu1  ;;  %v7190_v8 = vld [vmem:[%s9773_s3 + $0xb0] sm:$0xff]   ;;  %v7191_v2 = vld [vmem:[%s9773_s3 + $0x140] sm:$0xff]  }
 0x1ff   :  { %v2553_v39 = vpack.c.bf16 %v2507_v36, %v2506_v35  ;;  %v1869_v17 = vmax.f32 %v9903_v18, %v1696_v42  ;;  %v2401_v25 = vmax.f32 %v1868_v56, %v2226_v6  ;;  %6649 = vmatprep.subr.bf16.mxu0 %v9885_v37  ;;  %6673 = vmatprep.subr.bf16.mxu1 %v9885_v37  ;;  %v1698_v23 = vpop.f32.mrb[119].mxu0  ;;  %v2231_v60 = vpop.f32.mrb[119].mxu1  ;;  %v7192_v56 = vld [vmem:[%s9773_s3 + $0xb8] sm:$0xff]  }
 0x200   :  { %v7194_v23 = vld [vmem:[%s9773_s3 + $0x100] sm:$0xff]   ;;  %v7195_v60 = vld [vmem:[%s9773_s3 + $0x150] sm:$0xff]  }
 0x201   :  { %v2458_v28 = vadd.f32 %v8638_v7, %v2401_v25  ;;  %v2402_v20 = vmax.f32 %v1869_v17, %v2229_v43 }
 0x202   :  { %6650 = vmatpush3.bf16.msra.mxu0 %v7186_v63  ;;  %6674 = vmatpush3.bf16.msra.mxu1 %v7187_v9  ;;  %v9906_v63 = vmax.f32 %v8203_v15, %v8205_v16  ;;  %v9907_v15 = vmax.f32 %v8213_v22, %v8215_v38  ;;  %v7197_v22 = vld [vmem:[%s9773_s3 + $0x158] sm:$0xff]  }
 0x203   :  { %v2459_v33 = vadd.f32 %v8638_v7, %v2402_v20  ;;  %6651 = vmatprep.subr.bf16.mxu0 %v9885_v37  ;;  %6675 = vmatprep.subr.bf16.mxu1 %v9885_v37  ;;  %v2508_v61 = vmax.f32 %v2458_v28, 0.0 }
 0x204   :  { %v1701_v24 = vpop.f32.mrb[120].mxu0  ;;  %v2234_v46 = vpop.f32.mrb[120].mxu1 }
 0x205   :  { %v2509_v54 = vmax.f32 %v2459_v33, 0.0  ;;  %v1870_v12 = vmax.f32 %v9904_v55, %v1701_v24  ;;  %v1703_v41 = vpop.f32.mrb[121].mxu0  ;;  %v2236_v10 = vpop.f32.mrb[121].mxu1 }
 0x206   :  { %6652 = vmatpush3.bf16.msra.mxu0 %v7188_v50  ;;  %6676 = vmatpush3.bf16.msra.mxu1 %v7189_v32  ;;  %v1704_v26 = vpop.f32.mrb[122].mxu0  ;;  %v2237_v29 = vpop.f32.mrb[122].mxu1 }
 0x207   :  { %v8746_v3 = vpack.c.bf16 %v2509_v54, %v2508_v61  ;;  %v1871_v47 = vmax.f32 %v9905_v45, %v1704_v26  ;;  %v2403_v5 = vmax.f32 %v1870_v12, %v2234_v46  ;;  %6653 = vmatprep.subr.bf16.mxu0 %v9885_v37  ;;  %6701 = vmatprep.subr.bf16.mxu1 %v9885_v37  ;;  %v1706_v6 = vpop.f32.mrb[123].mxu0  ;;  %v2239_v35 = vpop.f32.mrb[123].mxu1  ;;  %v7196_v46 = vld [vmem:[%s9773_s3 + $0x108] sm:$0xff]   ;;  %v7199_v45 = vld [vmem:[%s9773_s3 + $0x160] sm:$0xff]  }
 0x208   :  { %v9908_v12 = vmax.f32 %v8232_v59, %v8234_v1  ;;  %v9909_v59 = vmax.f32 %v8238_v21, %v8240_v0  ;;  %v7201_v21 = vld [vmem:[%s9773_s3 + $0x168] sm:$0xff]  }
 0x209   :  { %v2460_v36 = vadd.f32 %v8638_v7, %v2403_v5  ;;  %v2404_v40 = vmax.f32 %v1871_v47, %v2237_v29  ;;  %6678 = vmatmul.mubr.bf16.vlgmr.msra.gmra.mrb[204].mxu1 %v2553_v39 }
 0x20a   :  { %6654 = vmatpush3.bf16.msra.mxu0 %v7190_v8  ;;  %6702 = vmatpush3.bf16.msra.mxu1 %v7191_v2  ;;  %v7198_v2 = vld [vmem:[%s9773_s3 + $0x110] sm:$0xff]  }
 0x20b   :  { %v2461_v57 = vadd.f32 %v8638_v7, %v2404_v40  ;;  %6655 = vmatprep.subr.bf16.mxu0 %v9885_v37  ;;  %6703 = vmatprep.subr.bf16.mxu1 %v9885_v37  ;;  %v2510_v42 = vmax.f32 %v2460_v36, 0.0 }
 0x20c   :  { %v1709_v19 = vpop.f32.mrb[124].mxu0  ;;  %v2242_v49 = vpop.f32.mrb[124].mxu1  ;;  %6717 = vmatprep.mubr.msk.bf16.mxu1 %vm7387_vm0, %v9885_v37 }
 0x20d   :  { %v2511_v43 = vmax.f32 %v2461_v57, 0.0  ;;  %v1872_v9 = vmax.f32 %v9906_v63, %v1709_v19  ;;  %v1711_v39 = vpop.f32.mrb[125].mxu0  ;;  %v2244_v18 = vpop.f32.mrb[125].mxu1 }
 0x20e   :  { %6656 = vmatpush3.bf16.msra.mxu0 %v7192_v56  ;;  %6704 = vmatpush3.bf16.msra.mxu1 %v7193_v53  ;;  %v1712_v17 = vpop.f32.mrb[126].mxu0  ;;  %v2245_v25 = vpop.f32.mrb[126].mxu1  ;;  %v7200_v56 = vld [vmem:[%s9773_s3 + $0x118] sm:$0xff]  }
 0x20f   :  { %v8774_v28 = vpack.c.bf16 %v2511_v43, %v2510_v42  ;;  %v1873_v16 = vmax.f32 %v9907_v15, %v1712_v17  ;;  %v2405_v20 = vmax.f32 %v1872_v9, %v2242_v49  ;;  %6681 = vmatprep.subr.bf16.mxu0 %v9885_v37  ;;  %6705 = vmatprep.subr.bf16.mxu1 %v9885_v37  ;;  %v1714_v50 = vpop.f32.mrb[127].mxu0  ;;  %v2247_v32 = vpop.f32.mrb[127].mxu1  ;;  %v7202_v17 = vld [vmem:[%s9773_s3 + $0x120] sm:$0xff]  }
 0x210   :  { %v9910_v42 = vmax.f32 %v8256_v14, %v8258_v51  ;;  %v9911_v14 = vmax.f32 %v8262_v4, %v8264_v27  ;;  %v7204_v32 = vld [vmem:[%s9773_s3 + $0x128] sm:$0xff]   ;;  %v7205_v27 = vld [vmem:[%s9773_s3 + $0x178] sm:$0xff]  }
 0x211   :  { %v2462_v33 = vadd.f32 %v8638_v7, %v2405_v20  ;;  %v2406_v24 = vmax.f32 %v1873_v16, %v2245_v25  ;;  %6658 = vmatmul.mubr.bf16.vlgmr.msra.gmra.mrb[204].mxu0 %v8696_v62  ;;  %v7203_v25 = vld [vmem:[%s9773_s3 + $0x170] sm:$0xff]  }
 0x212   :  { %6682 = vmatpush3.bf16.msra.mxu0 %v7194_v23  ;;  %6706 = vmatpush3.bf16.msra.mxu1 %v7195_v60 }
 0x213   :  { %v2463_v38 = vadd.f32 %v8638_v7, %v2406_v24  ;;  %6683 = vmatprep.subr.bf16.mxu0 %v9885_v37  ;;  %6707 = vmatprep.subr.bf16.mxu1 %v9885_v37  ;;  %v2512_v62 = vmax.f32 %v2462_v33, 0.0 }
 0x214   :  { %v1717_v61 = vpop.f32.mrb[128].mxu0  ;;  %v2250_v54 = vpop.f32.mrb[128].mxu1  ;;  %6697 = vmatprep.mubr.msk.bf16.mxu0 %vm7387_vm0, %v9885_v37 }
 0x215   :  { %v2513_v55 = vmax.f32 %v2463_v38, 0.0  ;;  %v1874_v41 = vmax.f32 %v9908_v12, %v1717_v61  ;;  %v1719_v10 = vpop.f32.mrb[129].mxu0  ;;  %v2252_v26 = vpop.f32.mrb[129].mxu1  ;;  %v9912_v38 = vmax.f32 %v8283_v44, %v8285_v48  ;;  %v9913_v44 = vmax.f32 %v8290_v58, %v8292_v52  ;;  %v7209_v52 = vld [vmem:[%s9773_s3 + $0x1c8] sm:$0xff]  }
 0x216   :  { %6684 = vmatpush3.bf16.msra.mxu0 %v7196_v46  ;;  %6708 = vmatpush3.bf16.msra.mxu1 %v7197_v22  ;;  %v1720_v29 = vpop.f32.mrb[130].mxu0  ;;  %v2253_v8 = vpop.f32.mrb[130].mxu1  ;;  %v7207_v10 = vld [vmem:[%s9773_s3 + $0x1c0] sm:$0xff]  }
 0x217   :  { %v8803_v47 = vpack.c.bf16 %v2513_v55, %v2512_v62  ;;  %v1875_v1 = vmax.f32 %v9909_v59, %v1720_v29  ;;  %v2407_v5 = vmax.f32 %v1874_v41, %v2250_v54  ;;  %6685 = vmatprep.subr.bf16.mxu0 %v9885_v37  ;;  %6709 = vmatprep.subr.bf16.mxu1 %v9885_v37  ;;  %v1722_v6 = vpop.f32.mrb[131].mxu0  ;;  %v2255_v35 = vpop.f32.mrb[131].mxu1  ;;  %v7206_v41 = vld [vmem:[%s9773_s3 + $0x130] sm:$0xff]  }
 0x219   :  { %v2464_v36 = vadd.f32 %v8638_v7, %v2407_v5  ;;  %v2408_v40 = vmax.f32 %v1875_v1, %v2253_v8  ;;  %v7208_v1 = vld [vmem:[%s9773_s3 + $0x138] sm:$0xff]  }
 0x21a   :  { %6686 = vmatpush3.bf16.msra.mxu0 %v7198_v2  ;;  %6710 = vmatpush3.bf16.msra.mxu1 %v7199_v45 }
 0x21b   :  { %v2465_v0 = vadd.f32 %v8638_v7, %v2408_v40  ;;  %6687 = vmatprep.subr.bf16.mxu0 %v9885_v37  ;;  %6711 = vmatprep.subr.bf16.mxu1 %v9885_v37  ;;  %v2514_v19 = vmax.f32 %v2464_v36, 0.0  ;;  %v9914_v36 = vmax.f32 %v8314_v11, %v8316_v13 }
 0x21c   :  { %v1725_v53 = vpop.f32.mrb[132].mxu0  ;;  %v2258_v57 = vpop.f32.mrb[132].mxu1 }
 0x21d   :  { %v2515_v49 = vmax.f32 %v2465_v0, 0.0  ;;  %v1876_v43 = vmax.f32 %v9910_v42, %v1725_v53  ;;  %v1727_v63 = vpop.f32.mrb[133].mxu0  ;;  %v2260_v9 = vpop.f32.mrb[133].mxu1  ;;  %v9915_v42 = vld [vmem:[#allocation2_spill] sm:$0xff] }
 0x21e   :  { %6688 = vmatpush3.bf16.msra.mxu0 %v7200_v56  ;;  %6712 = vmatpush3.bf16.msra.mxu1 %v7201_v21  ;;  %v1728_v39 = vpop.f32.mrb[134].mxu0  ;;  %v2261_v18 = vpop.f32.mrb[134].mxu1 }
 0x21f   :  { %v8829_v23 = vpack.c.bf16 %v2515_v49, %v2514_v19  ;;  %v1877_v51 = vmax.f32 %v9911_v14, %v1728_v39  ;;  %v2409_v60 = vmax.f32 %v1876_v43, %v2258_v57  ;;  %6689 = vmatprep.subr.bf16.mxu0 %v9885_v37  ;;  %6713 = vmatprep.subr.bf16.mxu1 %v9885_v37  ;;  %v1730_v15 = vpop.f32.mrb[135].mxu0  ;;  %v2263_v16 = vpop.f32.mrb[135].mxu1  ;;  %v7210_v57 = vld [vmem:[%s9773_s3 + $0x180] sm:$0xff]   ;;  %v7211_v19 = vld [vmem:[%s9773_s3 + $0x1d0] sm:$0xff]   ;;  %v9916_v43 = vld [vmem:[#allocation3_spill] sm:$0xff] }
 0x220   :  { %v9917_v11 = vmax.f32 %v9915_v42, %v9916_v43  ;;  %v7213_v14 = vld [vmem:[%s9773_s3 + $0x1d8] sm:$0xff]   ;;  %v9928_v42 = vld [vmem:[#allocation11_spill] sm:$0xff] }
 0x221   :  { %v2466_v20 = vadd.f32 %v8638_v7, %v2409_v60  ;;  %v2410_v50 = vmax.f32 %v1877_v51, %v2261_v18 }
 0x222   :  { %6690 = vmatpush3.bf16.msra.mxu0 %v7202_v17  ;;  %6714 = vmatpush3.bf16.msra.mxu1 %v7203_v25  ;;  %v7212_v25 = vld [vmem:[%s9773_s3 + $0x188] sm:$0xff]  }
 0x223   :  { %v2467_v4 = vadd.f32 %v8638_v7, %v2410_v50  ;;  %6691 = vmatprep.subr.bf16.mxu0 %v9885_v37  ;;  %6715 = vmatprep.subr.bf16.mxu1 %v9885_v37  ;;  %v2516_v46 = vmax.f32 %v2466_v20, 0.0  ;;  %v9918_v20 = vld [vmem:[#allocation4_spill] sm:$0xff]  ;;  %v9919_v50 = vld [vmem:[#allocation5_spill] sm:$0xff] }
 0x224   :  { %v1733_v33 = vpop.f32.mrb[136].mxu0  ;;  %v2266_v24 = vpop.f32.mrb[136].mxu1 }
 0x225   :  { %v2517_v22 = vmax.f32 %v2467_v4, 0.0  ;;  %v1878_v61 = vmax.f32 %v9912_v38, %v1733_v33  ;;  %v1735_v54 = vpop.f32.mrb[137].mxu0  ;;  %v2268_v62 = vpop.f32.mrb[137].mxu1  ;;  %v7215_v38 = vld [vmem:[%s9773_s3 + $0x1e0] sm:$0xff]  }
 0x226   :  { %6692 = vmatpush3.bf16.msra.mxu0 %v7204_v32  ;;  %6716 = vmatpush3.bf16.msra.mxu1 %v7205_v27  ;;  %v1736_v55 = vpop.f32.mrb[138].mxu0  ;;  %v2269_v12 = vpop.f32.mrb[138].mxu1  ;;  %v9920_v32 = vmax.f32 %v9918_v20, %v9919_v50  ;;  %v9921_v54 = vld [vmem:[#allocation6_spill] sm:$0xff]  ;;  %v9922_v62 = vld [vmem:[#allocation7_spill] sm:$0xff]  ;;  %v9931_v20 = vld [vmem:[#allocation13_spill] sm:$0xff] }
 0x227   :  { %v8855_v26 = vpack.c.bf16 %v2517_v22, %v2516_v46  ;;  %v1879_v48 = vmax.f32 %v9913_v44, %v1736_v55  ;;  %v2411_v29 = vmax.f32 %v1878_v61, %v2266_v24  ;;  %6693 = vmatprep.subr.bf16.mxu0 %v9885_v37  ;;  %6741 = vmatprep.subr.bf16.mxu1 %v9885_v37  ;;  %v1738_v8 = vpop.f32.mrb[139].mxu0  ;;  %v2271_v2 = vpop.f32.mrb[139].mxu1  ;;  %v7214_v22 = vld [vmem:[%s9773_s3 + $0x190] sm:$0xff]  }
 0x228   :  { %v9923_v55 = vmax.f32 %v9921_v54, %v9922_v62  ;;  %v7216_v8 = vld [vmem:[%s9773_s3 + $0x198] sm:$0xff]   ;;  %v7217_v2 = vld [vmem:[%s9773_s3 + $0x1e8] sm:$0xff]   ;;  %v9933_v54 = vld [vmem:[#allocation14_spill] sm:$0xff] }
 0x229   :  { %v2468_v45 = vadd.f32 %v8638_v7, %v2411_v29  ;;  %v2412_v59 = vmax.f32 %v1879_v48, %v2269_v12  ;;  %6718 = vmatmul.mubr.bf16.vlgmr.msra.gmra.mrb[208].mxu1 %v8774_v28  ;;  %v9934_v62 = vld [vmem:[#allocation15_spill] sm:$0xff] }
 0x22a   :  { %6694 = vmatpush3.bf16.msra.mxu0 %v7206_v41  ;;  %6742 = vmatpush3.bf16.msra.mxu1 %v7207_v10 }
 0x22b   :  { %v2469_v58 = vadd.f32 %v8638_v7, %v2412_v59  ;;  %6695 = vmatprep.subr.bf16.mxu0 %v9885_v37  ;;  %6743 = vmatprep.subr.bf16.mxu1 %v9885_v37  ;;  %v2518_v28 = vmax.f32 %v2468_v45, 0.0 }
 0x22c   :  { %v1741_v5 = vpop.f32.mrb[140].mxu0  ;;  %v2274_v6 = vpop.f32.mrb[140].mxu1  ;;  %6757 = vmatprep.mubr.msk.bf16.mxu1 %vm7387_vm0, %v9885_v37 }
 0x22d   :  { %v2519_v35 = vmax.f32 %v2469_v58, 0.0  ;;  %v1880_v40 = vmax.f32 %v9914_v36, %v1741_v5  ;;  %v1743_v56 = vpop.f32.mrb[141].mxu0  ;;  %v2276_v21 = vpop.f32.mrb[141].mxu1  ;;  %v9924_v5 = vld [vmem:[#allocation8_spill] sm:$0xff] }
 0x22e   :  { %6696 = vmatpush3.bf16.msra.mxu0 %v7208_v1  ;;  %6744 = vmatpush3.bf16.msra.mxu1 %v7209_v52  ;;  %v1744_v0 = vpop.f32.mrb[142].mxu0  ;;  %v2277_v53 = vpop.f32.mrb[142].mxu1 }
 0x22f   :  { %v8884_v49 = vpack.c.bf16 %v2519_v35, %v2518_v28  ;;  %v1881_v13 = vmax.f32 %v9917_v11, %v1744_v0  ;;  %v2413_v63 = vmax.f32 %v1880_v40, %v2274_v6  ;;  %6721 = vmatprep.subr.bf16.mxu0 %v9885_v37  ;;  %6745 = vmatprep.subr.bf16.mxu1 %v9885_v37  ;;  %v1746_v9 = vpop.f32.mrb[143].mxu0  ;;  %v2279_v39 = vpop.f32.mrb[143].mxu1  ;;  %v9925_v6 = vld [vmem:[#allocation9_spill] sm:$0xff]  ;;  %v7218_v0 = vld [vmem:[%s9773_s3 + $0x1a0] sm:$0xff]  }
 0x230   :  { %v9926_v28 = vmax.f32 %v9924_v5, %v9925_v6  ;;  %v9937_v5 = vld [vmem:[#allocation17_spill] sm:$0xff] }
 0x231   :  { %v2470_v18 = vadd.f32 %v8638_v7, %v2413_v63  ;;  %v2414_v17 = vmax.f32 %v1881_v13, %v2277_v53  ;;  %6698 = vmatmul.mubr.bf16.vlgmr.msra.gmra.mrb[208].mxu0 %v8746_v3  ;;  %v7219_v53 = vld [vmem:[%s9773_s3 + $0x1f0] sm:$0xff]  }
 0x232   :  { %6722 = vmatpush3.bf16.msra.mxu0 %v7210_v57  ;;  %6746 = vmatpush3.bf16.msra.mxu1 %v7211_v19  ;;  %v9927_v19 = vld [vmem:[#allocation10_spill] sm:$0xff] }
 0x233   :  { %v2471_v51 = vadd.f32 %v8638_v7, %v2414_v17  ;;  %6723 = vmatprep.subr.bf16.mxu0 %v9885_v37  ;;  %6747 = vmatprep.subr.bf16.mxu1 %v9885_v37  ;;  %v2520_v3 = vmax.f32 %v2470_v18, 0.0  ;;  %v9929_v43 = vmax.f32 %v9927_v19, %v9928_v42  ;;  %v7220_v17 = vld [vmem:[%s9773_s3 + $0x1a8] sm:$0xff]   ;;  %v9939_v19 = vld [vmem:[#allocation18_spill] sm:$0xff] }
 0x234   :  { %v1749_v60 = vpop.f32.mrb[144].mxu0  ;;  %v2282_v15 = vpop.f32.mrb[144].mxu1  ;;  %6737 = vmatprep.mubr.msk.bf16.mxu0 %vm7387_vm0, %v9885_v37  ;;  %v9940_v42 = vld [vmem:[#allocation19_spill] sm:$0xff] }
 0x235   :  { %v2521_v16 = vmax.f32 %v2471_v51, 0.0  ;;  %v1882_v27 = vmax.f32 %v9920_v32, %v1749_v60  ;;  %v1751_v4 = vpop.f32.mrb[145].mxu0  ;;  %v2284_v33 = vpop.f32.mrb[145].mxu1 }
 0x236   :  { %6724 = vmatpush3.bf16.msra.mxu0 %v7212_v25  ;;  %6748 = vmatpush3.bf16.msra.mxu1 %v7213_v14  ;;  %v1752_v24 = vpop.f32.mrb[146].mxu0  ;;  %v2285_v46 = vpop.f32.mrb[146].mxu1  ;;  %v7221_v25 = vld [vmem:[%s9773_s3 + $0x1f8] sm:$0xff]  }
 0x237   :  { %v8913_v61 = vpack.c.bf16 %v2521_v16, %v2520_v3  ;;  %v1883_v12 = vmax.f32 %v9923_v55, %v1752_v24  ;;  %v2415_v41 = vmax.f32 %v1882_v27, %v2282_v15  ;;  %6725 = vmatprep.subr.bf16.mxu0 %v9885_v37  ;;  %6749 = vmatprep.subr.bf16.mxu1 %v9885_v37  ;;  %v1754_v10 = vpop.f32.mrb[147].mxu0  ;;  %v2287_v44 = vpop.f32.mrb[147].mxu1  ;;  %v9930_v16 = vld [vmem:[#allocation12_spill] sm:$0xff] }
 0x238   :  { %v9932_v50 = vmax.f32 %v9930_v16, %v9931_v20  ;;  %v9935_v55 = vmax.f32 %v9933_v54, %v9934_v62  ;;  %v9943_v16 = vld [vmem:[#allocation21_spill] sm:$0xff]  ;;  %v9945_v54 = vld [vmem:[#allocation22_spill] sm:$0xff]  ;;  %v9946_v62 = vld [vmem:[#allocation23_spill] sm:$0xff] }
 0x239   :  { %v2472_v48 = vadd.f32 %v8638_v7, %v2415_v41  ;;  %v2416_v29 = vmax.f32 %v1883_v12, %v2285_v46  ;;  %v7222_v46 = vld [vmem:[%s9773_s3 + $0x1b0] sm:$0xff]  }
 0x23a   :  { %6726 = vmatpush3.bf16.msra.mxu0 %v7214_v22  ;;  %6750 = vmatpush3.bf16.msra.mxu1 %v7215_v38  ;;  %v7223_v22 = vld [vmem:[%s9773_s3 + $0x240] sm:$0xff]  }
 0x23b   :  { %v2473_v45 = vadd.f32 %v8638_v7, %v2416_v29  ;;  %6727 = vmatprep.subr.bf16.mxu0 %v9885_v37  ;;  %6751 = vmatprep.subr.bf16.mxu1 %v9885_v37  ;;  %v2522_v52 = vmax.f32 %v2472_v48, 0.0 }
 0x23c   :  { %v1757_v59 = vpop.f32.mrb[148].mxu0  ;;  %v2290_v1 = vpop.f32.mrb[148].mxu1 }
 0x23d   :  { %v2523_v58 = vmax.f32 %v2473_v45, 0.0  ;;  %v1884_v35 = vmax.f32 %v9926_v28, %v1757_v59  ;;  %v1759_v36 = vpop.f32.mrb[149].mxu0  ;;  %v2292_v40 = vpop.f32.mrb[149].mxu1 }
 0x23e   :  { %6728 = vmatpush3.bf16.msra.mxu0 %v7216_v8  ;;  %6752 = vmatpush3.bf16.msra.mxu1 %v7217_v2  ;;  %v1760_v56 = vpop.f32.mrb[150].mxu0  ;;  %v2293_v21 = vpop.f32.mrb[150].mxu1  ;;  %v7224_v8 = vld [vmem:[%s9773_s3 + $0x1b8] sm:$0xff]   ;;  %v7225_v2 = vld [vmem:[%s9773_s3 + $0x248] sm:$0xff]  }
 0x23f   :  { %v8939_v57 = vpack.c.bf16 %v2523_v58, %v2522_v52  ;;  %v1885_v11 = vmax.f32 %v9929_v43, %v1760_v56  ;;  %v2417_v13 = vmax.f32 %v1884_v35, %v2290_v1  ;;  %6729 = vmatprep.subr.bf16.mxu0 %v9885_v37  ;;  %6753 = vmatprep.subr.bf16.mxu1 %v9885_v37  ;;  %v1762_v63 = vpop.f32.mrb[151].mxu0  ;;  %v2295_v9 = vpop.f32.mrb[151].mxu1  ;;  %v9936_v58 = vld [vmem:[#allocation16_spill] sm:$0xff] }
 0x240   :  { %v9938_v6 = vmax.f32 %v9936_v58, %v9937_v5  ;;  %v9941_v43 = vmax.f32 %v9939_v19, %v9940_v42  ;;  %v9948_v58 = vld [vmem:[#allocation24_spill] sm:$0xff]  ;;  %v9949_v5 = vld [vmem:[#allocation25_spill] sm:$0xff]  ;;  %v9951_v42 = vld [vmem:[#allocation26_spill] sm:$0xff] }
 0x241   :  { %v2474_v39 = vadd.f32 %v8638_v7, %v2417_v13  ;;  %v2418_v18 = vmax.f32 %v1885_v11, %v2293_v21  ;;  %v7226_v21 = vld [vmem:[%s9773_s3 + $0x200] sm:$0xff]  }
 0x242   :  { %6730 = vmatpush3.bf16.msra.mxu0 %v7218_v0  ;;  %6754 = vmatpush3.bf16.msra.mxu1 %v7219_v53  ;;  %v7227_v0 = vld [vmem:[%s9773_s3 + $0x250] sm:$0xff]  }
 0x243   :  { %v2475_v14 = vadd.f32 %v8638_v7, %v2418_v18  ;;  %6731 = vmatprep.subr.bf16.mxu0 %v9885_v37  ;;  %6755 = vmatprep.subr.bf16.mxu1 %v9885_v37  ;;  %v2524_v15 = vmax.f32 %v2474_v39, 0.0 }
 0x244   :  { %v1765_v51 = vpop.f32.mrb[152].mxu0  ;;  %v2298_v60 = vpop.f32.mrb[152].mxu1 }
 0x245   :  { %v2525_v3 = vmax.f32 %v2475_v14, 0.0  ;;  %v1886_v32 = vmax.f32 %v9932_v50, %v1765_v51  ;;  %v1767_v27 = vpop.f32.mrb[153].mxu0  ;;  %v2300_v4 = vpop.f32.mrb[153].mxu1 }
 0x246   :  { %6732 = vmatpush3.bf16.msra.mxu0 %v7220_v17  ;;  %6756 = vmatpush3.bf16.msra.mxu1 %v7221_v25  ;;  %v1768_v33 = vpop.f32.mrb[154].mxu0  ;;  %v2301_v24 = vpop.f32.mrb[154].mxu1  ;;  %v7228_v17 = vld [vmem:[%s9773_s3 + $0x208] sm:$0xff]   ;;  %v7229_v25 = vld [vmem:[%s9773_s3 + $0x258] sm:$0xff]  }
 0x247   :  { %v8965_v38 = vpack.c.bf16 %v2525_v3, %v2524_v15  ;;  %v1887_v12 = vmax.f32 %v9935_v55, %v1768_v33  ;;  %v2419_v41 = vmax.f32 %v1886_v32, %v2298_v60  ;;  %6733 = vmatprep.subr.bf16.mxu0 %v9885_v37  ;;  %6781 = vmatprep.subr.bf16.mxu1 %v9885_v37  ;;  %v1770_v10 = vpop.f32.mrb[155].mxu0  ;;  %v2303_v44 = vpop.f32.mrb[155].mxu1  ;;  %v9942_v3 = vld [vmem:[#allocation20_spill] sm:$0xff] }
 0x248   :  { %v9944_v20 = vmax.f32 %v9942_v3, %v9943_v16  ;;  %v9947_v55 = vmax.f32 %v9945_v54, %v9946_v62  ;;  %v9954_v16 = vld [vmem:[#allocation28_spill] sm:$0xff]  ;;  %v7239_v54 = vld [vmem:[%s9773_s3 + $0x2c0] sm:$0xff]  }
 0x249   :  { %v2476_v48 = vadd.f32 %v8638_v7, %v2419_v41  ;;  %v2420_v29 = vmax.f32 %v1887_v12, %v2301_v24  ;;  %6758 = vmatmul.mubr.bf16.vlgmr.msra.gmra.mrb[212].mxu1 %v8829_v23  ;;  %v7230_v24 = vld [vmem:[%s9773_s3 + $0x210] sm:$0xff]  }
 0x24a   :  { %6734 = vmatpush3.bf16.msra.mxu0 %v7222_v46  ;;  %6782 = vmatpush3.bf16.msra.mxu1 %v7223_v22  ;;  %v7231_v46 = vld [vmem:[%s9773_s3 + $0x260] sm:$0xff]  }
 0x24b   :  { %v2477_v45 = vadd.f32 %v8638_v7, %v2420_v29  ;;  %6735 = vmatprep.subr.bf16.mxu0 %v9885_v37  ;;  %6783 = vmatprep.subr.bf16.mxu1 %v9885_v37  ;;  %v2526_v23 = vmax.f32 %v2476_v48, 0.0 }
 0x24c   :  { %v1773_v59 = vpop.f32.mrb[156].mxu0  ;;  %v2306_v1 = vpop.f32.mrb[156].mxu1  ;;  %6797 = vmatprep.mubr.msk.bf16.mxu1 %vm7387_vm0, %v9885_v37 }
 0x24d   :  { %v2527_v52 = vmax.f32 %v2477_v45, 0.0  ;;  %v1888_v28 = vmax.f32 %v9938_v6, %v1773_v59  ;;  %v1775_v35 = vpop.f32.mrb[157].mxu0  ;;  %v2308_v36 = vpop.f32.mrb[157].mxu1  ;;  %v9950_v6 = vmax.f32 %v9948_v58, %v9949_v5  ;;  %v9960_v5 = vld [vmem:[#allocation32_spill] sm:$0xff] }
 0x24e   :  { %6736 = vmatpush3.bf16.msra.mxu0 %v7224_v8  ;;  %6784 = vmatpush3.bf16.msra.mxu1 %v7225_v2  ;;  %v1776_v40 = vpop.f32.mrb[158].mxu0  ;;  %v2309_v56 = vpop.f32.mrb[158].mxu1  ;;  %v7232_v8 = vld [vmem:[%s9773_s3 + $0x218] sm:$0xff]   ;;  %v7233_v2 = vld [vmem:[%s9773_s3 + $0x268] sm:$0xff]  }
 0x24f   :  { %v8994_v53 = vpack.c.bf16 %v2527_v52, %v2526_v23  ;;  %v1889_v11 = vmax.f32 %v9941_v43, %v1776_v40  ;;  %v2421_v13 = vmax.f32 %v1888_v28, %v2306_v1  ;;  %6761 = vmatprep.subr.bf16.mxu0 %v9885_v37  ;;  %6785 = vmatprep.subr.bf16.mxu1 %v9885_v37  ;;  %v1778_v63 = vpop.f32.mrb[159].mxu0  ;;  %v2311_v9 = vpop.f32.mrb[159].mxu1  ;;  %v9952_v43 = vld [vmem:[#allocation27_spill] sm:$0xff] }
 0x251   :  { %v2478_v39 = vadd.f32 %v8638_v7, %v2421_v13  ;;  %v2422_v18 = vmax.f32 %v1889_v11, %v2309_v56  ;;  %6738 = vmatmul.mubr.bf16.vlgmr.msra.gmra.mrb[212].mxu0 %v8803_v47  ;;  %v9953_v11 = vmax.f32 %v9951_v42, %v9952_v43  ;;  %v9963_v43 = vld [vmem:[#allocation34_spill] sm:$0xff] }
 0x252   :  { %6762 = vmatpush3.bf16.msra.mxu0 %v7226_v21  ;;  %6786 = vmatpush3.bf16.msra.mxu1 %v7227_v0  ;;  %v7234_v21 = vld [vmem:[%s9773_s3 + $0x220] sm:$0xff]   ;;  %v7235_v0 = vld [vmem:[%s9773_s3 + $0x270] sm:$0xff]  }
 0x253   :  { %v2479_v14 = vadd.f32 %v8638_v7, %v2422_v18  ;;  %6763 = vmatprep.subr.bf16.mxu0 %v9885_v37  ;;  %6787 = vmatprep.subr.bf16.mxu1 %v9885_v37  ;;  %v2528_v47 = vmax.f32 %v2478_v39, 0.0 }
 0x254   :  { %v1781_v51 = vpop.f32.mrb[160].mxu0  ;;  %v2314_v60 = vpop.f32.mrb[160].mxu1  ;;  %6777 = vmatprep.mubr.msk.bf16.mxu0 %vm7387_vm0, %v9885_v37 }
 0x255   :  { %v2529_v15 = vmax.f32 %v2479_v14, 0.0  ;;  %v1890_v50 = vmax.f32 %v9944_v20, %v1781_v51  ;;  %v1783_v32 = vpop.f32.mrb[161].mxu0  ;;  %v2316_v27 = vpop.f32.mrb[161].mxu1  ;;  %v7237_v14 = vld [vmem:[%s9773_s3 + $0x278] sm:$0xff]  }
 0x256   :  { %6764 = vmatpush3.bf16.msra.mxu0 %v7228_v17  ;;  %6788 = vmatpush3.bf16.msra.mxu1 %v7229_v25  ;;  %v1784_v4 = vpop.f32.mrb[162].mxu0  ;;  %v2317_v33 = vpop.f32.mrb[162].mxu1  ;;  %v7236_v25 = vld [vmem:[%s9773_s3 + $0x228] sm:$0xff]   ;;  %v9955_v20 = vld [vmem:[#allocation29_spill] sm:$0xff] }
 0x257   :  { %v9023_v22 = vpack.c.bf16 %v2529_v15, %v2528_v47  ;;  %v1891_v12 = vmax.f32 %v9947_v55, %v1784_v4  ;;  %v2423_v41 = vmax.f32 %v1890_v50, %v2314_v60  ;;  %6765 = vmatprep.subr.bf16.mxu0 %v9885_v37  ;;  %6789 = vmatprep.subr.bf16.mxu1 %v9885_v37  ;;  %v1786_v10 = vpop.f32.mrb[163].mxu0  ;;  %v2319_v44 = vpop.f32.mrb[163].mxu1  ;;  %v9957_v55 = vld [vmem:[#allocation30_spill] sm:$0xff] }
 0x258   :  { %v9956_v50 = vmax.f32 %v9954_v16, %v9955_v20  ;;  %v9966_v20 = vld [vmem:[#allocation36_spill] sm:$0xff] }
 0x259   :  { %v2480_v48 = vadd.f32 %v8638_v7, %v2423_v41  ;;  %v2424_v29 = vmax.f32 %v1891_v12, %v2317_v33  ;;  %v9958_v12 = vld [vmem:[#allocation31_spill] sm:$0xff] }
 0x25a   :  { %6766 = vmatpush3.bf16.msra.mxu0 %v7230_v24  ;;  %6790 = vmatpush3.bf16.msra.mxu1 %v7231_v46  ;;  %v7238_v46 = vld [vmem:[%s9773_s3 + $0x230] sm:$0xff]   ;;  %v9959_v41 = vmax.f32 %v9957_v55, %v9958_v12  ;;  %v7247_v55 = vld [vmem:[%s9773_s3 + $0x2e0] sm:$0xff]  }
 0x25b   :  { %v2481_v45 = vadd.f32 %v8638_v7, %v2424_v29  ;;  %6767 = vmatprep.subr.bf16.mxu0 %v9885_v37  ;;  %6791 = vmatprep.subr.bf16.mxu1 %v9885_v37  ;;  %v2530_v23 = vmax.f32 %v2480_v48, 0.0 }
 0x25c   :  { %v1789_v59 = vpop.f32.mrb[164].mxu0  ;;  %v2322_v1 = vpop.f32.mrb[164].mxu1 }
 0x25d   :  { %v2531_v52 = vmax.f32 %v2481_v45, 0.0  ;;  %v1892_v28 = vmax.f32 %v9950_v6, %v1789_v59  ;;  %v1791_v35 = vpop.f32.mrb[165].mxu0  ;;  %v2324_v36 = vpop.f32.mrb[165].mxu1  ;;  %v7240_v45 = vld [vmem:[%s9773_s3 + $0x238] sm:$0xff]   ;;  %v7241_v59 = vld [vmem:[%s9773_s3 + $0x2c8] sm:$0xff]  }
 0x25e   :  { %6768 = vmatpush3.bf16.msra.mxu0 %v7232_v8  ;;  %6792 = vmatpush3.bf16.msra.mxu1 %v7233_v2  ;;  %v1792_v40 = vpop.f32.mrb[166].mxu0  ;;  %v2325_v56 = vpop.f32.mrb[166].mxu1  ;;  %v9961_v6 = vld [vmem:[#allocation33_spill] sm:$0xff] }
 0x25f   :  { %v9049_v19 = vpack.c.bf16 %v2531_v52, %v2530_v23  ;;  %v1893_v13 = vmax.f32 %v9953_v11, %v1792_v40  ;;  %v2425_v63 = vmax.f32 %v1892_v28, %v2322_v1  ;;  %6769 = vmatprep.subr.bf16.mxu0 %v9885_v37  ;;  %6793 = vmatprep.subr.bf16.mxu1 %v9885_v37  ;;  %v1794_v9 = vpop.f32.mrb[167].mxu0  ;;  %v2327_v39 = vpop.f32.mrb[167].mxu1  ;;  %v9964_v11 = vld [vmem:[#allocation35_spill] sm:$0xff] }
 0x260   :  { %v9962_v28 = vmax.f32 %v9960_v5, %v9961_v6 }
 0x261   :  { %v2482_v18 = vadd.f32 %v8638_v7, %v2425_v63  ;;  %v2426_v17 = vmax.f32 %v1893_v13, %v2325_v56  ;;  %v9965_v13 = vmax.f32 %v9963_v43, %v9964_v11  ;;  %v7250_v43 = vld [vmem:[%s9773_s3 + $0x2a0] sm:$0xff]   ;;  %v7251_v11 = vld [vmem:[%s9773_s3 + $0x2f0] sm:$0xff]  }
 0x262   :  { %6770 = vmatpush3.bf16.msra.mxu0 %v7234_v21  ;;  %6794 = vmatpush3.bf16.msra.mxu1 %v7235_v0  ;;  %v7242_v21 = vld [vmem:[%s9773_s3 + $0x280] sm:$0xff]   ;;  %v7243_v0 = vld [vmem:[%s9773_s3 + $0x2d0] sm:$0xff]  }
 0x263   :  { %v2483_v51 = vadd.f32 %v8638_v7, %v2426_v17  ;;  %6771 = vmatprep.subr.bf16.mxu0 %v9885_v37  ;;  %6795 = vmatprep.subr.bf16.mxu1 %v9885_v37  ;;  %v2532_v15 = vmax.f32 %v2482_v18, 0.0  ;;  %v9114_v17 = vld [vmem:[%s9774_s2] ss:$0 sm:$0xff] }
 0x264   :  { %v1797_v60 = vpop.f32.mrb[168].mxu0  ;;  %v2330_v47 = vpop.f32.mrb[168].mxu1 }
 0x265   :  { %v2533_v3 = vmax.f32 %v2483_v51, 0.0  ;;  %v1894_v32 = vmax.f32 %v9956_v50, %v1797_v60  ;;  %v1799_v27 = vpop.f32.mrb[169].mxu0  ;;  %v2332_v4 = vpop.f32.mrb[169].mxu1  ;;  %v7244_v51 = vld [vmem:[%s9773_s3 + $0x288] sm:$0xff]   ;;  %v7245_v60 = vld [vmem:[%s9773_s3 + $0x2d8] sm:$0xff]  }
 0x266   :  { %6772 = vmatpush3.bf16.msra.mxu0 %v7236_v25  ;;  %6796 = vmatpush3.bf16.msra.mxu1 %v7237_v14  ;;  %v1800_v33 = vpop.f32.mrb[170].mxu0  ;;  %v2333_v24 = vpop.f32.mrb[170].mxu1  ;;  %v9967_v50 = vld [vmem:[#allocation37_spill] sm:$0xff] }
 0x267   :  { %v9075_v62 = vpack.c.bf16 %v2533_v3, %v2532_v15  ;;  %v1895_v10 = vmax.f32 %v9959_v41, %v1800_v33  ;;  %v2427_v44 = vmax.f32 %v1894_v32, %v2330_v47  ;;  %6773 = vmatprep.subr.bf16.mxu0 %v9885_v37  ;;  %6821 = vmatprep.subr.bf16.mxu1 %v9885_v37  ;;  %v1802_v48 = vpop.f32.mrb[171].mxu0  ;;  %v2335_v29 = vpop.f32.mrb[171].mxu1  ;;  %v9969_v41 = vld [vmem:[#allocation38_spill] sm:$0xff] }
 0x268   :  { %v9968_v32 = vmax.f32 %v9966_v20, %v9967_v50 }
 0x269   :  { %v2484_v8 = vadd.f32 %v8638_v7, %v2427_v44  ;;  %v2428_v2 = vmax.f32 %v1895_v10, %v2333_v24  ;;  %6798 = vmatmul.mubr.bf16.vlgmr.msra.gmra.mrb[216].mxu1 %v8884_v49  ;;  %v9970_v10 = vld [vmem:[#allocation39_spill] sm:$0xff] }
 0x26a   :  { %6774 = vmatpush3.bf16.msra.mxu0 %v7238_v46  ;;  %6822 = vmatpush3.bf16.msra.mxu1 %v7239_v54  ;;  %v7246_v54 = vld [vmem:[%s9773_s3 + $0x290] sm:$0xff]   ;;  %v9971_v44 = vmax.f32 %v9969_v41, %v9970_v10  ;;  %v7255_v10 = vld [vmem:[%s9773_s3 + $0x340] sm:$0xff]  }
 0x26b   :  { %v2485_v1 = vadd.f32 %v8638_v7, %v2428_v2  ;;  %6775 = vmatprep.subr.bf16.mxu0 %v9885_v37  ;;  %6823 = vmatprep.subr.bf16.mxu1 %v9885_v37  ;;  %v2534_v49 = vmax.f32 %v2484_v8, 0.0  ;;  %v7254_v41 = vld [vmem:[%s9773_s3 + $0x2b0] sm:$0xff]  }
 0x26c   :  { %v1805_v23 = vpop.f32.mrb[172].mxu0  ;;  %v2338_v52 = vpop.f32.mrb[172].mxu1  ;;  %6837 = vmatprep.mubr.msk.bf16.mxu1 %vm7387_vm0, %v9885_v37 }
 0x26d   :  { %v2535_v58 = vmax.f32 %v2485_v1, 0.0  ;;  %v1896_v35 = vmax.f32 %v9962_v28, %v1805_v23  ;;  %v1807_v36 = vpop.f32.mrb[173].mxu0  ;;  %v2340_v40 = vpop.f32.mrb[173].mxu1  ;;  %v7248_v1 = vld [vmem:[%s9773_s3 + $0x298] sm:$0xff]   ;;  %v7249_v23 = vld [vmem:[%s9773_s3 + $0x2e8] sm:$0xff]   ;;  %v9972_v28 = vld [vmem:[#allocation40_spill] sm:$0xff] }
 0x26e   :  { %6776 = vmatpush3.bf16.msra.mxu0 %v7240_v45  ;;  %6824 = vmatpush3.bf16.msra.mxu1 %v7241_v59  ;;  %v1808_v7 = vpop.f32.mrb[174].mxu0  ;;  %v2341_v56 = vpop.f32.mrb[174].mxu1 }
 0x26f   :  { %v9104_v42 = vpack.c.bf16 %v2535_v58, %v2534_v49  ;;  %v1897_v63 = vmax.f32 %v9965_v13, %v1808_v7  ;;  %v2429_v9 = vmax.f32 %v1896_v35, %v2338_v52  ;;  %6801 = vmatprep.subr.bf16.mxu0 %v9885_v37  ;;  %6825 = vmatprep.subr.bf16.mxu1 %v9885_v37  ;;  %v1810_v39 = vpop.f32.mrb[175].mxu0  ;;  %v2343_v18 = vpop.f32.mrb[175].mxu1  ;;  %v9973_v35 = vld [vmem:[#allocation41_spill] sm:$0xff] }
 0x270   :  { %v9974_v36 = vmax.f32 %v9972_v28, %v9973_v35 }
 0x271   :  { %v2486_v25 = vadd.f32 %v9114_v17, %v2429_v9  ;;  %v2430_v14 = vmax.f32 %v1897_v63, %v2341_v56  ;;  %6778 = vmatmul.mubr.bf16.vlgmr.msra.gmra.mrb[216].mxu0 %v8855_v26  ;;  %v9975_v63 = vld [vmem:[#allocation42_spill] sm:$0xff]  ;;  %v9976_v9 = vld [vmem:[#allocation43_spill] sm:$0xff] }
 0x272   :  { %6802 = vmatpush3.bf16.msra.mxu0 %v7242_v21  ;;  %6826 = vmatpush3.bf16.msra.mxu1 %v7243_v0  ;;  %v9977_v39 = vmax.f32 %v9975_v63, %v9976_v9 }
 0x273   :  { %v2487_v47 = vadd.f32 %v9114_v17, %v2430_v14  ;;  %6803 = vmatprep.subr.bf16.mxu0 %v9885_v37  ;;  %6827 = vmatprep.subr.bf16.mxu1 %v9885_v37  ;;  %v2536_v26 = vmax.f32 %v2486_v25, 0.0 }
 0x274   :  { %v1813_v15 = vpop.f32.mrb[176].mxu0  ;;  %v2346_v3 = vpop.f32.mrb[176].mxu1  ;;  %6817 = vmatprep.mubr.msk.bf16.mxu0 %vm7387_vm0, %v9885_v37 }
 0x275   :  { %v2537_v16 = vmax.f32 %v2487_v47, 0.0  ;;  %v1898_v27 = vmax.f32 %v9968_v32, %v1813_v15  ;;  %v1815_v4 = vpop.f32.mrb[177].mxu0  ;;  %v2348_v33 = vpop.f32.mrb[177].mxu1  ;;  %v7252_v15 = vld [vmem:[%s9773_s3 + $0x2a8] sm:$0xff]  }
 0x276   :  { %6804 = vmatpush3.bf16.msra.mxu0 %v7244_v51  ;;  %6828 = vmatpush3.bf16.msra.mxu1 %v7245_v60  ;;  %v1816_v24 = vpop.f32.mrb[178].mxu0  ;;  %v2349_v46 = vpop.f32.mrb[178].mxu1 }
 0x277   :  { %v9138_v12 = vpack.c.bf16 %v2537_v16, %v2536_v26  ;;  %v1899_v48 = vmax.f32 %v9971_v44, %v1816_v24  ;;  %v2431_v29 = vmax.f32 %v1898_v27, %v2346_v3  ;;  %6805 = vmatprep.subr.bf16.mxu0 %v9885_v37  ;;  %6829 = vmatprep.subr.bf16.mxu1 %v9885_v37  ;;  %v1818_v8 = vpop.f32.mrb[179].mxu0  ;;  %v2351_v2 = vpop.f32.mrb[179].mxu1  ;;  %v7253_v3 = vld [vmem:[%s9773_s3 + $0x2f8] sm:$0xff]   ;;  %v9978_v27 = vld [vmem:[#allocation44_spill] sm:$0xff] }
 0x278   :  { %v9979_v4 = vmax.f32 %v8580_v34, %v9978_v27  ;;  %v9980_v34 = vmax.f32 %v8586_v30, %v8588_v31  ;;  %v7257_v31 = vld [vmem:[%s9773_s3 + $0x348] sm:$0xff]  }
 0x279   :  { %v2488_v45 = vadd.f32 %v9114_v17, %v2431_v29  ;;  %v2432_v59 = vmax.f32 %v1899_v48, %v2349_v46 }
 0x27a   :  { %6806 = vmatpush3.bf16.msra.mxu0 %v7246_v54  ;;  %6830 = vmatpush3.bf16.msra.mxu1 %v7247_v55 }
 0x27b   :  { %v2489_v52 = vadd.f32 %v9114_v17, %v2432_v59  ;;  %6807 = vmatprep.subr.bf16.mxu0 %v9885_v37  ;;  %6831 = vmatprep.subr.bf16.mxu1 %v9885_v37  ;;  %v2538_v5 = vmax.f32 %v2488_v45, 0.0 }
 0x27c   :  { %v1821_v49 = vpop.f32.mrb[180].mxu0  ;;  %v2354_v58 = vpop.f32.mrb[180].mxu1 }
 0x27d   :  { %v2539_v6 = vmax.f32 %v2489_v52, 0.0  ;;  %v1900_v40 = vmax.f32 %v9974_v36, %v1821_v49  ;;  %v1823_v7 = vpop.f32.mrb[181].mxu0  ;;  %v2356_v56 = vpop.f32.mrb[181].mxu1 }
 0x27e   :  { %6808 = vmatpush3.bf16.msra.mxu0 %v7248_v1  ;;  %6832 = vmatpush3.bf16.msra.mxu1 %v7249_v23  ;;  %v1824_v21 = vpop.f32.mrb[182].mxu0  ;;  %v2357_v0 = vpop.f32.mrb[182].mxu1  ;;  %v7256_v1 = vld [vmem:[%s9773_s3 + $0x2b8] sm:$0xff]   ;;  %v7258_v56 = vld [vmem:[%s9773_s3 + $0x300] sm:$0xff]  }
 0x27f   :  { %v9164_v13 = vpack.c.bf16 %v2539_v6, %v2538_v5  ;;  %v1901_v18 = vmax.f32 %v9977_v39, %v1824_v21  ;;  %v2433_v25 = vmax.f32 %v1900_v40, %v2354_v58  ;;  %6809 = vmatprep.subr.bf16.mxu0 %v9885_v37  ;;  %6833 = vmatprep.subr.bf16.mxu1 %v9885_v37  ;;  %v1826_v14 = vpop.f32.mrb[183].mxu0  ;;  %v2359_v51 = vpop.f32.mrb[183].mxu1  ;;  %v9981_v58 = vld [vmem:[#allocation45_spill] sm:$0xff]  ;;  %v9982_v5 = vld [vmem:[#allocation46_spill] sm:$0xff]  ;;  %v7259_v21 = vld [vmem:[%s9773_s3 + $0x350] sm:$0xff]  }
 0x280   :  { %v9983_v6 = vmax.f32 %v9981_v58, %v9982_v5  ;;  %v9993_v5 = vld [vmem:[#allocation53_spill] sm:$0xff] }
 0x281   :  { %v2490_v60 = vadd.f32 %v9114_v17, %v2433_v25  ;;  %v2434_v47 = vmax.f32 %v1901_v18, %v2357_v0 }
 0x282   :  { %6810 = vmatpush3.bf16.msra.mxu0 %v7250_v43  ;;  %6834 = vmatpush3.bf16.msra.mxu1 %v7251_v11  ;;  %v9984_v43 = vld [vmem:[#allocation47_spill] sm:$0xff]  ;;  %v9985_v11 = vld [vmem:[#allocation48_spill] sm:$0xff] }
 0x283   :  { %v2491_v26 = vadd.f32 %v9114_v17, %v2434_v47  ;;  %6811 = vmatprep.subr.bf16.mxu0 %v9885_v37  ;;  %6835 = vmatprep.subr.bf16.mxu1 %v9885_v37  ;;  %v2540_v50 = vmax.f32 %v2490_v60, 0.0  ;;  %v9986_v63 = vmax.f32 %v9984_v43, %v9985_v11  ;;  %v7260_v60 = vld [vmem:[%s9773_s3 + $0x308] sm:$0xff]   ;;  %v7261_v47 = vld [vmem:[%s9773_s3 + $0x358] sm:$0xff]   ;;  %v7267_v43 = vld [vmem:[%s9773_s3 + $0x370] sm:$0xff]  }
 0x284   :  { %v1829_v16 = vpop.f32.mrb[184].mxu0  ;;  %v2362_v20 = vpop.f32.mrb[184].mxu1 }
 0x285   :  { %v2541_v32 = vmax.f32 %v2491_v26, 0.0  ;;  %v1902_v33 = vmax.f32 %v9979_v4, %v1829_v16  ;;  %v1831_v24 = vpop.f32.mrb[185].mxu0  ;;  %v2364_v46 = vpop.f32.mrb[185].mxu1 }
 0x286   :  { %6812 = vmatpush3.bf16.msra.mxu0 %v7252_v15  ;;  %6836 = vmatpush3.bf16.msra.mxu1 %v7253_v3  ;;  %v1832_v54 = vpop.f32.mrb[186].mxu0  ;;  %v2365_v55 = vpop.f32.mrb[186].mxu1 }
 0x287   :  { %v9190_v44 = vpack.c.bf16 %v2541_v32, %v2540_v50  ;;  %v1903_v48 = vmax.f32 %v9980_v34, %v1832_v54  ;;  %v2435_v29 = vmax.f32 %v1902_v33, %v2362_v20  ;;  %6813 = vmatprep.subr.bf16.mxu0 %v9885_v37  ;;  %6861 = vmatprep.subr.bf16.mxu1 %v9885_v37  ;;  %v1834_v8 = vpop.f32.mrb[187].mxu0  ;;  %v2367_v2 = vpop.f32.mrb[187].mxu1  ;;  %v9987_v20 = vld [vmem:[#allocation49_spill] sm:$0xff]  ;;  %v9988_v50 = vld [vmem:[#allocation50_spill] sm:$0xff]  ;;  %v7262_v54 = vld [vmem:[%s9773_s3 + $0x310] sm:$0xff]  }
 0x288   :  { %v9989_v32 = vmax.f32 %v9987_v20, %v9988_v50  ;;  %v9991_v34 = vld [vmem:[#allocation52_spill] sm:$0xff]  ;;  %v7271_v50 = vld [vmem:[%s9773_s3 + $0x3c0] sm:$0xff]  }
 0x289   :  { %v2492_v45 = vadd.f32 %v9114_v17, %v2435_v29  ;;  %v2436_v59 = vmax.f32 %v1903_v48, %v2365_v55  ;;  %6838 = vmatmul.mubr.bf16.vlgmr.msra.gmra.mrb[220].mxu1 %v8939_v57  ;;  %v7263_v55 = vld [vmem:[%s9773_s3 + $0x360] sm:$0xff]   ;;  %v7270_v20 = vld [vmem:[%s9773_s3 + $0x330] sm:$0xff]  }
 0x28a   :  { %6814 = vmatpush3.bf16.msra.mxu0 %v7254_v41  ;;  %6862 = vmatpush3.bf16.msra.mxu1 %v7255_v10  ;;  %v9990_v10 = vld [vmem:[#allocation51_spill] sm:$0xff] }
 0x28b   :  { %v2493_v30 = vadd.f32 %v9114_v17, %v2436_v59  ;;  %6815 = vmatprep.subr.bf16.mxu0 %v9885_v37  ;;  %6863 = vmatprep.subr.bf16.mxu1 %v9885_v37  ;;  %v2542_v57 = vmax.f32 %v2492_v45, 0.0  ;;  %v9992_v48 = vmax.f32 %v9990_v10, %v9991_v34 }
 0x28c   :  { %v1837_v23 = vpop.f32.mrb[188].mxu0  ;;  %v2370_v52 = vpop.f32.mrb[188].mxu1  ;;  %6877 = vmatprep.mubr.msk.bf16.mxu1 %vm7387_vm0, %v9885_v37 }
 0x28d   :  { %v2543_v49 = vmax.f32 %v2493_v30, 0.0  ;;  %v1904_v28 = vmax.f32 %v9983_v6, %v1837_v23  ;;  %v1839_v35 = vpop.f32.mrb[189].mxu0  ;;  %v2372_v36 = vpop.f32.mrb[189].mxu1  ;;  %v7265_v30 = vld [vmem:[%s9773_s3 + $0x368] sm:$0xff]   ;;  %v9994_v6 = vld [vmem:[#allocation54_spill] sm:$0xff] }
 0x28e   :  { %6816 = vmatpush3.bf16.msra.mxu0 %v7256_v1  ;;  %6864 = vmatpush3.bf16.msra.mxu1 %v7257_v31  ;;  %v1840_v40 = vpop.f32.mrb[190].mxu0  ;;  %v2373_v7 = vpop.f32.mrb[190].mxu1  ;;  %v7264_v31 = vld [vmem:[%s9773_s3 + $0x318] sm:$0xff]  }
 0x28f   :  { %v9219_v0 = vpack.c.bf16 %v2543_v49, %v2542_v57  ;;  %v1905_v9 = vmax.f32 %v9986_v63, %v1840_v40  ;;  %v2437_v39 = vmax.f32 %v1904_v28, %v2370_v52  ;;  %6841 = vmatprep.subr.bf16.mxu0 %v9885_v37  ;;  %6865 = vmatprep.subr.bf16.mxu1 %v9885_v37  ;;  %v1842_v18 = vpop.f32.mrb[191].mxu0  ;;  %v2375_v25 = vpop.f32.mrb[191].mxu1  ;;  %v9996_v63 = vld [vmem:[#allocation55_spill] sm:$0xff] }
 0x290   :  { %v9995_v28 = vmax.f32 %v9993_v5, %v9994_v6  ;;  %v7288_v5 = vld [vmem:[%s9773_s3 + $0x3b8] sm:$0xff]   ;;  %v7289_v6 = vld [vmem:[%s9773_s3 + $0x448] sm:$0xff]  }
 0x291   :  { %v2494_v14 = vadd.f32 %v9114_v17, %v2437_v39  ;;  %v2438_v51 = vmax.f32 %v1905_v9, %v2373_v7  ;;  %6818 = vmatmul.mubr.bf16.vlgmr.msra.gmra.mrb[220].mxu0 %v8913_v61  ;;  %v9997_v9 = vld [vmem:[#allocation56_spill] sm:$0xff] }
 0x292   :  { %6842 = vmatpush3.bf16.msra.mxu0 %v7258_v56  ;;  %6866 = vmatpush3.bf16.msra.mxu1 %v7259_v21  ;;  %v7266_v21 = vld [vmem:[%s9773_s3 + $0x320] sm:$0xff]   ;;  %v9998_v39 = vmax.f32 %v9996_v63, %v9997_v9 }
 0x293   :  { %v2495_v15 = vadd.f32 %v9114_v17, %v2438_v51  ;;  %6843 = vmatprep.subr.bf16.mxu0 %v9885_v37  ;;  %6867 = vmatprep.subr.bf16.mxu1 %v9885_v37  ;;  %v2544_v61 = vmax.f32 %v2494_v14, 0.0  ;;  %v7298_v9 = vld [vmem:[%s9773_s3 + $0x420] sm:$0xff]  }
 0x294   :  { %v1845_v3 = vpop.f32.mrb[192].mxu0  ;;  %v2378_v26 = vpop.f32.mrb[192].mxu1  ;;  %6857 = vmatprep.mubr.msk.bf16.mxu0 %vm7387_vm0, %v9885_v37 }
 0x295   :  { %v2545_v16 = vmax.f32 %v2495_v15, 0.0  ;;  %v1906_v27 = vmax.f32 %v9989_v32, %v1845_v3  ;;  %v1847_v4 = vpop.f32.mrb[193].mxu0  ;;  %v2380_v33 = vpop.f32.mrb[193].mxu1  ;;  %v7268_v15 = vld [vmem:[%s9773_s3 + $0x328] sm:$0xff]   ;;  %v7269_v3 = vld [vmem:[%s9773_s3 + $0x378] sm:$0xff]  }
 0x296   :  { %6844 = vmatpush3.bf16.msra.mxu0 %v7260_v60  ;;  %6868 = vmatpush3.bf16.msra.mxu1 %v7261_v47  ;;  %v1848_v24 = vpop.f32.mrb[194].mxu0  ;;  %v2381_v46 = vpop.f32.mrb[194].mxu1  ;;  %v7275_v4 = vld [vmem:[%s9773_s3 + $0x3d0] sm:$0xff]   ;;  %v7276_v33 = vld [vmem:[%s9773_s3 + $0x388] sm:$0xff]  }
 0x297   :  { %v9248_v41 = vpack.c.bf16 %v2545_v16, %v2544_v61  ;;  %v1907_v29 = vmax.f32 %v9992_v48, %v1848_v24  ;;  %v2439_v8 = vmax.f32 %v1906_v27, %v2378_v26  ;;  %6845 = vmatprep.subr.bf16.mxu0 %v9885_v37  ;;  %6869 = vmatprep.subr.bf16.mxu1 %v9885_v37  ;;  %v1850_v2 = vpop.f32.mrb[195].mxu0  ;;  %v2383_v45 = vpop.f32.mrb[195].mxu1  ;;  %v7273_v27 = vld [vmem:[%s9773_s3 + $0x3c8] sm:$0xff]   ;;  %v7277_v24 = vld [vmem:[%s9773_s3 + $0x3d8] sm:$0xff]  }
 0x298   :  { %v7284_v45 = vld [vmem:[%s9773_s3 + $0x3a8] sm:$0xff]  }
 0x299   :  { %v2496_v59 = vadd.f32 %v9114_v17, %v2439_v8  ;;  %v2440_v1 = vmax.f32 %v1907_v29, %v2381_v46  ;;  %v7279_v46 = vld [vmem:[%s9773_s3 + $0x3e0] sm:$0xff]   ;;  %v7283_v8 = vld [vmem:[%s9773_s3 + $0x3f0] sm:$0xff]  }
 0x29a   :  { %6846 = vmatpush3.bf16.msra.mxu0 %v7262_v54  ;;  %6870 = vmatpush3.bf16.msra.mxu1 %v7263_v55  ;;  %v7280_v54 = vld [vmem:[%s9773_s3 + $0x398] sm:$0xff]   ;;  %v7281_v55 = vld [vmem:[%s9773_s3 + $0x3e8] sm:$0xff]   ;;  %v7282_v29 = vld [vmem:[%s9773_s3 + $0x3a0] sm:$0xff]  }
 0x29b   :  { %v2497_v23 = vadd.f32 %v9114_v17, %v2440_v1  ;;  %6847 = vmatprep.subr.bf16.mxu0 %v9885_v37  ;;  %6871 = vmatprep.subr.bf16.mxu1 %v9885_v37  ;;  %v2546_v49 = vmax.f32 %v2496_v59, 0.0  ;;  %v7285_v59 = vld [vmem:[%s9773_s3 + $0x3f8] sm:$0xff]  }
 0x29c   :  { %v1853_v52 = vpop.f32.mrb[196].mxu0  ;;  %v2386_v57 = vpop.f32.mrb[196].mxu1 }
 0x29d   :  { %v2547_v58 = vmax.f32 %v2497_v23, 0.0  ;;  %v1908_v35 = vmax.f32 %v9995_v28, %v1853_v52  ;;  %v1855_v36 = vpop.f32.mrb[197].mxu0  ;;  %v2388_v40 = vpop.f32.mrb[197].mxu1  ;;  %v7286_v52 = vld [vmem:[%s9773_s3 + $0x3b0] sm:$0xff]  }
 0x29e   :  { %6848 = vmatpush3.bf16.msra.mxu0 %v7264_v31  ;;  %6872 = vmatpush3.bf16.msra.mxu1 %v7265_v30  ;;  %v1856_v7 = vpop.f32.mrb[198].mxu0  ;;  %v2389_v56 = vpop.f32.mrb[198].mxu1  ;;  %v7291_v28 = vld [vmem:[%s9773_s3 + $0x450] sm:$0xff]   ;;  %v7293_v36 = vld [vmem:[%s9773_s3 + $0x458] sm:$0xff]   ;;  %v7295_v40 = vld [vmem:[%s9773_s3 + $0x460] sm:$0xff]  }
 0x29f   :  { %v9274_v11 = vpack.c.bf16 %v2547_v58, %v2546_v49  ;;  %v1909_v18 = vmax.f32 %v9998_v39, %v1856_v7  ;;  %v2441_v25 = vmax.f32 %v1908_v35, %v2386_v57  ;;  %6849 = vmatprep.subr.bf16.mxu0 %v9885_v37  ;;  %6873 = vmatprep.subr.bf16.mxu1 %v9885_v37  ;;  %v2391_v14 = vpop.f32.mrb[199].mxu1  ;;  %v1858_v51 = vpop.f32.mrb[199].mxu0  ;;  %v7287_v57 = vld [vmem:[%s9773_s3 + $0x440] sm:$0xff]   ;;  %v7292_v35 = vld [vmem:[%s9773_s3 + $0x408] sm:$0xff]   ;;  %v7296_v7 = vld [vmem:[%s9773_s3 + $0x418] sm:$0xff]  }
 0x2a0   :  { %v7299_v39 = vld [vmem:[%s9773_s3 + $0x470] sm:$0xff]   ;;  %v7301_v14 = vld [vmem:[%s9773_s3 + $0x478] sm:$0xff]  }
 0x2a1   :  { %v2498_v60 = vadd.f32 %v9114_v17, %v2441_v25  ;;  %v2442_v47 = vmax.f32 %v1909_v18, %v2389_v56  ;;  %v7297_v56 = vld [vmem:[%s9773_s3 + $0x468] sm:$0xff]  }
 0x2a2   :  { %6850 = vmatpush3.bf16.msra.mxu0 %v7266_v21  ;;  %6874 = vmatpush3.bf16.msra.mxu1 %v7267_v43  ;;  %v7300_v25 = vld [vmem:[%s9773_s3 + $0x428] sm:$0xff]  }
 0x2a3   :  { %v2499_v26 = vadd.f32 %v9114_v17, %v2442_v47  ;;  %6851 = vmatprep.subr.bf16.mxu0 %v9885_v37  ;;  %6875 = vmatprep.subr.bf16.mxu1 %v9885_v37  ;;  %v2548_v61 = vmax.f32 %v2498_v60, 0.0  ;;  %v7272_v17 = vld [vmem:[%s9773_s3 + $0x338] sm:$0xff]  }
 0x2a5   :  { %v2549_v16 = vmax.f32 %v2499_v26, 0.0  ;;  %v7303_v26 = vld [vmem:[%s9773_s3 + $0x4c0] sm:$0xff]  }
 0x2a6   :  { %6852 = vmatpush3.bf16.msra.mxu0 %v7268_v15  ;;  %6876 = vmatpush3.bf16.msra.mxu1 %v7269_v3  ;;  %v7302_v3 = vld [vmem:[%s9773_s3 + $0x430] sm:$0xff]  }
 0x2a7   :  { %v9297_v32 = vpack.c.bf16 %v2549_v16, %v2548_v61  ;;  %6853 = vmatprep.subr.bf16.mxu0 %v9885_v37  ;;  %6901 = vmatprep.subr.bf16.mxu1 %v9885_v37 }
 0x2a9   :  { %6878 = vmatmul.mubr.bf16.vlgmr.msra.gmra.mrb[224].mxu1 %v8994_v53  ;;  %v7274_v53 = vld [vmem:[%s9773_s3 + $0x380] sm:$0xff]  }
 0x2aa   :  { %6854 = vmatpush3.bf16.msra.mxu0 %v7270_v20  ;;  %6902 = vmatpush3.bf16.msra.mxu1 %v7271_v50 }
 0x2ab   :  { %6855 = vmatprep.subr.bf16.mxu0 %v9885_v37  ;;  %6903 = vmatprep.subr.bf16.mxu1 %v9885_v37 }
 0x2ac   :  { %6917 = vmatprep.mubr.msk.bf16.mxu1 %vm7387_vm0, %v9885_v37 }
 0x2ae   :  { %6856 = vmatpush3.bf16.msra.mxu0 %v7272_v17  ;;  %6904 = vmatpush3.bf16.msra.mxu1 %v7273_v27  ;;  %v7304_v17 = vld [vmem:[%s9773_s3 + $0x438] sm:$0xff]   ;;  %v7305_v27 = vld [vmem:[%s9773_s3 + $0x4c8] sm:$0xff]  }
 0x2af   :  { %6881 = vmatprep.subr.bf16.mxu0 %v9885_v37  ;;  %6905 = vmatprep.subr.bf16.mxu1 %v9885_v37 }
 0x2b1   :  { %6858 = vmatmul.mubr.bf16.vlgmr.msra.gmra.mrb[224].mxu0 %v8965_v38  ;;  %v7278_v38 = vld [vmem:[%s9773_s3 + $0x390] sm:$0xff]  }
 0x2b2   :  { %6882 = vmatpush3.bf16.msra.mxu0 %v7274_v53  ;;  %6906 = vmatpush3.bf16.msra.mxu1 %v7275_v4  ;;  %v7307_v53 = vld [vmem:[%s9773_s3 + $0x4d0] sm:$0xff]   ;;  %v7308_v4 = vld [vmem:[%s9773_s3 + $0x488] sm:$0xff]  }
 0x2b3   :  { %6883 = vmatprep.subr.bf16.mxu0 %v9885_v37  ;;  %6907 = vmatprep.subr.bf16.mxu1 %v9885_v37 }
 0x2b4   :  { %6897 = vmatprep.mubr.msk.bf16.mxu0 %vm7387_vm0, %v9885_v37 }
 0x2b6   :  { %6884 = vmatpush3.bf16.msra.mxu0 %v7276_v33  ;;  %6908 = vmatpush3.bf16.msra.mxu1 %v7277_v24  ;;  %v7309_v33 = vld [vmem:[%s9773_s3 + $0x4d8] sm:$0xff]   ;;  %v7311_v24 = vld [vmem:[%s9773_s3 + $0x4e0] sm:$0xff]  }
 0x2b7   :  { %6885 = vmatprep.subr.bf16.mxu0 %v9885_v37  ;;  %6909 = vmatprep.subr.bf16.mxu1 %v9885_v37 }
 0x2ba   :  { %6886 = vmatpush3.bf16.msra.mxu0 %v7278_v38  ;;  %6910 = vmatpush3.bf16.msra.mxu1 %v7279_v46  ;;  %v7312_v38 = vld [vmem:[%s9773_s3 + $0x498] sm:$0xff]   ;;  %v7313_v46 = vld [vmem:[%s9773_s3 + $0x4e8] sm:$0xff]  }
 0x2bb   :  { %6887 = vmatprep.subr.bf16.mxu0 %v9885_v37  ;;  %6911 = vmatprep.subr.bf16.mxu1 %v9885_v37 }
 0x2bc   :  { %v2779_v10 = vpop.f32.mrb[200].mxu1 }
 0x2bd   :  { %v6639_v34 = vpop.f32.mrb[201].mxu1 }
 0x2be   :  { %6888 = vmatpush3.bf16.msra.mxu0 %v7280_v54  ;;  %6912 = vmatpush3.bf16.msra.mxu1 %v7281_v55  ;;  %v2782_v48 = vpop.f32.mrb[202].mxu1  ;;  %v7314_v34 = vld [vmem:[%s9773_s3 + $0x4a0] sm:$0xff]  }
 0x2bf   :  { %v6640_v2 = vpop.f32.mrb[203].mxu1  ;;  %6889 = vmatprep.subr.bf16.mxu0 %v9885_v37  ;;  %6913 = vmatprep.subr.bf16.mxu1 %v9885_v37 }
 0x2c0   :  { %v7317_v2 = vld [vmem:[%s9773_s3 + $0x4f8] sm:$0xff]  }
 0x2c2   :  { %6890 = vmatpush3.bf16.msra.mxu0 %v7282_v29  ;;  %6914 = vmatpush3.bf16.msra.mxu1 %v7283_v8  ;;  %v7316_v8 = vld [vmem:[%s9773_s3 + $0x4a8] sm:$0xff]  }
 0x2c3   :  { %6891 = vmatprep.subr.bf16.mxu0 %v9885_v37  ;;  %6915 = vmatprep.subr.bf16.mxu1 %v9885_v37 }
 0x2c4   :  { %v2690_v1 = vpop.f32.mrb[200].mxu0 }
 0x2c5   :  { %v2780_v31 = vadd.f32 %v2779_v10, %v2690_v1  ;;  %v6619_v30 = vpop.f32.mrb[201].mxu0 }
 0x2c6   :  { %6892 = vmatpush3.bf16.msra.mxu0 %v7284_v45  ;;  %6916 = vmatpush3.bf16.msra.mxu1 %v7285_v59  ;;  %v2693_v23 = vpop.f32.mrb[202].mxu0  ;;  %v7318_v30 = vld [vmem:[%s9773_s3 + $0x4b0] sm:$0xff]  }
 0x2c7   :  { %v2783_v49 = vadd.f32 %v2782_v48, %v2693_v23  ;;  %v6620_v58 = vpop.f32.mrb[203].mxu0  ;;  %6893 = vmatprep.subr.bf16.mxu0 %v9885_v37  ;;  %6941 = vmatprep.subr.bf16.mxu1 %v9885_v37  ;;  %v7315_v48 = vld [vmem:[%s9773_s3 + $0x4f0] sm:$0xff]   ;;  %v7319_v23 = vld [vmem:[%s9773_s3 + $0x540] sm:$0xff]  }
 0x2c9   :  { %6918 = vmatmul.mubr.bf16.vlgmr.msra.gmra.mrb[228].mxu1 %v9049_v19  ;;  %v7290_v19 = vld [vmem:[%s9773_s3 + $0x400] sm:$0xff]  }
 0x2ca   :  { %6894 = vmatpush3.bf16.msra.mxu0 %v7286_v52  ;;  %6942 = vmatpush3.bf16.msra.mxu1 %v7287_v57 }
 0x2cb   :  { %6895 = vmatprep.subr.bf16.mxu0 %v9885_v37  ;;  %6943 = vmatprep.subr.bf16.mxu1 %v9885_v37 }
 0x2cc   :  { %6957 = vmatprep.mubr.msk.bf16.mxu1 %vm7387_vm0, %v9885_v37 }
 0x2ce   :  { %6896 = vmatpush3.bf16.msra.mxu0 %v7288_v5  ;;  %6944 = vmatpush3.bf16.msra.mxu1 %v7289_v6  ;;  %v7320_v5 = vld [vmem:[%s9773_s3 + $0x4b8] sm:$0xff]   ;;  %v7321_v6 = vld [vmem:[%s9773_s3 + $0x548] sm:$0xff]  }
 0x2cf   :  { %6921 = vmatprep.subr.bf16.mxu0 %v9885_v37  ;;  %6945 = vmatprep.subr.bf16.mxu1 %v9885_v37 }
 0x2d1   :  { %6898 = vmatmul.mubr.bf16.vlgmr.msra.gmra.mrb[228].mxu0 %v9023_v22  ;;  %v7294_v22 = vld [vmem:[%s9773_s3 + $0x410] sm:$0xff]  }
 0x2d2   :  { %6922 = vmatpush3.bf16.msra.mxu0 %v7290_v19  ;;  %6946 = vmatpush3.bf16.msra.mxu1 %v7291_v28  ;;  %v7323_v19 = vld [vmem:[%s9773_s3 + $0x550] sm:$0xff]   ;;  %v7324_v28 = vld [vmem:[%s9773_s3 + $0x508] sm:$0xff]  }
 0x2d3   :  { %6923 = vmatprep.subr.bf16.mxu0 %v9885_v37  ;;  %6947 = vmatprep.subr.bf16.mxu1 %v9885_v37 }
 0x2d4   :  { %6937 = vmatprep.mubr.msk.bf16.mxu0 %vm7387_vm0, %v9885_v37 }
 0x2d6   :  { %6924 = vmatpush3.bf16.msra.mxu0 %v7292_v35  ;;  %6948 = vmatpush3.bf16.msra.mxu1 %v7293_v36  ;;  %v7325_v35 = vld [vmem:[%s9773_s3 + $0x558] sm:$0xff]   ;;  %v7327_v36 = vld [vmem:[%s9773_s3 + $0x560] sm:$0xff]  }
 0x2d7   :  { %6925 = vmatprep.subr.bf16.mxu0 %v9885_v37  ;;  %6949 = vmatprep.subr.bf16.mxu1 %v9885_v37 }
 0x2da   :  { %6926 = vmatpush3.bf16.msra.mxu0 %v7294_v22  ;;  %6950 = vmatpush3.bf16.msra.mxu1 %v7295_v40  ;;  %v7328_v22 = vld [vmem:[%s9773_s3 + $0x518] sm:$0xff]   ;;  %v7329_v40 = vld [vmem:[%s9773_s3 + $0x568] sm:$0xff]  }
 0x2db   :  { %6927 = vmatprep.subr.bf16.mxu0 %v9885_v37  ;;  %6951 = vmatprep.subr.bf16.mxu1 %v9885_v37 }
 0x2dc   :  { %v2993_v21 = vpop.f32.mrb[204].mxu1 }
 0x2dd   :  { %v6679_v43 = vpop.f32.mrb[205].mxu1 }
 0x2de   :  { %v2996_v63 = vpop.f32.mrb[206].mxu1  ;;  %6928 = vmatpush3.bf16.msra.mxu0 %v7296_v7  ;;  %6952 = vmatpush3.bf16.msra.mxu1 %v7297_v56  ;;  %v7330_v43 = vld [vmem:[%s9773_s3 + $0x520] sm:$0xff]  }
 0x2df   :  { %v6680_v18 = vpop.f32.mrb[207].mxu1  ;;  %6929 = vmatprep.subr.bf16.mxu0 %v9885_v37  ;;  %6953 = vmatprep.subr.bf16.mxu1 %v9885_v37 }
 0x2e0   :  { %v7333_v18 = vld [vmem:[%s9773_s3 + $0x578] sm:$0xff]  }
 0x2e2   :  { %6930 = vmatpush3.bf16.msra.mxu0 %v7298_v9  ;;  %6954 = vmatpush3.bf16.msra.mxu1 %v7299_v39  ;;  %v7332_v39 = vld [vmem:[%s9773_s3 + $0x528] sm:$0xff]  }
 0x2e3   :  { %6931 = vmatprep.subr.bf16.mxu0 %v9885_v37  ;;  %6955 = vmatprep.subr.bf16.mxu1 %v9885_v37 }
 0x2e4   :  { %v2885_v51 = vpop.f32.mrb[204].mxu0 }
 0x2e5   :  { %v2892_v60 = vadd.f32 %v2885_v51, %v2780_v31  ;;  %v6659_v47 = vpop.f32.mrb[205].mxu0 }
 0x2e6   :  { %v2888_v15 = vpop.f32.mrb[206].mxu0  ;;  %6932 = vmatpush3.bf16.msra.mxu0 %v7300_v25  ;;  %6956 = vmatpush3.bf16.msra.mxu1 %v7301_v14  ;;  %v7334_v47 = vld [vmem:[%s9773_s3 + $0x530] sm:$0xff]  }
 0x2e7   :  { %v2893_v61 = vadd.f32 %v2888_v15, %v2783_v49  ;;  %v6660_v16 = vpop.f32.mrb[207].mxu0  ;;  %6933 = vmatprep.subr.bf16.mxu0 %v9885_v37  ;;  %6981 = vmatprep.subr.bf16.mxu1 %v9885_v37  ;;  %v3000_v20 = vadd.f32 %v2993_v21, %v2892_v60  ;;  %v7335_v15 = vld [vmem:[%s9773_s3 + $0x5c0] sm:$0xff]  }
 0x2e9   :  { %6958 = vmatmul.mubr.bf16.vlgmr.msra.gmra.mrb[232].mxu1 %v9104_v42  ;;  %v3001_v50 = vadd.f32 %v2996_v63, %v2893_v61  ;;  %v7306_v42 = vld [vmem:[%s9773_s3 + $0x480] sm:$0xff]   ;;  %v7331_v63 = vld [vmem:[%s9773_s3 + $0x570] sm:$0xff]  }
 0x2ea   :  { %6934 = vmatpush3.bf16.msra.mxu0 %v7302_v3  ;;  %6982 = vmatpush3.bf16.msra.mxu1 %v7303_v26 }
 0x2eb   :  { %6935 = vmatprep.subr.bf16.mxu0 %v9885_v37  ;;  %6983 = vmatprep.subr.bf16.mxu1 %v9885_v37 }
 0x2ec   :  { %6997 = vmatprep.mubr.msk.bf16.mxu1 %vm7387_vm0, %v9885_v37 }
 0x2ee   :  { %6936 = vmatpush3.bf16.msra.mxu0 %v7304_v17  ;;  %6984 = vmatpush3.bf16.msra.mxu1 %v7305_v27  ;;  %v7339_v17 = vld [vmem:[%s9773_s3 + $0x5d0] sm:$0xff]   ;;  %v7340_v27 = vld [vmem:[%s9773_s3 + $0x588] sm:$0xff]  }
 0x2ef   :  { %6961 = vmatprep.subr.bf16.mxu0 %v9885_v37  ;;  %6985 = vmatprep.subr.bf16.mxu1 %v9885_v37 }
 0x2f1   :  { %6938 = vmatmul.mubr.bf16.vlgmr.msra.gmra.mrb[232].mxu0 %v9075_v62  ;;  %v7310_v62 = vld [vmem:[%s9773_s3 + $0x490] sm:$0xff]  }
 0x2f2   :  { %6962 = vmatpush3.bf16.msra.mxu0 %v7306_v42  ;;  %6986 = vmatpush3.bf16.msra.mxu1 %v7307_v53  ;;  %v7341_v42 = vld [vmem:[%s9773_s3 + $0x5d8] sm:$0xff]   ;;  %v7343_v53 = vld [vmem:[%s9773_s3 + $0x5e0] sm:$0xff]  }
 0x2f3   :  { %6963 = vmatprep.subr.bf16.mxu0 %v9885_v37  ;;  %6987 = vmatprep.subr.bf16.mxu1 %v9885_v37 }
 0x2f4   :  { %6977 = vmatprep.mubr.msk.bf16.mxu0 %vm7387_vm0, %v9885_v37 }
 0x2f6   :  { %6964 = vmatpush3.bf16.msra.mxu0 %v7308_v4  ;;  %6988 = vmatpush3.bf16.msra.mxu1 %v7309_v33  ;;  %v7344_v4 = vld [vmem:[%s9773_s3 + $0x598] sm:$0xff]   ;;  %v7345_v33 = vld [vmem:[%s9773_s3 + $0x5e8] sm:$0xff]  }
 0x2f7   :  { %6965 = vmatprep.subr.bf16.mxu0 %v9885_v37  ;;  %6989 = vmatprep.subr.bf16.mxu1 %v9885_v37 }
 0x2fa   :  { %6966 = vmatpush3.bf16.msra.mxu0 %v7310_v62  ;;  %6990 = vmatpush3.bf16.msra.mxu1 %v7311_v24 }
 0x2fb   :  { %6967 = vmatprep.subr.bf16.mxu0 %v9885_v37  ;;  %6991 = vmatprep.subr.bf16.mxu1 %v9885_v37 }
 0x2fc   :  { %v3209_v54 = vpop.f32.mrb[208].mxu1 }
 0x2fd   :  { %v6719_v55 = vpop.f32.mrb[209].mxu1 }
 0x2fe   :  { %v3212_v10 = vpop.f32.mrb[210].mxu1  ;;  %6968 = vmatpush3.bf16.msra.mxu0 %v7312_v38  ;;  %6992 = vmatpush3.bf16.msra.mxu1 %v7313_v46  ;;  %v7346_v46 = vld [vmem:[%s9773_s3 + $0x5a0] sm:$0xff]  }
 0x2ff   :  { %v6720_v29 = vpop.f32.mrb[211].mxu1  ;;  %6969 = vmatprep.subr.bf16.mxu0 %v9885_v37  ;;  %6993 = vmatprep.subr.bf16.mxu1 %v9885_v37 }
 0x302   :  { %6970 = vmatpush3.bf16.msra.mxu0 %v7314_v34  ;;  %6994 = vmatpush3.bf16.msra.mxu1 %v7315_v48  ;;  %v7349_v34 = vld [vmem:[%s9773_s3 + $0x5f8] sm:$0xff]  }
 0x303   :  { %6971 = vmatprep.subr.bf16.mxu0 %v9885_v37  ;;  %6995 = vmatprep.subr.bf16.mxu1 %v9885_v37 }
 0x304   :  { %v3101_v45 = vpop.f32.mrb[208].mxu0 }
 0x305   :  { %v3108_v59 = vadd.f32 %v3101_v45, %v3000_v20  ;;  %v6699_v1 = vpop.f32.mrb[209].mxu0  ;;  %v7336_v20 = vld [vmem:[%s9773_s3 + $0x538] sm:$0xff]   ;;  %v7350_v45 = vld [vmem:[%s9773_s3 + $0x5b0] sm:$0xff]  }
 0x306   :  { %v3104_v31 = vpop.f32.mrb[210].mxu0  ;;  %6972 = vmatpush3.bf16.msra.mxu0 %v7316_v8  ;;  %6996 = vmatpush3.bf16.msra.mxu1 %v7317_v2 }
 0x307   :  { %v3109_v52 = vadd.f32 %v3104_v31, %v3001_v50  ;;  %v6700_v57 = vpop.f32.mrb[211].mxu0  ;;  %6973 = vmatprep.subr.bf16.mxu0 %v9885_v37  ;;  %7021 = vmatprep.subr.bf16.mxu1 %v9885_v37  ;;  %v3216_v49 = vadd.f32 %v3209_v54, %v3108_v59  ;;  %v7337_v50 = vld [vmem:[%s9773_s3 + $0x5c8] sm:$0xff]   ;;  %v7347_v54 = vld [vmem:[%s9773_s3 + $0x5f0] sm:$0xff]  }
 0x308   :  { %v7354_v57 = vld [vmem:[%s9773_s3 + $0x610] sm:$0xff]  }
 0x309   :  { %6998 = vmatmul.mubr.bf16.vlgmr.msra.gmra.mrb[236].mxu1 %v9164_v13  ;;  %v3217_v58 = vadd.f32 %v3212_v10, %v3109_v52  ;;  %v7322_v13 = vld [vmem:[%s9773_s3 + $0x500] sm:$0xff]   ;;  %v7348_v10 = vld [vmem:[%s9773_s3 + $0x5a8] sm:$0xff]  }
 0x30a   :  { %6974 = vmatpush3.bf16.msra.mxu0 %v7318_v30  ;;  %7022 = vmatpush3.bf16.msra.mxu1 %v7319_v23  ;;  %v7351_v23 = vld [vmem:[%s9773_s3 + $0x5b8] sm:$0xff]   ;;  %v7352_v52 = vld [vmem:[%s9773_s3 + $0x600] sm:$0xff]  }
 0x30b   :  { %6975 = vmatprep.subr.bf16.mxu0 %v9885_v37  ;;  %7023 = vmatprep.subr.bf16.mxu1 %v9885_v37 }
 0x30c   :  { %7037 = vmatprep.mubr.msk.bf16.mxu1 %vm7387_vm0, %v9885_v37 }
 0x30e   :  { %6976 = vmatpush3.bf16.msra.mxu0 %v7320_v5  ;;  %7024 = vmatpush3.bf16.msra.mxu1 %v7321_v6  ;;  %v7356_v6 = vld [vmem:[%s9773_s3 + $0x620] sm:$0xff]  }
 0x30f   :  { %7001 = vmatprep.subr.bf16.mxu0 %v9885_v37  ;;  %7025 = vmatprep.subr.bf16.mxu1 %v9885_v37 }
 0x311   :  { %6978 = vmatmul.mubr.bf16.vlgmr.msra.gmra.mrb[236].mxu0 %v9138_v12  ;;  %v7326_v12 = vld [vmem:[%s9773_s3 + $0x510] sm:$0xff]  }
 0x312   :  { %7002 = vmatpush3.bf16.msra.mxu0 %v7322_v13  ;;  %7026 = vmatpush3.bf16.msra.mxu1 %v7323_v19  ;;  %v7357_v19 = vld [vmem:[%s9773_s3 + $0x628] sm:$0xff]  }
 0x313   :  { %7003 = vmatprep.subr.bf16.mxu0 %v9885_v37  ;;  %7027 = vmatprep.subr.bf16.mxu1 %v9885_v37 }
 0x314   :  { %7017 = vmatprep.mubr.msk.bf16.mxu0 %vm7387_vm0, %v9885_v37 }
 0x316   :  { %7004 = vmatpush3.bf16.msra.mxu0 %v7324_v28  ;;  %7028 = vmatpush3.bf16.msra.mxu1 %v7325_v35 }
 0x317   :  { %7005 = vmatprep.subr.bf16.mxu0 %v9885_v37  ;;  %7029 = vmatprep.subr.bf16.mxu1 %v9885_v37 }
 0x31a   :  { %7006 = vmatpush3.bf16.msra.mxu0 %v7326_v12  ;;  %7030 = vmatpush3.bf16.msra.mxu1 %v7327_v36 }
 0x31b   :  { %7007 = vmatprep.subr.bf16.mxu0 %v9885_v37  ;;  %7031 = vmatprep.subr.bf16.mxu1 %v9885_v37 }
 0x31c   :  { %v3425_v7 = vpop.f32.mrb[212].mxu1 }
 0x31d   :  { %v6759_v56 = vpop.f32.mrb[213].mxu1 }
 0x31e   :  { %v3428_v21 = vpop.f32.mrb[214].mxu1  ;;  %7008 = vmatpush3.bf16.msra.mxu0 %v7328_v22  ;;  %7032 = vmatpush3.bf16.msra.mxu1 %v7329_v40  ;;  %v7358_v22 = vld [vmem:[%s9773_s3 + $0x630] sm:$0xff]  }
 0x31f   :  { %v6760_v9 = vpop.f32.mrb[215].mxu1  ;;  %7009 = vmatprep.subr.bf16.mxu0 %v9885_v37  ;;  %7033 = vmatprep.subr.bf16.mxu1 %v9885_v37 }
 0x322   :  { %7010 = vmatpush3.bf16.msra.mxu0 %v7330_v43  ;;  %7034 = vmatpush3.bf16.msra.mxu1 %v7331_v63  ;;  %v7359_v43 = vld [vmem:[%s9773_s3 + $0x638] sm:$0xff]  }
 0x323   :  { %7011 = vmatprep.subr.bf16.mxu0 %v9885_v37  ;;  %7035 = vmatprep.subr.bf16.mxu1 %v9885_v37 }
 0x324   :  { %v3317_v25 = vpop.f32.mrb[212].mxu0 }
 0x325   :  { %v3324_v14 = vadd.f32 %v3317_v25, %v3216_v49  ;;  %v6739_v51 = vpop.f32.mrb[213].mxu0 }
 0x326   :  { %v3320_v60 = vpop.f32.mrb[214].mxu0  ;;  %7012 = vmatpush3.bf16.msra.mxu0 %v7332_v39  ;;  %7036 = vmatpush3.bf16.msra.mxu1 %v7333_v18 }
 0x327   :  { %v3325_v3 = vadd.f32 %v3320_v60, %v3217_v58  ;;  %v6740_v26 = vpop.f32.mrb[215].mxu0  ;;  %7013 = vmatprep.subr.bf16.mxu0 %v9885_v37  ;;  %7061 = vmatprep.subr.bf16.mxu1 %v9885_v37  ;;  %v3432_v61 = vadd.f32 %v3425_v7, %v3324_v14 }
 0x329   :  { %7038 = vmatmul.mubr.bf16.vlgmr.msra.gmra.mrb[240].mxu1 %v9219_v0  ;;  %v3433_v16 = vadd.f32 %v3428_v21, %v3325_v3  ;;  %v7338_v0 = vld [vmem:[%s9773_s3 + $0x580] sm:$0xff]  }
 0x32a   :  { %7014 = vmatpush3.bf16.msra.mxu0 %v7334_v47  ;;  %7062 = vmatpush3.bf16.msra.mxu1 %v7335_v15 }
 0x32b   :  { %7015 = vmatprep.subr.bf16.mxu0 %v9885_v37  ;;  %7063 = vmatprep.subr.bf16.mxu1 %v9885_v37 }
 0x32c   :  { %7077 = vmatprep.mubr.msk.bf16.mxu1 %vm7387_vm0, %v9885_v37 }
 0x32e   :  { %7016 = vmatpush3.bf16.msra.mxu0 %v7336_v20  ;;  %7064 = vmatpush3.bf16.msra.mxu1 %v7337_v50 }
 0x32f   :  { %7041 = vmatprep.subr.bf16.mxu0 %v9885_v37  ;;  %7065 = vmatprep.subr.bf16.mxu1 %v9885_v37 }
 0x331   :  { %7018 = vmatmul.mubr.bf16.vlgmr.msra.gmra.mrb[240].mxu0 %v9190_v44  ;;  %v7342_v44 = vld [vmem:[%s9773_s3 + $0x590] sm:$0xff]  }
 0x332   :  { %7042 = vmatpush3.bf16.msra.mxu0 %v7338_v0  ;;  %7066 = vmatpush3.bf16.msra.mxu1 %v7339_v17 }
 0x333   :  { %7043 = vmatprep.subr.bf16.mxu0 %v9885_v37  ;;  %7067 = vmatprep.subr.bf16.mxu1 %v9885_v37 }
 0x334   :  { %7057 = vmatprep.mubr.msk.bf16.mxu0 %vm7387_vm0, %v9885_v37 }
 0x336   :  { %7044 = vmatpush3.bf16.msra.mxu0 %v7340_v27  ;;  %7068 = vmatpush3.bf16.msra.mxu1 %v7341_v42 }
 0x337   :  { %7045 = vmatprep.subr.bf16.mxu0 %v9885_v37  ;;  %7069 = vmatprep.subr.bf16.mxu1 %v9885_v37 }
 0x33a   :  { %7046 = vmatpush3.bf16.msra.mxu0 %v7342_v44  ;;  %7070 = vmatpush3.bf16.msra.mxu1 %v7343_v53 }
 0x33b   :  { %7047 = vmatprep.subr.bf16.mxu0 %v9885_v37  ;;  %7071 = vmatprep.subr.bf16.mxu1 %v9885_v37 }
 0x33c   :  { %v3641_v62 = vpop.f32.mrb[216].mxu1 }
 0x33d   :  { %v6799_v24 = vpop.f32.mrb[217].mxu1 }
 0x33e   :  { %v3644_v38 = vpop.f32.mrb[218].mxu1  ;;  %7048 = vmatpush3.bf16.msra.mxu0 %v7344_v4  ;;  %7072 = vmatpush3.bf16.msra.mxu1 %v7345_v33  ;;  %v7360_v4 = vld [vmem:[%s9775_s5] sm:$0xff]   ;;  %v7362_v24 = vld [vmem:[%s9775_s5 + $0x10] sm:$0xff]  }
 0x33f   :  { %v6800_v55 = vpop.f32.mrb[219].mxu1  ;;  %7049 = vmatprep.subr.bf16.mxu0 %v9885_v37  ;;  %7073 = vmatprep.subr.bf16.mxu1 %v9885_v37 }
 0x342   :  { %7050 = vmatpush3.bf16.msra.mxu0 %v7346_v46  ;;  %7074 = vmatpush3.bf16.msra.mxu1 %v7347_v54  ;;  %v7364_v46 = vld [vmem:[%s9775_s5 + $0x20] sm:$0xff]  }
 0x343   :  { %7051 = vmatprep.subr.bf16.mxu0 %v9885_v37  ;;  %7075 = vmatprep.subr.bf16.mxu1 %v9885_v37 }
 0x344   :  { %v3533_v48 = vpop.f32.mrb[216].mxu0 }
 0x345   :  { %v3540_v29 = vadd.f32 %v3533_v48, %v3432_v61  ;;  %v6779_v8 = vpop.f32.mrb[217].mxu0  ;;  %v7365_v48 = vld [vmem:[%s9775_s5 + $0x28] sm:$0xff]  }
 0x346   :  { %v3536_v2 = vpop.f32.mrb[218].mxu0  ;;  %7052 = vmatpush3.bf16.msra.mxu0 %v7348_v10  ;;  %7076 = vmatpush3.bf16.msra.mxu1 %v7349_v34 }
 0x347   :  { %v3541_v59 = vadd.f32 %v3536_v2, %v3433_v16  ;;  %v6780_v1 = vpop.f32.mrb[219].mxu0  ;;  %7053 = vmatprep.subr.bf16.mxu0 %v9885_v37  ;;  %v3648_v31 = vadd.f32 %v3641_v62, %v3540_v29  ;;  %7101 = vmatprep.subr.bf16.mxu1 %v9885_v37  ;;  %v7361_v62 = vld [vmem:[%s9775_s5 + $0x8] sm:$0xff]  }
 0x349   :  { %7078 = vmatmul.mubr.bf16.vlgmr.msra.gmra.mrb[244].mxu1 %v9274_v11  ;;  %v3649_v30 = vadd.f32 %v3644_v38, %v3541_v59  ;;  %v7353_v11 = vld [vmem:[%s9773_s3 + $0x608] sm:$0xff]   ;;  %v7363_v38 = vld [vmem:[%s9775_s5 + $0x18] sm:$0xff]   ;;  %v7366_v59 = vld [vmem:[%s9775_s5 + $0x30] sm:$0xff]  }
 0x34a   :  { %7054 = vmatpush3.bf16.msra.mxu0 %v7350_v45  ;;  %7117 = vmatprep.mubr.msk.bf16.mxu1 %vm7387_vm0, %v9885_v37 }
 0x34b   :  { %7055 = vmatprep.subr.bf16.mxu0 %v9885_v37  ;;  %7102 = vmatpush3.bf16.msra.mxu1 %v7360_v4 }
 0x34c   :  { %7103 = vmatprep.subr.bf16.mxu1 %v9885_v37 }
 0x34e   :  { %7056 = vmatpush3.bf16.msra.mxu0 %v7351_v23 }
 0x34f   :  { %7081 = vmatprep.subr.bf16.mxu0 %v9885_v37  ;;  %7104 = vmatpush3.bf16.msra.mxu1 %v7361_v62 }
 0x350   :  { %7105 = vmatprep.subr.bf16.mxu1 %v9885_v37 }
 0x351   :  { %7058 = vmatmul.mubr.bf16.vlgmr.msra.gmra.mrb[244].mxu0 %v9248_v41  ;;  %v7355_v41 = vld [vmem:[%s9773_s3 + $0x618] sm:$0xff]  }
 0x352   :  { %7082 = vmatpush3.bf16.msra.mxu0 %v7352_v52  ;;  %7097 = vmatprep.mubr.msk.bf16.mxu0 %vm7387_vm0, %v9885_v37  ;;  %v7367_v52 = vld [vmem:[%s9775_s5 + $0x38] sm:$0xff]  }
 0x353   :  { %7083 = vmatprep.subr.bf16.mxu0 %v9885_v37  ;;  %7106 = vmatpush3.bf16.msra.mxu1 %v7362_v24 }
 0x354   :  { %7107 = vmatprep.subr.bf16.mxu1 %v9885_v37 }
 0x356   :  { %7084 = vmatpush3.bf16.msra.mxu0 %v7353_v11  ;;  %v7368_v11 = vld [vmem:[%s9776_s7] sm:$0xff]  }
 0x357   :  { %7085 = vmatprep.subr.bf16.mxu0 %v9885_v37  ;;  %7108 = vmatpush3.bf16.msra.mxu1 %v7363_v38 }
 0x358   :  { %7109 = vmatprep.subr.bf16.mxu1 %v9885_v37 }
 0x35a   :  { %7086 = vmatpush3.bf16.msra.mxu0 %v7354_v57  ;;  %v7369_v57 = vld [vmem:[%s9776_s7 + $0x8] sm:$0xff]  }
 0x35b   :  { %7087 = vmatprep.subr.bf16.mxu0 %v9885_v37  ;;  %7110 = vmatpush3.bf16.msra.mxu1 %v7364_v46 }
 0x35c   :  { %v3857_v49 = vpop.f32.mrb[220].mxu1  ;;  %7111 = vmatprep.subr.bf16.mxu1 %v9885_v37 }
 0x35d   :  { %v6839_v58 = vpop.f32.mrb[221].mxu1 }
 0x35e   :  { %v3860_v5 = vpop.f32.mrb[222].mxu1  ;;  %7088 = vmatpush3.bf16.msra.mxu0 %v7355_v41  ;;  %v7370_v41 = vld [vmem:[%s9776_s7 + $0x10] sm:$0xff]  }
 0x35f   :  { %v6840_v13 = vpop.f32.mrb[223].mxu1  ;;  %7089 = vmatprep.subr.bf16.mxu0 %v9885_v37  ;;  %7112 = vmatpush3.bf16.msra.mxu1 %v7365_v48 }
 0x360   :  { %7113 = vmatprep.subr.bf16.mxu1 %v9885_v37  ;;  %v7372_v13 = vld [vmem:[%s9776_s7 + $0x20] sm:$0xff]  }
 0x362   :  { %7090 = vmatpush3.bf16.msra.mxu0 %v7356_v6 }
 0x363   :  { %7091 = vmatprep.subr.bf16.mxu0 %v9885_v37  ;;  %7114 = vmatpush3.bf16.msra.mxu1 %v7366_v59 }
 0x364   :  { %v3749_v28 = vpop.f32.mrb[220].mxu0  ;;  %7115 = vmatprep.subr.bf16.mxu1 %v9885_v37 }
 0x365   :  { %v3756_v35 = vadd.f32 %v3749_v28, %v3648_v31  ;;  %v6819_v12 = vpop.f32.mrb[221].mxu0  ;;  %v7373_v28 = vld [vmem:[%s9776_s7 + $0x28] sm:$0xff]  }
 0x366   :  { %v3752_v36 = vpop.f32.mrb[222].mxu0  ;;  %7092 = vmatpush3.bf16.msra.mxu0 %v7357_v19 }
 0x367   :  { %v3757_v40 = vadd.f32 %v3752_v36, %v3649_v30  ;;  %v6820_v7 = vpop.f32.mrb[223].mxu0  ;;  %7093 = vmatprep.subr.bf16.mxu0 %v9885_v37  ;;  %v3864_v56 = vadd.f32 %v3857_v49, %v3756_v35  ;;  %7116 = vmatpush3.bf16.msra.mxu1 %v7367_v52  ;;  %v7371_v49 = vld [vmem:[%s9776_s7 + $0x18] sm:$0xff]  }
 0x369   :  { %v3865_v21 = vadd.f32 %v3860_v5, %v3757_v40 }
 0x36a   :  { %7094 = vmatpush3.bf16.msra.mxu0 %v7358_v22 }
 0x36b   :  { %7095 = vmatprep.subr.bf16.mxu0 %v9885_v37 }
 0x36e   :  { %7096 = vmatpush3.bf16.msra.mxu0 %v7359_v43 }
 0x36f   :  { %7121 = vmatprep.subr.bf16.mxu0 %v9885_v37 }
 0x371   :  { %7098 = vmatmul.mubr.bf16.vlgmr.msra.gmra.mrb[248].mxu0 %v9297_v32 }
 0x372   :  { %7137 = vmatprep.mubr.msk.bf16.mxu0 %vm7387_vm0, %v9885_v37  ;;  %7122 = vmatpush3.bf16.msra.mxu0 %v7368_v11 }
 0x373   :  { %7123 = vmatprep.subr.bf16.mxu0 %v9885_v37 }
 0x376   :  { %7124 = vmatpush3.bf16.msra.mxu0 %v7369_v57 }
 0x377   :  { %7125 = vmatprep.subr.bf16.mxu0 %v9885_v37 }
 0x37a   :  { %7126 = vmatpush3.bf16.msra.mxu0 %v7370_v41 }
 0x37b   :  { %7127 = vmatprep.subr.bf16.mxu0 %v9885_v37 }
 0x37c   :  { %v4073_v63 = vpop.f32.mrb[224].mxu1 }
 0x37d   :  { %v6879_v9 = vpop.f32.mrb[225].mxu1 }
 0x37e   :  { %v4076_v39 = vpop.f32.mrb[226].mxu1  ;;  %7128 = vmatpush3.bf16.msra.mxu0 %v7371_v49 }
 0x37f   :  { %v6880_v18 = vpop.f32.mrb[227].mxu1  ;;  %7129 = vmatprep.subr.bf16.mxu0 %v9885_v37 }
 0x382   :  { %7130 = vmatpush3.bf16.msra.mxu0 %v7372_v13 }
 0x383   :  { %7131 = vmatprep.subr.bf16.mxu0 %v9885_v37 }
 0x384   :  { %v3965_v25 = vpop.f32.mrb[224].mxu0 }
 0x385   :  { %v3972_v14 = vadd.f32 %v3965_v25, %v3864_v56  ;;  %v6859_v51 = vpop.f32.mrb[225].mxu0 }
 0x386   :  { %v3968_v60 = vpop.f32.mrb[226].mxu0  ;;  %7132 = vmatpush3.bf16.msra.mxu0 %v7373_v28 }
 0x387   :  { %v3973_v47 = vadd.f32 %v3968_v60, %v3865_v21  ;;  %v6860_v15 = vpop.f32.mrb[227].mxu0  ;;  %v4080_v3 = vadd.f32 %v4073_v63, %v3972_v14  ;;  %7133 = vmatprep.subr.bf16.mxu0 %v9885_v37 }
 0x389   :  { %v4081_v26 = vadd.f32 %v4076_v39, %v3973_v47 }
 0x39c   :  { %v4289_v61 = vpop.f32.mrb[228].mxu1 }
 0x39d   :  { %v6919_v16 = vpop.f32.mrb[229].mxu1 }
 0x39e   :  { %v4292_v20 = vpop.f32.mrb[230].mxu1 }
 0x39f   :  { %v6920_v50 = vpop.f32.mrb[231].mxu1 }
 0x3a4   :  { %v4181_v32 = vpop.f32.mrb[228].mxu0 }
 0x3a5   :  { %v4188_v0 = vadd.f32 %v4181_v32, %v4080_v3  ;;  %v6899_v17 = vpop.f32.mrb[229].mxu0 }
 0x3a6   :  { %v4184_v27 = vpop.f32.mrb[230].mxu0 }
 0x3a7   :  { %v4189_v42 = vadd.f32 %v4184_v27, %v4081_v26  ;;  %v6900_v44 = vpop.f32.mrb[231].mxu0  ;;  %v4296_v53 = vadd.f32 %v4289_v61, %v4188_v0 }
 0x3a9   :  { %v4297_v33 = vadd.f32 %v4292_v20, %v4189_v42 }
 0x3bc   :  { %v4505_v54 = vpop.f32.mrb[232].mxu1 }
 0x3bd   :  { %v6959_v55 = vpop.f32.mrb[233].mxu1 }
 0x3be   :  { %v4508_v10 = vpop.f32.mrb[234].mxu1 }
 0x3bf   :  { %v6960_v34 = vpop.f32.mrb[235].mxu1 }
 0x3c4   :  { %v4397_v29 = vpop.f32.mrb[232].mxu0 }
 0x3c5   :  { %v4404_v8 = vadd.f32 %v4397_v29, %v4296_v53  ;;  %v6939_v2 = vpop.f32.mrb[233].mxu0 }
 0x3c6   :  { %v4400_v45 = vpop.f32.mrb[234].mxu0  ;;  %v7375_v2 = vld [vmem:[%s9776_s7 + $0x38] sm:$0xff]  }
 0x3c7   :  { %v4405_v1 = vadd.f32 %v4400_v45, %v4297_v33  ;;  %v6940_v31 = vpop.f32.mrb[235].mxu0  ;;  %v4512_v30 = vadd.f32 %v4505_v54, %v4404_v8  ;;  %v6339_v33 = vld [vmem:[%s9777_s4] ss:$0 sm:$0xff]  ;;  %v7374_v8 = vld [vmem:[%s9776_s7 + $0x30] sm:$0xff]  }
 0x3c8   :  { %7134 = vmatpush3.bf16.msra.mxu0 %v7374_v8  ;;  %v6340_v45 = vld [vmem:[%s9778_s6] ss:$0 sm:$0xff] }
 0x3c9   :  { %v4513_v23 = vadd.f32 %v4508_v10, %v4405_v1  ;;  %7135 = vmatprep.subr.bf16.mxu0 %v9885_v37  ;;  %v5509_v37 = vlaneseq }
 0x3cb   :  { %v5510_v49 = vand.u32 127, %v5509_v37 }
 0x3cc   :  { %7136 = vmatpush3.bf16.msra.mxu0 %v7375_v2 }
 0x3cd   :  { %vm5511_vm1 = vcmp.lt.s32.totalorder %v5510_v49, 10 }
 0x3dc   :  { %v4721_v58 = vpop.f32.mrb[236].mxu1 }
 0x3dd   :  { %v6999_v5 = vpop.f32.mrb[237].mxu1 }
 0x3de   :  { %v4724_v6 = vpop.f32.mrb[238].mxu1 }
 0x3df   :  { %v7000_v19 = vpop.f32.mrb[239].mxu1 }
 0x3e4   :  { %v4613_v35 = vpop.f32.mrb[236].mxu0 }
 0x3e5   :  { %v4620_v12 = vadd.f32 %v4613_v35, %v4512_v30  ;;  %v6979_v36 = vpop.f32.mrb[237].mxu0 }
 0x3e6   :  { %v4616_v22 = vpop.f32.mrb[238].mxu0 }
 0x3e7   :  { %v4621_v40 = vadd.f32 %v4616_v22, %v4513_v23  ;;  %v6980_v7 = vpop.f32.mrb[239].mxu0  ;;  %v4728_v56 = vadd.f32 %v4721_v58, %v4620_v12  ;;  %v6349_v58 = vld [vmem:[%s9779_s8] ss:$0 sm:$0xff] }
 0x3e9   :  { %v4729_v21 = vadd.f32 %v4724_v6, %v4621_v40 }
 0x3fc   :  { %v4937_v43 = vpop.f32.mrb[240].mxu1 }
 0x3fd   :  { %v7039_v63 = vpop.f32.mrb[241].mxu1 }
 0x3fe   :  { %v4940_v9 = vpop.f32.mrb[242].mxu1 }
 0x3ff   :  { %v7040_v39 = vpop.f32.mrb[243].mxu1 }
 0x404   :  { %v4829_v18 = vpop.f32.mrb[240].mxu0 }
 0x405   :  { %v4836_v25 = vadd.f32 %v4829_v18, %v4728_v56  ;;  %v7019_v14 = vpop.f32.mrb[241].mxu0 }
 0x406   :  { %v4832_v51 = vpop.f32.mrb[242].mxu0 }
 0x407   :  { %v4837_v60 = vadd.f32 %v4832_v51, %v4729_v21  ;;  %v7020_v47 = vpop.f32.mrb[243].mxu0  ;;  %v4944_v15 = vadd.f32 %v4937_v43, %v4836_v25 }
 0x409   :  { %v4945_v3 = vadd.f32 %v4940_v9, %v4837_v60 }
 0x41c   :  { %v5153_v26 = vpop.f32.mrb[244].mxu1 }
 0x41d   :  { %v7079_v61 = vpop.f32.mrb[245].mxu1 }
 0x41e   :  { %v5156_v16 = vpop.f32.mrb[246].mxu1 }
 0x41f   :  { %v7080_v20 = vpop.f32.mrb[247].mxu1 }
 0x424   :  { %v5045_v50 = vpop.f32.mrb[244].mxu0 }
 0x425   :  { %v5052_v32 = vadd.f32 %v5045_v50, %v4944_v15  ;;  %v7059_v0 = vpop.f32.mrb[245].mxu0 }
 0x426   :  { %v5048_v17 = vpop.f32.mrb[246].mxu0 }
 0x427   :  { %v5053_v27 = vadd.f32 %v5048_v17, %v4945_v3  ;;  %v7060_v42 = vpop.f32.mrb[247].mxu0  ;;  %v5160_v44 = vadd.f32 %v5153_v26, %v5052_v32 }
 0x429   :  { %v5161_v53 = vadd.f32 %v5156_v16, %v5053_v27 }
 0x444   :  { %v5261_v4 = vpop.f32.mrb[248].mxu0 }
 0x445   :  { %v5268_v62 = vadd.f32 %v5261_v4, %v5160_v44  ;;  %v7099_v24 = vpop.f32.mrb[249].mxu0 }
 0x446   :  { %v5264_v38 = vpop.f32.mrb[250].mxu0 }
 0x447   :  { %v5277_v46 = vadd.f32 %v6339_v33, %v5268_v62  ;;  %v5269_v54 = vadd.f32 %v5264_v38, %v5161_v53  ;;  %v7100_v55 = vpop.f32.mrb[251].mxu0 }
 0x449   :  { %v5278_v10 = vadd.f32 %v6339_v33, %v5269_v54  ;;  %v5279_v34 = vmax.f32 %v5277_v46, 0.0 }
 0x44b   :  { %v5280_v48 = vmax.f32 %v5278_v10, 0.0 }
 0x44d   :  { %v5281_v29 = vpack.c.bf16 %v5280_v48, %v5279_v34 }
 0x44f   :  { %7118 = vmatmul.mubr.bf16.vlgmr.msra.gmra.mrb[248].mxu1 %v5281_v29 }
 0x522   :  { %v5387_v59 = vpop.f32.mrb[248].mxu1 }
 0x523   :  { %v5388_v1 = vadd.f32 %v6340_v45, %v5387_v59  ;;  %v7119_v31 = vpop.f32.mrb[249].mxu1 }
 0x524   :  { %v5390_v30 = vpop.f32.mrb[250].mxu1 }
 0x525   :  { %v5391_v23 = vadd.f32 %v6340_v45, %v5390_v30  ;;  %v7120_v52 = vpop.f32.mrb[251].mxu1  ;;  %v5394_v11 = vmax.f32 %v5388_v1, 0.0 }
 0x527   :  { %v5395_v57 = vmax.f32 %v5391_v23, 0.0 }
 0x529   :  { %v5396_v41 = vpack.c.bf16 %v5395_v57, %v5394_v11 }
 0x52b   :  { %7138 = vmatmul.mubr.bf16.vlgmr.msra.gmra.mrb[252].mxu0 %v5396_v41 }
 0x5fe   :  { %v5502_v5 = vpop.f32.mrb[252].mxu0 }
 0x5ff   :  { %v5503_v6 = vadd.f32 %v6349_v58, %v5502_v5  ;;  %v7139_v13 = vpop.f32.mrb[253].mxu0 }
 0x600   :  { %v5505_v19 = vpop.f32.mrb[254].mxu0 }
 0x601   :  { %v5506_v28 = vadd.f32 %v6349_v58, %v5505_v19  ;;  %v7140_v35 = vpop.f32.mrb[255].mxu0  ;;  %v5512_v12 = vsel %vm5511_vm1, %v5503_v6, -1e+30 }
 0x602   :  { %5514 = vmax.xlane.f32.xlu0 %v5512_v12 }
 0x603   :  { %v5513_v36 = vsel %vm5511_vm1, %v5506_v28, -1e+30 }
 0x606   :  { %5516 = vmax.xlane.f32.xlu0 %v5513_v36 }
 0x68f   :  { %v5515_v22 = vpop.xlane.xlu0 %5514 }
 0x690   :  { %v5518_v40 = vsub.f32 %v5512_v12, %v5515_v22 }
 0x692   :  { %v5520_v7 = vmul.f32 1.442695, %v5518_v40 }
 0x693   :  { %v5517_v56 = vpop.xlane.xlu0 %5516 }
 0x694   :  { %7376 = vpow2.f32 %v5520_v7  ;;  %v5519_v21 = vsub.f32 %v5513_v36, %v5517_v56 }
 0x696   :  { %v5522_v43 = vmul.f32 1.442695, %v5519_v21 }
 0x698   :  { %7378 = vpow2.f32 %v5522_v43 }
 0x69e   :  { %v7377_v63 = vpop.eup %7376 }
 0x69f   :  { %5524 = vadd.xlane.f32.xlu1 %v7377_v63 }
 0x6a2   :  { %v7379_v9 = vpop.eup %7378 }
 0x6a3   :  { %5526 = vadd.xlane.f32.xlu1 %v7379_v9 }
 0x72c   :  { %v5525_v39 = vpop.xlane.xlu1 %5524 }
 0x72d   :  { %7380 = vrcp.f32 %v5525_v39 }
 0x730   :  { %v5527_v18 = vpop.xlane.xlu1 %5526 }
 0x731   :  { %7382 = vrcp.f32 %v5527_v18 }
 0x737   :  { %v7381_v25 = vpop.eup %7380 }
 0x738   :  { %v5530_v14 = vmul.f32 %v7381_v25, %v7377_v63 }
 0x73a   :  { %5532 = vst [vmem:[%s9780_s9] sm:$0xff] %v5530_v14 }
 0x73b   :  { %v7383_v51 = vpop.eup %7382 }
 0x73c   :  { %v5531_v60 = vmul.f32 %v7383_v51, %v7379_v9 }
 0x73e   :  { %5533 = vst [vmem:[%s9780_s9 + $0x8] sm:$0xff] %v5531_v60 }

</bundles_post_ra>
